<compile_context>
chip_gen: v7x
topology: tpu7x:2x2x1
jax: 0.10.0
libtpu: 0.0.40
codegen_flags: <defaults>
</compile_context>

<pallas_src>
import functools

import numpy as np
import jax
import jax.numpy as jnp
from jax.experimental import pallas as pl
from jax.experimental.pallas import tpu as pltpu


# ---------------------------------------------------------------------------
# Resampling-matrix construction (host-side glue, exact PyTorch semantics)
# ---------------------------------------------------------------------------
def adaptive_pool_matrix(in_size: int, out_size: int) -> np.ndarray:
    """Row i averages input window [floor(i*in/out), ceil((i+1)*in/out))."""
    M = np.zeros((out_size, in_size), dtype=np.float32)
    for i in range(out_size):
        s = (i * in_size) // out_size
        e = -((-(i + 1) * in_size) // out_size)  # ceil((i+1)*in/out)
        M[i, s:e] = 1.0 / (e - s)
    return M


def bilinear_matrix(in_size: int, out_size: int) -> np.ndarray:
    """PyTorch F.interpolate(mode='bilinear', align_corners=False), 1-D."""
    M = np.zeros((out_size, in_size), dtype=np.float32)
    scale = in_size / out_size
    for i in range(out_size):
        src = max((i + 0.5) * scale - 0.5, 0.0)
        i0 = min(int(np.floor(src)), in_size - 1)
        i1 = min(i0 + 1, in_size - 1)
        w1 = src - i0
        M[i, i0] += 1.0 - w1
        M[i, i1] += w1
    return M


@functools.lru_cache(maxsize=None)
def _resample_matrix_T(hi: int, wi: int, h: int, w: int, kind: str) -> np.ndarray:
    """kron(A_h, A_w)^T with shape (hi*wi, h*w): Y_flat = X_flat @ R^T."""
    if kind == "pool":
        a_h, a_w = adaptive_pool_matrix(hi, h), adaptive_pool_matrix(wi, w)
    else:
        a_h, a_w = bilinear_matrix(hi, h), bilinear_matrix(wi, w)
    return np.kron(a_h, a_w).T.copy()


# ---------------------------------------------------------------------------
# Batch-fold (Nb) selection: fill the MXU M dimension, stay layout-legal
# ---------------------------------------------------------------------------
def _pick_nb(n, channels, lens, itemsize, target_rows=256, max_block_bytes=12 << 20):
    """Smallest divisor of n whose folded matmul M = nb*C reaches ~target_rows
    (MXU-filling), subject to sublane-layout legality and a per-step VMEM cap;
    otherwise the largest legal divisor."""
    per_sample = sum(c * l for c, l in zip(channels, lens)) * itemsize
    candidates = [d for d in range(1, n + 1) if n % d == 0]
    layout_ok = [d for d in candidates
                 if d == n or all((d * c) % 8 == 0 for c in channels)]
    legal = [d for d in layout_ok if 2 * d * per_sample <= max_block_bytes]
    if not legal:
        return layout_ok[0] if layout_ok else n
    best = legal[-1]
    for d in legal:
        if d * min(channels) >= target_rows:
            best = d
            break
    return best


# ---------------------------------------------------------------------------
# Pallas kernel: one matmul per pyramid level, direct channel-slice stores
# ---------------------------------------------------------------------------
def _make_lfam_kernel(nb, c_l, c_m, c_s, c_n, tile_hw):
    def kernel(xl_ref, xm_ref, xs_ref, xn_ref, rl_ref, rm_ref, rn_ref, out_ref):
        out_dt = out_ref.dtype

        def resample(x_ref, r_ref, c):
            x = x_ref[...]                        # (nb*c, Hi*Wi)
            r = r_ref[...]                        # (Hi*Wi, tile_hw)
            if x.dtype != r.dtype:
                x = x.astype(r.dtype)             # bf16 MXU path for f32 activations
            y = jnp.dot(x, r, preferred_element_type=jnp.float32)
            return y.reshape(nb, c, tile_hw).astype(out_dt)

        out_ref[:, :c_l, :] = resample(xl_ref, rl_ref, c_l)
        out_ref[:, c_l:c_l + c_m, :] = resample(xm_ref, rm_ref, c_m)
        out_ref[:, c_l + c_m:c_l + c_m + c_s, :] = xs_ref[...].reshape(nb, c_s, tile_hw)
        out_ref[:, c_l + c_m + c_s:, :] = resample(xn_ref, rn_ref, c_n)

    return kernel


# ---------------------------------------------------------------------------
# Wrapper
# ---------------------------------------------------------------------------
def l_fam(x_l, x_m, x_s, x_n, mxu_dtype=None):
    N, Cl, Hl, Wl = x_l.shape
    _, Cm, Hm, Wm = x_m.shape
    _, Cs, H, W = x_s.shape
    _, Cn, Hn, Wn = x_n.shape
    Ctot = Cl + Cm + Cs + Cn
    HW = H * W
    Ll, Lm, Ln = Hl * Wl, Hm * Wm, Hn * Wn
    act_dtype = jnp.dtype(x_s.dtype)

    # MXU operand dtype for the resampling matmuls.
    if mxu_dtype is not None:
        r_dtype = jnp.dtype(mxu_dtype)
    elif jnp.issubdtype(act_dtype, jnp.floating) and act_dtype.itemsize == 2:
        r_dtype = jnp.dtype(jnp.bfloat16)        # bf16/f16 activations -> bf16 MXU
    else:
        r_dtype = act_dtype                      # f32 activations stay f32 (accuracy)

    rl_np = _resample_matrix_T(Hl, Wl, H, W, "pool")
    rm_np = _resample_matrix_T(Hm, Wm, H, W, "pool")
    rn_np = _resample_matrix_T(Hn, Wn, H, W, "bilinear")
    consts_bytes = (rl_np.size + rm_np.size + rn_np.size) * r_dtype.itemsize
    if consts_bytes > (48 << 20):
        # TODO(synk): implement the separable (A_h @ X @ A_w^T) two-matmul path
        # for spatial sizes whose dense Kron constants exceed v7x's 64 MiB VMEM.
        raise NotImplementedError(
            f"L_FAM dense-Kron path: constants ({consts_bytes >> 20} MiB) exceed "
            "the VMEM budget; separable fallback not implemented")

    rl = jnp.asarray(rl_np, r_dtype)             # (Hl*Wl, HW)
    rm = jnp.asarray(rm_np, r_dtype)             # (Hm*Wm, HW)
    rn = jnp.asarray(rn_np, r_dtype)             # (Hn*Wn, HW)

    # Fold nb samples into the matmul M dimension.
    nb = _pick_nb(N, (Cl, Cm, Cs, Cn), (Ll, Lm, HW, Ln), act_dtype.itemsize)
    num_i = N // nb
    # Column-split the output H*W axis when the batch collapses to one step so
    # the grid keeps >= 2 steps (keeps both v7x TensorCores busy).
    tile_hw = HW // 2 if (num_i == 1 and HW % 256 == 0) else HW
    num_j = HW // tile_hw

    # Lane-dense 2-D input slabs (last dim = Hi*Wi), free metadata reshapes.
    xl_f = x_l.reshape(N * Cl, Ll)
    xm_f = x_m.reshape(N * Cm, Lm)
    xs_f = x_s.reshape(N * Cs, HW)
    xn_f = x_n.reshape(N * Cn, Ln)

    def in_spec(c, l):
        # Full reduction axis per block; block index depends only on the batch step.
        return pl.BlockSpec((nb * c, l), lambda i, j: (i, 0))

    def xs_spec():
        return pl.BlockSpec((nb * Cs, tile_hw), lambda i, j: (i, j))

    def mat_spec(rows, single_buffer):
        if single_buffer and num_j == 1:
            # Constant block index -> fetched once; no dead second buffer.
            return pl.BlockSpec((rows, tile_hw), lambda i, j: (0, j),
                                pipeline_mode=pl.Buffered(1))
        return pl.BlockSpec((rows, tile_hw), lambda i, j: (0, j))

    # Explicit scoped-VMEM budget: R blocks + double-buffered inputs/output + headroom.
    itm = act_dtype.itemsize
    vmem_limit = (
        2 * (Ll + Lm + Ln) * tile_hw * r_dtype.itemsize
        + 2 * nb * (Cl * Ll + Cm * Lm + Cn * Ln + Cs * tile_hw) * itm
        + 2 * nb * Ctot * tile_hw * itm
        + (16 << 20))
    vmem_limit = int(min(vmem_limit, 100 << 20))

    def build(single_buffer):
        return pl.pallas_call(
            _make_lfam_kernel(nb, Cl, Cm, Cs, Cn, tile_hw),
            out_shape=jax.ShapeDtypeStruct((N, Ctot, HW), act_dtype),
            grid=(num_i, num_j),
            in_specs=[
                in_spec(Cl, Ll),
                in_spec(Cm, Lm),
                xs_spec(),
                in_spec(Cn, Ln),
                mat_spec(Ll, single_buffer),
                mat_spec(Lm, single_buffer),
                mat_spec(Ln, single_buffer),
            ],
            out_specs=pl.BlockSpec((nb, Ctot, tile_hw), lambda i, j: (i, 0, j)),
            compiler_params=pltpu.CompilerParams(
                dimension_semantics=("parallel", "parallel"),
                vmem_limit_bytes=vmem_limit),
        )

    args = (xl_f, xm_f, xs_f, xn_f, rl, rm, rn)
    try:
        out_flat = build(single_buffer=True)(*args)
    except Exception:
        # Graceful fallback for JAX versions / shapes where single-buffering the
        # resident constants (pipeline_mode=pl.Buffered(1)) is not supported.
        out_flat = build(single_buffer=False)(*args)

    # Free metadata reshape back to NCHW.
    return out_flat.reshape(N, Ctot, H, W)


# ---------------------------------------------------------------------------
# NumPy references (direct, non-separable) for correctness checking
# ---------------------------------------------------------------------------
def np_adaptive_avg_pool(x, H, W):
    N, C, Hi, Wi = x.shape
    out = np.zeros((N, C, H, W), np.float32)
    for i in range(H):
        hs, he = (i * Hi) // H, -((-(i + 1) * Hi) // H)
        for j in range(W):
            ws, we = (j * Wi) // W, -((-(j + 1) * Wi) // W)
            out[:, :, i, j] = x[:, :, hs:he, ws:we].mean(axis=(2, 3))
    return out


def np_bilinear(x, H, W):
    N, C, Hi, Wi = x.shape
    out = np.zeros((N, C, H, W), np.float32)
    for i in range(H):
        sy = max((i + 0.5) * Hi / H - 0.5, 0.0)
        y0 = min(int(np.floor(sy)), Hi - 1)
        y1 = min(y0 + 1, Hi - 1)
        wy1 = sy - y0
        wy0 = 1.0 - wy1
        for j in range(W):
            sx = max((j + 0.5) * Wi / W - 0.5, 0.0)
            x0 = min(int(np.floor(sx)), Wi - 1)
            x1 = min(x0 + 1, Wi - 1)
            wx1 = sx - x0
            wx0 = 1.0 - wx1
            out[:, :, i, j] = (wy0 * wx0 * x[:, :, y0, x0] + wy0 * wx1 * x[:, :, y0, x1]
                               + wy1 * wx0 * x[:, :, y1, x0] + wy1 * wx1 * x[:, :, y1, x1])
    return out


if __name__ == "__main__":
    key = jax.random.PRNGKey(0)
    k1, k2, k3, k4 = jax.random.split(key, 4)
    N = 2
    # feature-pyramid-style inputs; x_s defines the target spatial size (16,16)
    x_l = jax.random.normal(k1, (N, 4, 64, 64), jnp.float32)
    x_m = jax.random.normal(k2, (N, 4, 32, 32), jnp.float32)
    x_s = jax.random.normal(k3, (N, 4, 16, 16), jnp.float32)
    x_n = jax.random.normal(k4, (N, 4, 8, 8), jnp.float32)

    out = l_fam(x_l, x_m, x_s, x_n)
    out = jax.block_until_ready(out)
    assert out.shape == (N, 16, 16, 16)

    ref = np.concatenate([
        np_adaptive_avg_pool(np.asarray(x_l), 16, 16),
        np_adaptive_avg_pool(np.asarray(x_m), 16, 16),
        np.asarray(x_s),
        np_bilinear(np.asarray(x_n), 16, 16),
    ], axis=1)
    np.testing.assert_allclose(np.asarray(out), ref, atol=1e-4, rtol=1e-4)

    print("KERNEL_OK")
</pallas_src>

<mosaic_0001>
module attributes {stable_mosaic.version = 11 : i64} {
  func.func @kernel(%arg0: i32, %arg1: i32, %arg2: memref<8x4096xf32, #tpu.memory_space<vmem>>, %arg3: memref<8x1024xf32, #tpu.memory_space<vmem>>, %arg4: memref<8x128xf32, #tpu.memory_space<vmem>>, %arg5: memref<8x64xf32, #tpu.memory_space<vmem>>, %arg6: memref<4096x128xf32, #tpu.memory_space<vmem>>, %arg7: memref<1024x128xf32, #tpu.memory_space<vmem>>, %arg8: memref<64x128xf32, #tpu.memory_space<vmem>>, %arg9: memref<2x16x128xf32, #tpu.memory_space<vmem>>) attributes {dimension_semantics = [#tpu.dimension_semantics<parallel>, #tpu.dimension_semantics<parallel>], iteration_bounds = array<i64: 1, 2>, scalar_prefetch = 0 : i64, scratch_operands = 0 : i64, tpu.core_type = #tpu.core_type<tc>, window_params = [{transform_indices = @transform_0, window_bounds = array<i64: 8, 4096>}, {transform_indices = @transform_1, window_bounds = array<i64: 8, 1024>}, {transform_indices = @transform_2, window_bounds = array<i64: 8, 128>}, {transform_indices = @transform_3, window_bounds = array<i64: 8, 64>}, {transform_indices = @transform_4, window_bounds = array<i64: 4096, 128>}, {transform_indices = @transform_5, window_bounds = array<i64: 1024, 128>}, {transform_indices = @transform_6, window_bounds = array<i64: 64, 128>}, {transform_indices = @transform_7, window_bounds = array<i64: 2, 16, 128>}]} {
    %c0 = arith.constant 0 : index
    %c0_0 = arith.constant 0 : index
    %0 = vector.load %arg2[%c0, %c0_0] : memref<8x4096xf32, #tpu.memory_space<vmem>>, vector<8x4096xf32>
    %c0_1 = arith.constant 0 : index
    %c0_2 = arith.constant 0 : index
    %1 = vector.load %arg6[%c0_1, %c0_2] : memref<4096x128xf32, #tpu.memory_space<vmem>>, vector<4096x128xf32>
    %cst = arith.constant dense<0.000000e+00> : vector<8x128xf32>
    %2 = tpu.matmul %0, %1, %cst {dimension_numbers = #tpu.dot_dimension_numbers<[1], [0], [0], [1], [0, 0, 1, 1], [], []>} : vector<8x4096xf32>, vector<4096x128xf32>, vector<8x128xf32> -> vector<8x128xf32>
    %3 = vector.shape_cast %2 : vector<8x128xf32> to vector<2x4x128xf32>
    %c0_3 = arith.constant 0 : index
    %c0_4 = arith.constant 0 : index
    %c0_5 = arith.constant 0 : index
    %4 = vector.load %arg9[%c0_3, %c0_4, %c0_5] : memref<2x16x128xf32, #tpu.memory_space<vmem>>, vector<2x4x128xf32>
    tpu.vector_store %arg9[%c0_3, %c0_4, %c0_5], %3 {strides = array<i32>} : memref<2x16x128xf32, #tpu.memory_space<vmem>>, vector<2x4x128xf32>,
    %c0_6 = arith.constant 0 : index
    %c0_7 = arith.constant 0 : index
    %5 = vector.load %arg3[%c0_6, %c0_7] : memref<8x1024xf32, #tpu.memory_space<vmem>>, vector<8x1024xf32>
    %c0_8 = arith.constant 0 : index
    %c0_9 = arith.constant 0 : index
    %6 = vector.load %arg7[%c0_8, %c0_9] : memref<1024x128xf32, #tpu.memory_space<vmem>>, vector<1024x128xf32>
    %cst_10 = arith.constant dense<0.000000e+00> : vector<8x128xf32>
    %7 = tpu.matmul %5, %6, %cst_10 {dimension_numbers = #tpu.dot_dimension_numbers<[1], [0], [0], [1], [0, 0, 1, 1], [], []>} : vector<8x1024xf32>, vector<1024x128xf32>, vector<8x128xf32> -> vector<8x128xf32>
    %8 = vector.shape_cast %7 : vector<8x128xf32> to vector<2x4x128xf32>
    %c0_11 = arith.constant 0 : index
    %c4 = arith.constant 4 : index
    %c0_12 = arith.constant 0 : index
    %9 = vector.load %arg9[%c0_11, %c4, %c0_12] : memref<2x16x128xf32, #tpu.memory_space<vmem>>, vector<2x4x128xf32>
    tpu.vector_store %arg9[%c0_11, %c4, %c0_12], %8 {strides = array<i32>} : memref<2x16x128xf32, #tpu.memory_space<vmem>>, vector<2x4x128xf32>,
    %c0_13 = arith.constant 0 : index
    %c0_14 = arith.constant 0 : index
    %10 = vector.load %arg4[%c0_13, %c0_14] : memref<8x128xf32, #tpu.memory_space<vmem>>, vector<8x128xf32>
    %11 = vector.shape_cast %10 : vector<8x128xf32> to vector<2x4x128xf32>
    %c0_15 = arith.constant 0 : index
    %c8 = arith.constant 8 : index
    %c0_16 = arith.constant 0 : index
    %12 = vector.load %arg9[%c0_15, %c8, %c0_16] : memref<2x16x128xf32, #tpu.memory_space<vmem>>, vector<2x4x128xf32>
    tpu.vector_store %arg9[%c0_15, %c8, %c0_16], %11 {strides = array<i32>} : memref<2x16x128xf32, #tpu.memory_space<vmem>>, vector<2x4x128xf32>,
    %c0_17 = arith.constant 0 : index
    %c0_18 = arith.constant 0 : index
    %13 = vector.load %arg5[%c0_17, %c0_18] : memref<8x64xf32, #tpu.memory_space<vmem>>, vector<8x64xf32>
    %c0_19 = arith.constant 0 : index
    %c0_20 = arith.constant 0 : index
    %14 = vector.load %arg8[%c0_19, %c0_20] : memref<64x128xf32, #tpu.memory_space<vmem>>, vector<64x128xf32>
    %cst_21 = arith.constant dense<0.000000e+00> : vector<8x128xf32>
    %15 = tpu.matmul %13, %14, %cst_21 {dimension_numbers = #tpu.dot_dimension_numbers<[1], [0], [0], [1], [0, 0, 1, 1], [], []>} : vector<8x64xf32>, vector<64x128xf32>, vector<8x128xf32> -> vector<8x128xf32>
    %16 = vector.shape_cast %15 : vector<8x128xf32> to vector<2x4x128xf32>
    %c0_22 = arith.constant 0 : index
    %c12 = arith.constant 12 : index
    %c0_23 = arith.constant 0 : index
    %17 = vector.load %arg9[%c0_22, %c12, %c0_23] : memref<2x16x128xf32, #tpu.memory_space<vmem>>, vector<2x4x128xf32>
    tpu.vector_store %arg9[%c0_22, %c12, %c0_23], %16 {strides = array<i32>} : memref<2x16x128xf32, #tpu.memory_space<vmem>>, vector<2x4x128xf32>,
    return
  }
  func.func @transform_0(%arg0: i32, %arg1: i32) -> (i32, i32) {
    %c0_i32 = arith.constant 0 : i32
    %c0_i32_0 = arith.constant 0 : i32
    return %arg0, %c0_i32 : i32, i32
  }
  func.func @transform_1(%arg0: i32, %arg1: i32) -> (i32, i32) {
    %c0_i32 = arith.constant 0 : i32
    %c0_i32_0 = arith.constant 0 : i32
    return %arg0, %c0_i32 : i32, i32
  }
  func.func @transform_2(%arg0: i32, %arg1: i32) -> (i32, i32) {
    %c0_i32 = arith.constant 0 : i32
    return %arg0, %arg1 : i32, i32
  }
  func.func @transform_3(%arg0: i32, %arg1: i32) -> (i32, i32) {
    %c0_i32 = arith.constant 0 : i32
    %c0_i32_0 = arith.constant 0 : i32
    return %arg0, %c0_i32 : i32, i32
  }
  func.func @transform_4(%arg0: i32, %arg1: i32) -> (i32, i32) {
    %c0_i32 = arith.constant 0 : i32
    %c0_i32_0 = arith.constant 0 : i32
    return %c0_i32, %arg1 : i32, i32
  }
  func.func @transform_5(%arg0: i32, %arg1: i32) -> (i32, i32) {
    %c0_i32 = arith.constant 0 : i32
    %c0_i32_0 = arith.constant 0 : i32
    return %c0_i32, %arg1 : i32, i32
  }
  func.func @transform_6(%arg0: i32, %arg1: i32) -> (i32, i32) {
    %c0_i32 = arith.constant 0 : i32
    %c0_i32_0 = arith.constant 0 : i32
    return %c0_i32, %arg1 : i32, i32
  }
  func.func @transform_7(%arg0: i32, %arg1: i32) -> (i32, i32, i32) {
    %c0_i32 = arith.constant 0 : i32
    %c0_i32_0 = arith.constant 0 : i32
    return %arg0, %c0_i32, %arg1 : i32, i32, i32
  }
}

module attributes {stable_mosaic.version = 11 : i64} {
  func.func @kernel(%arg0: i32, %arg1: i32, %arg2: memref<8x4096xf32, #tpu.memory_space<vmem>>, %arg3: memref<8x1024xf32, #tpu.memory_space<vmem>>, %arg4: memref<8x128xf32, #tpu.memory_space<vmem>>, %arg5: memref<8x64xf32, #tpu.memory_space<vmem>>, %arg6: memref<4096x128xf32, #tpu.memory_space<vmem>>, %arg7: memref<1024x128xf32, #tpu.memory_space<vmem>>, %arg8: memref<64x128xf32, #tpu.memory_space<vmem>>, %arg9: memref<2x16x128xf32, #tpu.memory_space<vmem>>) attributes {dimension_semantics = [#tpu.dimension_semantics<parallel>, #tpu.dimension_semantics<parallel>], iteration_bounds = array<i64: 1, 2>, scalar_prefetch = 0 : i64, scratch_operands = 0 : i64, tpu.core_type = #tpu.core_type<tc>, window_params = [{transform_indices = @transform_0, window_bounds = array<i64: 8, 4096>}, {transform_indices = @transform_1, window_bounds = array<i64: 8, 1024>}, {transform_indices = @transform_2, window_bounds = array<i64: 8, 128>}, {transform_indices = @transform_3, window_bounds = array<i64: 8, 64>}, {transform_indices = @transform_4, window_bounds = array<i64: 4096, 128>}, {transform_indices = @transform_5, window_bounds = array<i64: 1024, 128>}, {transform_indices = @transform_6, window_bounds = array<i64: 64, 128>}, {transform_indices = @transform_7, window_bounds = array<i64: 2, 16, 128>}]} {
    %c0 = arith.constant 0 : index
    %c0_0 = arith.constant 0 : index
    %0 = vector.load %arg2[%c0, %c0_0] : memref<8x4096xf32, #tpu.memory_space<vmem>>, vector<8x4096xf32>
    %c0_1 = arith.constant 0 : index
    %c0_2 = arith.constant 0 : index
    %1 = vector.load %arg6[%c0_1, %c0_2] : memref<4096x128xf32, #tpu.memory_space<vmem>>, vector<4096x128xf32>
    %cst = arith.constant dense<0.000000e+00> : vector<8x128xf32>
    %2 = tpu.matmul %0, %1, %cst {dimension_numbers = #tpu.dot_dimension_numbers<[1], [0], [0], [1], [0, 0, 1, 1], [], []>} : vector<8x4096xf32>, vector<4096x128xf32>, vector<8x128xf32> -> vector<8x128xf32>
    %3 = vector.shape_cast %2 : vector<8x128xf32> to vector<2x4x128xf32>
    %c0_3 = arith.constant 0 : index
    %c0_4 = arith.constant 0 : index
    %c0_5 = arith.constant 0 : index
    %4 = vector.load %arg9[%c0_3, %c0_4, %c0_5] : memref<2x16x128xf32, #tpu.memory_space<vmem>>, vector<2x4x128xf32>
    tpu.vector_store %arg9[%c0_3, %c0_4, %c0_5], %3 {strides = array<i32>} : memref<2x16x128xf32, #tpu.memory_space<vmem>>, vector<2x4x128xf32>,
    %c0_6 = arith.constant 0 : index
    %c0_7 = arith.constant 0 : index
    %5 = vector.load %arg3[%c0_6, %c0_7] : memref<8x1024xf32, #tpu.memory_space<vmem>>, vector<8x1024xf32>
    %c0_8 = arith.constant 0 : index
    %c0_9 = arith.constant 0 : index
    %6 = vector.load %arg7[%c0_8, %c0_9] : memref<1024x128xf32, #tpu.memory_space<vmem>>, vector<1024x128xf32>
    %cst_10 = arith.constant dense<0.000000e+00> : vector<8x128xf32>
    %7 = tpu.matmul %5, %6, %cst_10 {dimension_numbers = #tpu.dot_dimension_numbers<[1], [0], [0], [1], [0, 0, 1, 1], [], []>} : vector<8x1024xf32>, vector<1024x128xf32>, vector<8x128xf32> -> vector<8x128xf32>
    %8 = vector.shape_cast %7 : vector<8x128xf32> to vector<2x4x128xf32>
    %c0_11 = arith.constant 0 : index
    %c4 = arith.constant 4 : index
    %c0_12 = arith.constant 0 : index
    %9 = vector.load %arg9[%c0_11, %c4, %c0_12] : memref<2x16x128xf32, #tpu.memory_space<vmem>>, vector<2x4x128xf32>
    tpu.vector_store %arg9[%c0_11, %c4, %c0_12], %8 {strides = array<i32>} : memref<2x16x128xf32, #tpu.memory_space<vmem>>, vector<2x4x128xf32>,
    %c0_13 = arith.constant 0 : index
    %c0_14 = arith.constant 0 : index
    %10 = vector.load %arg4[%c0_13, %c0_14] : memref<8x128xf32, #tpu.memory_space<vmem>>, vector<8x128xf32>
    %11 = vector.shape_cast %10 : vector<8x128xf32> to vector<2x4x128xf32>
    %c0_15 = arith.constant 0 : index
    %c8 = arith.constant 8 : index
    %c0_16 = arith.constant 0 : index
    %12 = vector.load %arg9[%c0_15, %c8, %c0_16] : memref<2x16x128xf32, #tpu.memory_space<vmem>>, vector<2x4x128xf32>
    tpu.vector_store %arg9[%c0_15, %c8, %c0_16], %11 {strides = array<i32>} : memref<2x16x128xf32, #tpu.memory_space<vmem>>, vector<2x4x128xf32>,
    %c0_17 = arith.constant 0 : index
    %c0_18 = arith.constant 0 : index
    %13 = vector.load %arg5[%c0_17, %c0_18] : memref<8x64xf32, #tpu.memory_space<vmem>>, vector<8x64xf32>
    %c0_19 = arith.constant 0 : index
    %c0_20 = arith.constant 0 : index
    %14 = vector.load %arg8[%c0_19, %c0_20] : memref<64x128xf32, #tpu.memory_space<vmem>>, vector<64x128xf32>
    %cst_21 = arith.constant dense<0.000000e+00> : vector<8x128xf32>
    %15 = tpu.matmul %13, %14, %cst_21 {dimension_numbers = #tpu.dot_dimension_numbers<[1], [0], [0], [1], [0, 0, 1, 1], [], []>} : vector<8x64xf32>, vector<64x128xf32>, vector<8x128xf32> -> vector<8x128xf32>
    %16 = vector.shape_cast %15 : vector<8x128xf32> to vector<2x4x128xf32>
    %c0_22 = arith.constant 0 : index
    %c12 = arith.constant 12 : index
    %c0_23 = arith.constant 0 : index
    %17 = vector.load %arg9[%c0_22, %c12, %c0_23] : memref<2x16x128xf32, #tpu.memory_space<vmem>>, vector<2x4x128xf32>
    tpu.vector_store %arg9[%c0_22, %c12, %c0_23], %16 {strides = array<i32>} : memref<2x16x128xf32, #tpu.memory_space<vmem>>, vector<2x4x128xf32>,
    return
  }
  func.func @transform_0(%arg0: i32, %arg1: i32) -> (i32, i32) {
    %c0_i32 = arith.constant 0 : i32
    %c0_i32_0 = arith.constant 0 : i32
    return %arg0, %c0_i32 : i32, i32
  }
  func.func @transform_1(%arg0: i32, %arg1: i32) -> (i32, i32) {
    %c0_i32 = arith.constant 0 : i32
    %c0_i32_0 = arith.constant 0 : i32
    return %arg0, %c0_i32 : i32, i32
  }
  func.func @transform_2(%arg0: i32, %arg1: i32) -> (i32, i32) {
    %c0_i32 = arith.constant 0 : i32
    return %arg0, %arg1 : i32, i32
  }
  func.func @transform_3(%arg0: i32, %arg1: i32) -> (i32, i32) {
    %c0_i32 = arith.constant 0 : i32
    %c0_i32_0 = arith.constant 0 : i32
    return %arg0, %c0_i32 : i32, i32
  }
  func.func @transform_4(%arg0: i32, %arg1: i32) -> (i32, i32) {
    %c0_i32 = arith.constant 0 : i32
    %c0_i32_0 = arith.constant 0 : i32
    return %c0_i32, %arg1 : i32, i32
  }
  func.func @transform_5(%arg0: i32, %arg1: i32) -> (i32, i32) {
    %c0_i32 = arith.constant 0 : i32
    %c0_i32_0 = arith.constant 0 : i32
    return %c0_i32, %arg1 : i32, i32
  }
  func.func @transform_6(%arg0: i32, %arg1: i32) -> (i32, i32) {
    %c0_i32 = arith.constant 0 : i32
    %c0_i32_0 = arith.constant 0 : i32
    return %c0_i32, %arg1 : i32, i32
  }
  func.func @transform_7(%arg0: i32, %arg1: i32) -> (i32, i32, i32) {
    %c0_i32 = arith.constant 0 : i32
    %c0_i32_0 = arith.constant 0 : i32
    return %arg0, %c0_i32, %arg1 : i32, i32, i32
  }
}

</mosaic_0001>

<bundles_post_ra>
// kernel: tpu_custom_call.1
= control target key start
LH: loop header
LB: loop body
LE: loop exit
PB: predicated region body
PF: predicated region fallthrough
CT: control target
= control target key end

     0   :  { %s5843_s0 = inlined_call_operand.hbm [shape: f32[8,4096], index: 0, kind: input, shape index: {}]   ;;  %s5844_s1 = inlined_call_operand.hbm [shape: f32[8,1024], index: 1, kind: input, shape index: {}]   ;;  %s5845_s2 = inlined_call_operand.hbm [shape: f32[8,256], index: 2, kind: input, shape index: {}]   ;;  %s5846_s3 = inlined_call_operand.hbm [shape: f32[8,64], index: 3, kind: input, shape index: {}]   ;;  %s5847_s4 = inlined_call_operand.hbm [shape: f32[4096,256], index: 4, kind: input, shape index: {}]   ;;  %s5848_s5 = inlined_call_operand.hbm [shape: f32[1024,256], index: 5, kind: input, shape index: {}]   ;;  %s5849_s6 = inlined_call_operand.hbm [shape: f32[64,256], index: 6, kind: input, shape index: {}]   ;;  %s5850_s7 = inlined_call_operand.hbm [shape: f32[2,16,256], index: 7, kind: output, shape index: {}]  }
   0x1   :  { %5868 = sst [smem:[#allocation30_spill]] %s5843_s0 }
   0x2   :  { %5869 = sst [smem:[#allocation31_spill]] %s5844_s1 }
   0x3   :  { %5870 = sst [smem:[#allocation32_spill]] %s5847_s4 }
   0x4   :  { %5871 = sst [smem:[#allocation33_spill]] %s5850_s7 }
   0x5   :  { %12 = vsyncpa [#allocation3], 0 }
   0x6   :  { %13 = vsyncpa [#allocation6], 0 }
   0x7   :  { %14 = vsyncpa [#allocation10], 0 }
   0x8   :  { %16 = vsyncpa [#allocation10 + $0x1], 0 }
   0x9   :  { %17 = vsyncpa [#allocation13], 0 }
   0xa   :  { %19 = vsyncpa [#allocation13 + $0x1], 0 }
   0xb   :  { %20 = vsyncpa [#allocation4], 0 }
   0xc   :  { %22 = vsyncpa [#allocation4 + $0x1], 0  ;;  %s4762_s24 = smov 0   ;;  %s4764_s25 = smov 0  }
   0xd   :  { %s4766_s26 = smov 0   ;;  %s4768_s27 = smov 0  }
   0xe   :  { %s4770_s28 = smov 0   ;;  %s4772_s29 = smov 0  }
   0xf LB: > { %5872 = sst [smem:[#allocation22_spill]] %s4683_s24  ;;  %s4793_s30 = sadd.s32 4294967295, %s4703_s29   ;;  %s4703_s29 = sphi %s4772_s29, %s28_s29   ;;  %s4699_s28 = sphi %s4770_s28, %s5919_s28   ;;  %s4695_s27 = sphi %s4768_s27, %s5918_s27   ;;  %s4691_s26 = sphi %s4766_s26, %s5917_s26   ;;  %s4687_s25 = sphi %s4764_s25, %s5921_s25   ;;  %s4683_s24 = sphi %s4762_s24, %s5920_s24  }
  0x10   : > { %5873 = sst [smem:[#allocation23_spill]] %s4691_s26  ;;  %s2871_s8 = sadd.s32 4294967294, %s4703_s29  }
  0x11   : > { %5874 = sst [smem:[#allocation24_spill]] %s4695_s27  ;;  %p108_p0 = scmp.ne.s32.totalorder %s4691_s26, %s4687_s25 }
  0x12   : > { %5875 = sst [smem:[#allocation25_spill]] %s4699_s28  ;;  %p109_p1 = scmp.eq.s32.totalorder %s4703_s29, 0 }
  0x13   : > { %p114_p2 = scmp.ne.s32.totalorder %s4687_s25, %s4683_s24  ;;  %p5851_p3 = scmp.eq.s32.totalorder %s4793_s30, 0 }
  0x14   : > { %p244_p4 = scmp.eq.s32.totalorder %s4793_s30, 1  ;;  %p4804_p5 = por %p109_p1, %p108_p0 }
  0x15   : > { %p250_p6 = scmp.eq.s32.totalorder %s2871_s8, 1  ;;  %p4810_p7 = por %p5851_p3, %p114_p2 }
  0x16   : > { %p4814_p8 = por %p244_p4, %p108_p0  ;;  %p2872_p10 = scmp.ge.s32.totalorder %s4703_s29, 1 }
  0x17   : > { %s5877_s11 = scalar_select %p4810_p7, 1, 0 }
  0x18   : > { %s5878_s12 = scalar_select %p4814_p8, 1, 0 }
  0x19   : > { %p4818_p9 = por %p250_p6, %p114_p2  ;;  %p257_p11 = scmp.lt.s32.totalorder %s4703_s29, 3 }
  0x1a   : > { %5879 = sst [smem:[#allocation26_spill]] %s5878_s12  ;;  %s4705_s15 = smov [#allocation2]  }
  0x1b   : > { %s5880_s13 = scalar_select %p4818_p9, 1, 0 }
  0x1c   : > { %p4825_p13 = pnand %p2872_p10, %p257_p11  ;;  %s273_s16 = sshll.u32 %s4705_s15, 4  ;;  %s274_s16 = int_to_ptr.vmem [resolvable:$true] %s273_s16 }
  0x1d   : > { %5881 = sst [smem:[#allocation27_spill]] %s5880_s13  ;;  %p4331_p1 = scmp.lt.s32.totalorder %s4703_s29, 2 }
  0x1e   : > { %s5882_s14 = scalar_select %p4825_p13, 1, 0 }
  0x1f   : > { %p4301_p0 = pneg %p4825_p13  ;;  %p4834_p4 = pnand %p4331_p1, %p4804_p5 }
  0x20   : > { %s4706_s18 = smov [#allocation5]   ;;  %s5885_s0 = sld [smem:[#allocation30_spill]] }
  0x21   : > { %s5883_s17 = scalar_select %p4834_p4, 1, 0 }
  0x22   : > { %s287_s19 = sshll.u32 %s4706_s18, 4  ;;  %p4840_p2 = pnand %p4301_p0, %p5851_p3  ;;  %s4844_s19 = int_to_ptr.vmem [resolvable:$true] %s287_s19 }
  0x24   : > { %s5884_s20 = scalar_select %p4840_p2, 1, 0 }
  0x25   : > { %p4854_p6 = pneg %p4840_p2 }
  0x26   : > { %s4397_s23 = scalar_lea.hbm %s5885_s0, 4096 }
  0x27   : > { %p4398_p5 = scmp.ne.s32.totalorder %s5885_s0, %s4397_s23  ;;  %p4404_p1 = scmp.lt.u32.totalorder %s4397_s23, %s5885_s0 }
  0x28   : > { %s5886_s15 = scalar_select %p4854_p6, 1, 0 }
  0x29   : > { %p4400_p10 = pnand %p4854_p6, %p4398_p5 }
  0x2b   : > { %p4401_p11 = pneg %p4400_p10 }
  0x2d   : > { %p4406_p0 = pnand %p4404_p1, %p4401_p11 }
  0x2f   : > { %4409 = shalt.err (!%p4406_p0)
}
  0x30   : > { %s4410_s21 = scalar_lea.vmem %s274_s16, 4096  ;;  %p4418_p8 = scmp.lt.s32.totalorder %s274_s16, %s274_s16 }
  0x31   : > { %p4411_p12 = scmp.ne.s32.totalorder %s274_s16, %s4410_s21  ;;  %p4419_p7 = scmp.lt.s32.totalorder %s4410_s21, %s4410_s21 }
  0x33   : > { %p4413_p3 = pnand %p4411_p12, %p4854_p6  ;;  %p4420_p13 = por %p4419_p7, %p4418_p8 }
  0x35   : > { %p4414_p9 = pneg %p4413_p3 }
  0x37   : > { %p4421_p4 = pnand %p4420_p13, %p4414_p9 }
  0x39   : > { %4424 = shalt.err (!%p4421_p4)
}
  0x3a   : > { %4304 = dma.hbm_to_vmem [thread:$0]  (!%p4840_p2), %s5885_s0, 4096, %s274_s16, [#allocation3]  }
  0x3b   : > { %s5887_s1 = sld [smem:[#allocation31_spill]] }
  0x41   : > { %s4425_s10 = scalar_lea.hbm %s5887_s1, 1024 }
  0x42   : > { %p4426_p3 = scmp.ne.s32.totalorder %s5887_s1, %s4425_s10  ;;  %p4432_p8 = scmp.lt.u32.totalorder %s4425_s10, %s5887_s1 }
  0x44   : > { %p4428_p12 = pnand %p4426_p3, %p4854_p6 }
  0x46   : > { %p4429_p7 = pneg %p4428_p12 }
  0x48   : > { %p4434_p9 = pnand %p4432_p8, %p4429_p7 }
  0x4a   : > { %4437 = shalt.err (!%p4434_p9)
}
  0x4b   : > { %s4438_s16 = scalar_lea.vmem %s4844_s19, 1024  ;;  %p4446_p10 = scmp.lt.s32.totalorder %s4844_s19, %s4844_s19 }
  0x4c   : > { %p4439_p13 = scmp.ne.s32.totalorder %s4844_s19, %s4438_s16  ;;  %p4447_p11 = scmp.lt.s32.totalorder %s4438_s16, %s4438_s16 }
  0x4e   : > { %p4441_p4 = pnand %p4439_p13, %p4854_p6  ;;  %p4448_p1 = por %p4447_p11, %p4446_p10 }
  0x50   : > { %p4442_p5 = pneg %p4441_p4 }
  0x52   : > { %p4449_p0 = pnand %p4448_p1, %p4442_p5 }
  0x54   : > { %4452 = shalt.err (!%p4449_p0)
}
  0x55   : > { %4307 = dma.hbm_to_vmem [thread:$0]  (!%p4840_p2), %s5887_s1, 1024, %s4844_s19, [#allocation6]  }
  0x56   : > { %s37_s22 = sadd.s32 1, %s4699_s28  ;;  %s4896_s9 = sand.u32 1, %s4691_s26  }
  0x57   : > { %p38_p3 = scmp.ge.s32.totalorder %s37_s22, 2  ;;  %s4899_s23 = sshll.u32 %s4699_s28, 7 }
  0x58   : > { %s2879_s10 = sshll.u32 %s4896_s9, 12  ;;  %s5889_s4 = sld [smem:[#allocation32_spill]] }
  0x59   : > { %s5923_s22 = smov (%p38_p3, %s37_s22), 0  ;;  %s335_s24 = scalar_lea.vmem [#allocation9], %s2879_s10 }
  0x5a   : > { %5888 = sst [smem:[#allocation28_spill]] %s5923_s22  ;;  %s97_s19 = ssub.s32 %s4699_s28, %s5923_s22 }
  0x5b   : > { %p99_p12 = scmp.eq.s32.totalorder %s97_s19, 0  ;;  %s341_s13 = sshll.u32 %s335_s24, 4  ;;  %s4912_s13 = int_to_ptr.vmem [resolvable:$true] %s341_s13 }
  0x5c   : > { %s5890_s8 = sadd.s32 1, %s4691_s26  ;;  %s5892_s1 = sand.u32 1, %s4703_s29  }
  0x5d   : > { %s4917_s0 = scalar_select %p99_p12, %s4691_s26, %s5890_s8  }
  0x5e   : > { %s4908_s16 = scalar_lea.hbm %s5889_s4, %s4899_s23  ;;  %s4921_s7 = scalar_lea.sflag [#allocation10], %s5892_s1 }
  0x5f   : > { %5891 = sst [smem:[#allocation29_spill]] %s4917_s0  ;;  %s4453_s12 = scalar_lea.hbm %s4908_s16, 65536 }
  0x60   : > { %p4454_p7 = scmp.ne.s32.totalorder %s4908_s16, %s4453_s12  ;;  %p5893_p8 = scmp.ne.s32.totalorder %s5883_s17, 0 }
  0x61   : > { %s4458_s19 = scalar_lea.hbm %s5889_s4, 131072  ;;  %p4459_p5 = scmp.lt.u32.totalorder %s4908_s16, %s5889_s4 }
  0x62   : > { %p4927_p9 = pneg %p5893_p8  ;;  %p4460_p10 = scmp.lt.u32.totalorder %s4458_s19, %s4453_s12 }
  0x63   : > { %p4462_p1 = scmp.lt.u32.totalorder %s4453_s12, %s4908_s16 }
  0x64   : > { %p4456_p13 = pnand %p4927_p9, %p4454_p7  ;;  %p4461_p11 = por %p4460_p10, %p4459_p5 }
  0x66   : > { %p4457_p4 = pneg %p4456_p13  ;;  %p4463_p0 = por %p4462_p1, %p4461_p11 }
  0x68   : > { %p4464_p3 = pnand %p4463_p0, %p4457_p4 }
  0x6a   : > { %4467 = shalt.err (!%p4464_p3)
}
  0x6b   : > { %s4468_s1 = scalar_lea.vmem %s4912_s13, 65536  ;;  %s4707_s10 = smov [#allocation9]  }
  0x6c   : > { %p4469_p12 = scmp.ne.s32.totalorder %s4912_s13, %s4468_s1  ;;  %s4473_s21 = sshll.u32 %s4707_s10, 4  ;;  %s4474_s21 = int_to_ptr.vmem [resolvable:$false] %s4473_s21 }
  0x6d   : > { %s4475_s8 = scalar_lea.vmem %s4474_s21, 131072  ;;  %p4476_p2 = scmp.lt.s32.totalorder %s4912_s13, %s4474_s21 }
  0x6e   : > { %p4471_p7 = pnand %p4469_p12, %p4927_p9  ;;  %p4477_p6 = scmp.lt.s32.totalorder %s4475_s8, %s4468_s1 }
  0x70   : > { %p4472_p13 = pneg %p4471_p7  ;;  %p4478_p5 = por %p4477_p6, %p4476_p2 }
  0x72   : > { %p4479_p10 = pnand %p4478_p5, %p4472_p13 }
  0x74   : > { %4482 = shalt.err (!%p4479_p10)
}
  0x75   : > { %s4708_s12 = smov 256   ;;  %s4709_s19 = smov 128  }
  0x76   : > { %s4710_s24 = smov 8   ;;  %s4711_s10 = smov [#allocation8]  }
  0x77   : > { %4317 = dma.hbm_to_vmem [thread:$0]  (!%p5893_p8), %s4908_s16, 65536, %s4912_s13, %s4921_s7, %s4708_s12, %s4709_s19, %s4710_s24  }
  0x78   : > { %s300_s21 = sshll.u32 %s4711_s10, 4  ;;  %s2877_s1 = sshll.u32 %s4896_s9, 3  ;;  %s301_s21 = int_to_ptr.vmem [resolvable:$true] %s300_s21 }
  0x79   : > { %s4483_s22 = scalar_lea.hbm %s5846_s3, 128  ;;  %p5895_p6 = scmp.ne.s32.totalorder %s5886_s15, 0 }
  0x7a   : > { %p4484_p2 = scmp.ne.s32.totalorder %s5846_s3, %s4483_s22  ;;  %p4490_p1 = scmp.lt.u32.totalorder %s4483_s22, %s5846_s3 }
  0x7c   : > { %p4486_p4 = pnand %p4484_p2, %p5895_p6 }
  0x7e   : > { %p4487_p11 = pneg %p4486_p4 }
  0x80   : > { %p4492_p0 = pnand %p4490_p1, %p4487_p11 }
  0x82   : > { %4495 = shalt.err (!%p4492_p0)
}
  0x83   : > { %s4496_s16 = scalar_lea.vmem %s301_s21, 128  ;;  %p4504_p13 = scmp.lt.s32.totalorder %s301_s21, %s301_s21 }
  0x84   : > { %p4497_p3 = scmp.ne.s32.totalorder %s301_s21, %s4496_s16  ;;  %p4505_p5 = scmp.lt.s32.totalorder %s4496_s16, %s4496_s16 }
  0x86   : > { %p4499_p12 = pnand %p4497_p3, %p5895_p6  ;;  %p4506_p10 = por %p4505_p5, %p4504_p13 }
  0x88   : > { %p4500_p7 = pneg %p4499_p12 }
  0x8a   : > { %p4507_p8 = pnand %p4506_p10, %p4500_p7 }
  0x8c   : > { %4510 = shalt.err (!%p4507_p8)
}
  0x8d   : > { %p5896_p2 = scmp.ne.s32.totalorder %s5884_s20, 0  ;;  %s4977_s28 = scalar_lea.hbm %s5845_s2, %s4899_s23 }
  0x8e   : > { %s315_s15 = scalar_lea.vmem [#allocation7], %s2877_s1  ;;  %s2881_s20 = sshll.u32 %s4896_s9, 10 }
  0x8f   : > { %4310 = dma.hbm_to_vmem [thread:$0]  (!%p5896_p2), %s5846_s3, 128, %s301_s21, [#allocation6]  }
  0x90   : > { %s324_s22 = sshll.u32 %s315_s15, 4  ;;  %s5897_s13 = sand.u32 1, %s4703_s29   ;;  %s4979_s22 = int_to_ptr.vmem [resolvable:$true] %s324_s22 }
  0x91   : > { %s312_s10 = scalar_lea.sflag [#allocation3], %s5897_s13  ;;  %s4511_s8 = scalar_lea.hbm %s4977_s28, 128 }
  0x92   : > { %p4512_p8 = scmp.ne.s32.totalorder %s4977_s28, %s4511_s8  ;;  %s4516_s0 = scalar_lea.hbm %s5845_s2, 256 }
  0x93   : > { %p4517_p11 = scmp.lt.u32.totalorder %s4977_s28, %s5845_s2  ;;  %p4518_p1 = scmp.lt.u32.totalorder %s4516_s0, %s4511_s8 }
  0x94   : > { %p4514_p6 = pnand %p4512_p8, %p4927_p9  ;;  %p4520_p3 = scmp.lt.u32.totalorder %s4511_s8, %s4977_s28 }
  0x95   : > { %p4519_p0 = por %p4518_p1, %p4517_p11 }
  0x96   : > { %p4515_p4 = pneg %p4514_p6 }
  0x97   : > { %p4521_p12 = por %p4520_p3, %p4519_p0 }
  0x99   : > { %p4522_p7 = pnand %p4521_p12, %p4515_p4 }
  0x9b   : > { %4525 = shalt.err (!%p4522_p7)
}
  0x9c   : > { %s4526_s1 = scalar_lea.vmem %s4979_s22, 128  ;;  %s4712_s27 = smov [#allocation7]  }
  0x9d   : > { %p4527_p13 = scmp.ne.s32.totalorder %s4979_s22, %s4526_s1  ;;  %s4531_s15 = sshll.u32 %s4712_s27, 4  ;;  %s4532_s15 = int_to_ptr.vmem [resolvable:$false] %s4531_s15 }
  0x9e   : > { %s4533_s13 = scalar_lea.vmem %s4532_s15, 256  ;;  %p4534_p2 = scmp.lt.s32.totalorder %s4979_s22, %s4532_s15 }
  0x9f   : > { %p4529_p5 = pnand %p4527_p13, %p4927_p9  ;;  %p4535_p8 = scmp.lt.s32.totalorder %s4533_s13, %s4526_s1 }
  0xa1   : > { %p4530_p10 = pneg %p4529_p5  ;;  %p4536_p6 = por %p4535_p8, %p4534_p2 }
  0xa3   : > { %p4537_p11 = pnand %p4536_p6, %p4530_p10 }
  0xa5   : > { %4540 = shalt.err (!%p4537_p11)
}
  0xa6   : > { %p5898_p4 = scmp.ne.s32.totalorder %s5883_s17, 0  ;;  %s5009_s16 = scalar_lea.hbm %s5848_s5, %s4899_s23 }
  0xa7   : > { %s355_s0 = scalar_lea.vmem [#allocation11], %s2881_s20  ;;  %s2883_s26 = sshll.u32 %s4896_s9, 6 }
  0xa8   : > { %4314 = dma.hbm_to_vmem [thread:$0]  (!%p5898_p4), %s4977_s28, 128, %s4979_s22, %s312_s10  }
  0xa9   : > { %s361_s4 = sshll.u32 %s355_s0, 4  ;;  %s4541_s1 = scalar_lea.hbm %s5009_s16, 16384  ;;  %s5013_s4 = int_to_ptr.vmem [resolvable:$true] %s361_s4 }
  0xaa   : > { %p4542_p1 = scmp.ne.s32.totalorder %s5009_s16, %s4541_s1  ;;  %s4546_s10 = scalar_lea.hbm %s5848_s5, 32768 }
  0xab   : > { %p4547_p12 = scmp.lt.u32.totalorder %s5009_s16, %s5848_s5  ;;  %p4548_p7 = scmp.lt.u32.totalorder %s4546_s10, %s4541_s1 }
  0xac   : > { %p4544_p0 = pnand %p4542_p1, %p4927_p9  ;;  %p4550_p5 = scmp.lt.u32.totalorder %s4541_s1, %s5009_s16 }
  0xad   : > { %p4549_p13 = por %p4548_p7, %p4547_p12 }
  0xae   : > { %p4545_p3 = pneg %p4544_p0 }
  0xaf   : > { %p4551_p10 = por %p4550_p5, %p4549_p13 }
  0xb1   : > { %p4552_p2 = pnand %p4551_p10, %p4545_p3 }
  0xb3   : > { %4555 = shalt.err (!%p4552_p2)
}
  0xb4   : > { %s4556_s20 = scalar_lea.vmem %s5013_s4, 16384  ;;  %s4713_s13 = smov [#allocation11]  }
  0xb5   : > { %p4557_p8 = scmp.ne.s32.totalorder %s5013_s4, %s4556_s20  ;;  %s4561_s8 = sshll.u32 %s4713_s13, 4  ;;  %s4562_s8 = int_to_ptr.vmem [resolvable:$false] %s4561_s8 }
  0xb6   : > { %s4563_s21 = scalar_lea.vmem %s4562_s8, 32768  ;;  %p4564_p1 = scmp.lt.s32.totalorder %s5013_s4, %s4562_s8 }
  0xb7   : > { %p4559_p6 = pnand %p4557_p8, %p4927_p9  ;;  %p4565_p0 = scmp.lt.s32.totalorder %s4563_s21, %s4556_s20 }
  0xb9   : > { %p4560_p11 = pneg %p4559_p6  ;;  %p4566_p12 = por %p4565_p0, %p4564_p1 }
  0xbb   : > { %p4567_p7 = pnand %p4566_p12, %p4560_p11 }
  0xbd   : > { %4570 = shalt.err (!%p4567_p7)
}
  0xbe   : > { %4320 = dma.hbm_to_vmem [thread:$0]  (!%p5898_p4), %s5009_s16, 16384, %s5013_s4, %s4921_s7, %s4708_s12, %s4709_s19, %s4710_s24  }
  0xbf   : > { %s5045_s28 = scalar_lea.hbm %s5849_s6, %s4899_s23  ;;  %s375_s22 = scalar_lea.vmem [#allocation12], %s2883_s26 }
  0xc0   : > { %s381_s10 = sshll.u32 %s375_s22, 4  ;;  %s372_s27 = scalar_lea.sflag [#allocation13], %s4896_s9  ;;  %s5049_s10 = int_to_ptr.vmem [resolvable:$true] %s381_s10 }
  0xc1   : > { %s4571_s15 = scalar_lea.hbm %s5045_s28, 1024  ;;  %s4576_s23 = scalar_lea.hbm %s5849_s6, 2048 }
  0xc2   : > { %p4572_p3 = scmp.ne.s32.totalorder %s5045_s28, %s4571_s15  ;;  %p4577_p10 = scmp.lt.u32.totalorder %s5045_s28, %s5849_s6 }
  0xc3   : > { %p4578_p2 = scmp.lt.u32.totalorder %s4576_s23, %s4571_s15  ;;  %p4580_p6 = scmp.lt.u32.totalorder %s4571_s15, %s5045_s28 }
  0xc4   : > { %p4574_p13 = pnand %p4572_p3, %p4927_p9 }
  0xc5   : > { %p4579_p8 = por %p4578_p2, %p4577_p10 }
  0xc6   : > { %p4575_p5 = pneg %p4574_p13 }
  0xc7   : > { %p4581_p11 = por %p4580_p6, %p4579_p8 }
  0xc9   : > { %p4582_p1 = pnand %p4581_p11, %p4575_p5 }
  0xcb   : > { %4585 = shalt.err (!%p4582_p1)
}
  0xcc   : > { %s4586_s26 = scalar_lea.vmem %s5049_s10, 1024  ;;  %s4714_s13 = smov [#allocation12]  }
  0xcd   : > { %p4587_p0 = scmp.ne.s32.totalorder %s5049_s10, %s4586_s26  ;;  %s4591_s8 = sshll.u32 %s4714_s13, 4  ;;  %s4592_s8 = int_to_ptr.vmem [resolvable:$false] %s4591_s8 }
  0xce   : > { %s4593_s21 = scalar_lea.vmem %s4592_s8, 2048  ;;  %p4594_p3 = scmp.lt.s32.totalorder %s5049_s10, %s4592_s8 }
  0xcf   : > { %p4589_p12 = pnand %p4587_p0, %p4927_p9  ;;  %p4595_p13 = scmp.lt.s32.totalorder %s4593_s21, %s4586_s26 }
  0xd1   : > { %p4590_p7 = pneg %p4589_p12  ;;  %p4596_p10 = por %p4595_p13, %p4594_p3 }
  0xd3   : > { %p4597_p2 = pnand %p4596_p10, %p4590_p7 }
  0xd5   : > { %4600 = shalt.err (!%p4597_p2)
}
  0xd6   : > { %4323 = dma.hbm_to_vmem [thread:$0]  (!%p5898_p4), %s5045_s28, 1024, %s5049_s10, %s372_s27, %s4708_s12, %s4709_s19, %s4710_s24  }
  0xd7   : > { %p5899_p9 = scmp.ne.s32.totalorder %s5882_s14, 0 }
  0xd8   : > { %p5900_p5 = scmp.eq.s32.totalorder (!%p5899_p9), %s4793_s30, 0 }
  0xd9   : > { %393 = sbr.rel (%p5899_p9) target bundleno = 813 (0x32d), region = 48 }
  0xe0   : > { %4654 = dma.done.wait (%p5900_p5), [#allocation3], 4096   ;;  %p5901_p8 = pmov %p5900_p5 }
  0xe1   : > { %p5902_p6 = pmov %p5900_p5 }
  0xe2   : > { %4656 = vsyncadd (%p5901_p8), [#allocation3], 4294963200 }
  0xe3   : > { %4658 = dma.done.wait (%p5902_p6), [#allocation6], 1024   ;;  %p5903_p11 = pmov %p5900_p5 }
  0xe4   : > { %s403_s17 = sand.u32 1, %s4793_s30   ;;  %s5090_s9 = sand.u32 1, %s4687_s25  }
  0xe5   : > { %4660 = vsyncadd (%p5903_p11), [#allocation6], 4294966272  ;;  %s2888_s14 = sshll.u32 %s5090_s9, 3  ;;  %s404_s18 = scalar_lea.sflag [#allocation3], %s403_s17 }
  0xe6   : > { %s5093_s12 = scalar_lea.vmem [#allocation7], %s2888_s14  ;;  %p5904_p4 = scmp.ne.s32.totalorder %s5877_s11, 0 }
  0xe8   : > { %4662 = dma.done.wait (%p5904_p4), %s404_s18, 128  }
  0xe9   : > { %4664 = vsyncadd (%p5904_p4), %s404_s18, 4294967168  ;;  %p5905_p1 = pmov %p5900_p5 }
  0xeb   : > { %4666 = dma.done.wait (%p5905_p1), [#allocation6], 128   ;;  %p5906_p0 = pmov %p5905_p1 }
  0xec   : > { %s2890_s19 = sshll.u32 %s5090_s9, 12  ;;  %s417_s24 = scalar_lea.sflag [#allocation10], %s403_s17 }
  0xed   : > { %4668 = vsyncadd (%p5906_p0), [#allocation6], 4294967168  ;;  %s5104_s0 = scalar_lea.vmem [#allocation9], %s2890_s19 }
  0xee   : > { %4670 = dma.done.wait (%p5904_p4), %s417_s24, 81920  }
  0xef   : > { %4672 = vsyncadd (%p5904_p4), %s417_s24, 4294885376  ;;  %s2891_s1 = sshll.u32 %s5090_s9, 10  ;;  %s2892_s28 = sshll.u32 %s5090_s9, 6 }
  0xf0   : > { %s5112_s22 = scalar_lea.vmem [#allocation11], %s2891_s1  ;;  %s435_s30 = scalar_lea.sflag [#allocation13], %s5090_s9 }
  0xf1   : > { %s5115_s10 = scalar_lea.vmem [#allocation12], %s2892_s28 }
  0xf2   : > { %4674 = dma.done.wait (%p5904_p4), %s435_s30, 1024  }
  0xf3   : > { %4676 = vsyncadd (%p5904_p4), %s435_s30, 4294966272  ;;  %v533_v0 = vld [vmem:[%s5104_s0 + $0x80] sm:$0xff]  ;;  %v534_v1 = vld [vmem:[%s5104_s0 + $0x88] sm:$0xff]  ;;  %vm4716_vm0 = vmmov 0   ;;  %vm2590_vm1 = vcmask 523264   ;;  %s2893_s11 = sshll.u32 %s5090_s9, 5 }
  0xf4   : > { %v565_v2 = vld [vmem:[%s5104_s0 + $0x180] sm:$0xff]  ;;  %v3627_v3 = vpack.c.bf16 %v534_v1, %v533_v0  ;;  %v566_v4 = vld [vmem:[%s5104_s0 + $0x188] sm:$0xff]  ;;  %v535_v11 = vld [vmem:[%s5104_s0 + $0x90] sm:$0xff]  ;;  %s5777_s27 = scalar_lea.vmem [#allocation14], %s2893_s11  ;;  %s5907_s15 = sld [smem:[#allocation24_spill]] }
  0xf5   : > { %v517_v5 = vld [vmem:[%s5104_s0] sm:$0xff]  ;;  %v518_v6 = vld [vmem:[%s5104_s0 + $0x8] sm:$0xff]  ;;  %v3659_v7 = vpack.c.bf16 %v566_v4, %v565_v2  ;;  %v536_v13 = vld [vmem:[%s5104_s0 + $0x98] sm:$0xff]  ;;  %s5908_s7 = sld [smem:[#allocation26_spill]]  ;;  %s2685_s16 = sshll.u32 %s5777_s27, 4  ;;  %s5787_s16 = int_to_ptr.vmem [resolvable:$true] %s2685_s16 }
  0xf6   : > { %v3629_v8 = vpack.c.bf16 %v518_v6, %v517_v5  ;;  %v549_v9 = vld [vmem:[%s5104_s0 + $0x100] sm:$0xff]  ;;  %v550_v10 = vld [vmem:[%s5104_s0 + $0x108] sm:$0xff]  ;;  %3628 = vmatprep.subr.bf16.mxu0 %v3627_v3  ;;  %v567_v14 = vld [vmem:[%s5104_s0 + $0x190] sm:$0xff]  ;;  %v3631_v16 = vpack.c.bf16 %v536_v13, %v535_v11  ;;  %s5909_s26 = sld [smem:[#allocation33_spill]]  ;;  %s2670_s21 = scalar_lea.sflag [#allocation4], %s5090_s9 }
  0xf7   : > { %v3661_v12 = vpack.c.bf16 %v550_v10, %v549_v9  ;;  %v568_v15 = vld [vmem:[%s5104_s0 + $0x198] sm:$0xff]  ;;  %3660 = vmatprep.subr.bf16.mxu1 %v3659_v7  ;;  %v519_v18 = vld [vmem:[%s5104_s0 + $0x10] sm:$0xff]  ;;  %v537_v23 = vld [vmem:[%s5104_s0 + $0xa0] sm:$0xff]  ;;  %s4601_s17 = scalar_lea.vmem %s5787_s16, 512  ;;  %s4718_s14 = smov [#allocation14]  }
  0xf8   : > { %3630 = vmatpush3.bf16.msra.mxu0 %v3629_v8  ;;  %v3663_v17 = vpack.c.bf16 %v568_v15, %v567_v14  ;;  %v520_v19 = vld [vmem:[%s5104_s0 + $0x18] sm:$0xff]  ;;  %v551_v20 = vld [vmem:[%s5104_s0 + $0x110] sm:$0xff]  ;;  %v538_v24 = vld [vmem:[%s5104_s0 + $0xa8] sm:$0xff]  ;;  %p4602_p12 = scmp.ne.s32.totalorder %s5787_s16, %s4601_s17  ;;  %s4605_s18 = sshll.u32 %s4718_s14, 4  ;;  %s4606_s18 = int_to_ptr.vmem [resolvable:$false] %s4605_s18 }
  0xf9   : > { %3662 = vmatpush3.bf16.msra.mxu1 %v3661_v12  ;;  %v3633_v21 = vpack.c.bf16 %v520_v19, %v519_v18  ;;  %v552_v22 = vld [vmem:[%s5104_s0 + $0x118] sm:$0xff]  ;;  %3632 = vmatprep.subr.bf16.mxu0 %v3631_v16  ;;  %v3635_v26 = vpack.c.bf16 %v538_v24, %v537_v23  ;;  %v569_v27 = vld [vmem:[%s5104_s0 + $0x1a0] sm:$0xff]  ;;  %v570_v28 = vld [vmem:[%s5104_s0 + $0x1a8] sm:$0xff]  ;;  %p4608_p10 = scmp.lt.s32.totalorder %s5787_s16, %s4606_s18 }
  0xfa   : > { %3664 = vmatprep.subr.bf16.mxu1 %v3663_v17  ;;  %v3665_v25 = vpack.c.bf16 %v552_v22, %v551_v20  ;;  %v521_v29 = vld [vmem:[%s5104_s0 + $0x20] sm:$0xff]  ;;  %v3667_v30 = vpack.c.bf16 %v570_v28, %v569_v27  ;;  %v522_v31 = vld [vmem:[%s5104_s0 + $0x28] sm:$0xff]  ;;  %v539_v35 = vld [vmem:[%s5104_s0 + $0xb0] sm:$0xff]  ;;  %s2896_s23 = sshll.u32 %s5907_s15, 7 }
  0xfb   : > { %v553_v32 = vld [vmem:[%s5104_s0 + $0x120] sm:$0xff]  ;;  %v554_v33 = vld [vmem:[%s5104_s0 + $0x128] sm:$0xff]  ;;  %v3637_v34 = vpack.c.bf16 %v522_v31, %v521_v29  ;;  %v540_v36 = vld [vmem:[%s5104_s0 + $0xb8] sm:$0xff]  ;;  %p5911_p7 = scmp.ne.s32.totalorder %s5908_s7, 0 }
  0xfc   : > { %3634 = vmatpush3.bf16.msra.mxu0 %v3633_v21  ;;  %v571_v37 = vld [vmem:[%s5104_s0 + $0x1b0] sm:$0xff]  ;;  %v3669_v38 = vpack.c.bf16 %v554_v33, %v553_v32  ;;  %v3639_v39 = vpack.c.bf16 %v540_v36, %v539_v35  ;;  %v572_v40 = vld [vmem:[%s5104_s0 + $0x1b8] sm:$0xff]  ;;  %v541_v46 = vld [vmem:[%s5104_s0 + $0xc0] sm:$0xff]  ;;  %s5910_s13 = smov %s5909_s26  ;;  %s5792_s8 = scalar_lea.hbm %s5909_s26, %s2896_s23 }
  0xfd   : > { %3666 = vmatpush3.bf16.msra.mxu1 %v3665_v25  ;;  %3636 = vmatprep.subr.bf16.mxu0 %v3635_v26  ;;  %v523_v41 = vld [vmem:[%s5104_s0 + $0x30] sm:$0xff]  ;;  %v524_v42 = vld [vmem:[%s5104_s0 + $0x38] sm:$0xff]  ;;  %v3671_v43 = vpack.c.bf16 %v572_v40, %v571_v37  ;;  %v542_v47 = vld [vmem:[%s5104_s0 + $0xc8] sm:$0xff]  ;;  %p4603_p3 = pnand %p4602_p12, %p5911_p7 }
  0xfe   : > { %3668 = vmatprep.subr.bf16.mxu1 %v3667_v30  ;;  %v555_v44 = vld [vmem:[%s5104_s0 + $0x130] sm:$0xff]  ;;  %v556_v45 = vld [vmem:[%s5104_s0 + $0x138] sm:$0xff]  ;;  %v573_v48 = vld [vmem:[%s5104_s0 + $0x1c0] sm:$0xff]  ;;  %v3641_v50 = vpack.c.bf16 %v524_v42, %v523_v41  ;;  %v3643_v52 = vpack.c.bf16 %v542_v47, %v541_v46 }
  0xff   : > { %v574_v49 = vld [vmem:[%s5104_s0 + $0x1c8] sm:$0xff]  ;;  %v3673_v51 = vpack.c.bf16 %v556_v45, %v555_v44  ;;  %v525_v53 = vld [vmem:[%s5104_s0 + $0x40] sm:$0xff]  ;;  %v543_v58 = vld [vmem:[%s5104_s0 + $0xd0] sm:$0xff]  ;;  %p4604_p13 = pneg %p4603_p3 }
 0x100   : > { %3638 = vmatpush3.bf16.msra.mxu0 %v3637_v34  ;;  %v526_v54 = vld [vmem:[%s5104_s0 + $0x48] sm:$0xff]  ;;  %v557_v55 = vld [vmem:[%s5104_s0 + $0x140] sm:$0xff]  ;;  %v3675_v56 = vpack.c.bf16 %v574_v49, %v573_v48  ;;  %v544_v59 = vld [vmem:[%s5104_s0 + $0xd8] sm:$0xff] }
 0x101   : > { %3670 = vmatpush3.bf16.msra.mxu1 %v3669_v38  ;;  %3640 = vmatprep.subr.bf16.mxu0 %v3639_v39  ;;  %v558_v57 = vld [vmem:[%s5104_s0 + $0x148] sm:$0xff]  ;;  %v575_v60 = vld [vmem:[%s5104_s0 + $0x1d0] sm:$0xff]  ;;  %v576_v61 = vld [vmem:[%s5104_s0 + $0x1d8] sm:$0xff]  ;;  %v3645_v62 = vpack.c.bf16 %v526_v54, %v525_v53  ;;  %v3647_v0 = vpack.c.bf16 %v544_v59, %v543_v58 }
 0x102   : > { %3672 = vmatprep.subr.bf16.mxu1 %v3671_v43  ;;  %v3677_v63 = vpack.c.bf16 %v558_v57, %v557_v55  ;;  %v527_v1 = vld [vmem:[%s5104_s0 + $0x50] sm:$0xff]  ;;  %v528_v2 = vld [vmem:[%s5104_s0 + $0x58] sm:$0xff]  ;;  %v3679_v4 = vpack.c.bf16 %v576_v61, %v575_v60  ;;  %v545_v6 = vld [vmem:[%s5104_s0 + $0xe0] sm:$0xff] }
 0x103   : > { %v559_v3 = vld [vmem:[%s5104_s0 + $0x150] sm:$0xff]  ;;  %v560_v5 = vld [vmem:[%s5104_s0 + $0x158] sm:$0xff]  ;;  %v546_v7 = vld [vmem:[%s5104_s0 + $0xe8] sm:$0xff]  ;;  %v3649_v10 = vpack.c.bf16 %v528_v2, %v527_v1 }
 0x104   : > { %3642 = vmatpush3.bf16.msra.mxu0 %v3641_v50  ;;  %v577_v8 = vld [vmem:[%s5104_s0 + $0x1e0] sm:$0xff]  ;;  %v578_v9 = vld [vmem:[%s5104_s0 + $0x1e8] sm:$0xff]  ;;  %v3681_v13 = vpack.c.bf16 %v560_v5, %v559_v3  ;;  %v3651_v14 = vpack.c.bf16 %v546_v7, %v545_v6  ;;  %v486_v16 = vld [vmem:[#allocation2 + $0x8] sm:$0xff] }
 0x105   : > { %3674 = vmatpush3.bf16.msra.mxu1 %v3673_v51  ;;  %3644 = vmatprep.subr.bf16.mxu0 %v3643_v52  ;;  %v529_v11 = vld [vmem:[%s5104_s0 + $0x60] sm:$0xff]  ;;  %v530_v12 = vld [vmem:[%s5104_s0 + $0x68] sm:$0xff]  ;;  %v3683_v18 = vpack.c.bf16 %v578_v9, %v577_v8  ;;  %v547_v20 = vld [vmem:[%s5104_s0 + $0xf0] sm:$0xff] }
 0x106   : > { %3676 = vmatprep.subr.bf16.mxu1 %v3675_v56  ;;  %v561_v15 = vld [vmem:[%s5104_s0 + $0x160] sm:$0xff]  ;;  %v562_v19 = vld [vmem:[%s5104_s0 + $0x168] sm:$0xff]  ;;  %v548_v21 = vld [vmem:[%s5104_s0 + $0xf8] sm:$0xff]  ;;  %1093 = vmatprep.mubr.f32.mxu0 %v486_v16  ;;  %v3653_v24 = vpack.c.bf16 %v530_v12, %v529_v11 }
 0x107   : > { %v488_v17 = vld [vmem:[#allocation2 + $0x18] sm:$0xff]  ;;  %v579_v22 = vld [vmem:[%s5104_s0 + $0x1f0] sm:$0xff]  ;;  %v580_v23 = vld [vmem:[%s5104_s0 + $0x1f8] sm:$0xff]  ;;  %v3685_v25 = vpack.c.bf16 %v562_v19, %v561_v15  ;;  %v3655_v26 = vpack.c.bf16 %v548_v21, %v547_v20 }
 0x108   : > { %3646 = vmatpush3.bf16.msra.mxu0 %v3645_v62  ;;  %1163 = vmatprep.mubr.f32.mxu1 %v488_v17  ;;  %v531_v27 = vld [vmem:[%s5104_s0 + $0x70] sm:$0xff]  ;;  %v532_v28 = vld [vmem:[%s5104_s0 + $0x78] sm:$0xff]  ;;  %v3687_v30 = vpack.c.bf16 %v580_v23, %v579_v22  ;;  %v597_v32 = vld [vmem:[%s5104_s0 + $0x280] sm:$0xff] }
 0x109   : > { %3678 = vmatpush3.bf16.msra.mxu1 %v3677_v63  ;;  %3648 = vmatprep.subr.bf16.mxu0 %v3647_v0  ;;  %v563_v29 = vld [vmem:[%s5104_s0 + $0x170] sm:$0xff]  ;;  %v564_v31 = vld [vmem:[%s5104_s0 + $0x178] sm:$0xff]  ;;  %v598_v33 = vld [vmem:[%s5104_s0 + $0x288] sm:$0xff]  ;;  %v3657_v36 = vpack.c.bf16 %v532_v28, %v531_v27 }
 0x10a   : > { %3680 = vmatprep.subr.bf16.mxu1 %v3679_v4  ;;  %v629_v34 = vld [vmem:[%s5104_s0 + $0x380] sm:$0xff]  ;;  %v630_v35 = vld [vmem:[%s5104_s0 + $0x388] sm:$0xff]  ;;  %v3689_v37 = vpack.c.bf16 %v564_v31, %v563_v29  ;;  %v3691_v38 = vpack.c.bf16 %v598_v33, %v597_v32  ;;  %v599_v44 = vld [vmem:[%s5104_s0 + $0x290] sm:$0xff] }
 0x10b   : > { %v581_v39 = vld [vmem:[%s5104_s0 + $0x200] sm:$0xff]  ;;  %v582_v40 = vld [vmem:[%s5104_s0 + $0x208] sm:$0xff]  ;;  %v3723_v42 = vpack.c.bf16 %v630_v35, %v629_v34  ;;  %v600_v45 = vld [vmem:[%s5104_s0 + $0x298] sm:$0xff] }
 0x10c   : > { %3650 = vmatpush3.bf16.msra.mxu0 %v3649_v10  ;;  %v613_v41 = vld [vmem:[%s5104_s0 + $0x300] sm:$0xff]  ;;  %v614_v43 = vld [vmem:[%s5104_s0 + $0x308] sm:$0xff]  ;;  %v631_v46 = vld [vmem:[%s5104_s0 + $0x390] sm:$0xff]  ;;  %v3693_v50 = vpack.c.bf16 %v582_v40, %v581_v39  ;;  %v3695_v52 = vpack.c.bf16 %v600_v45, %v599_v44 }
 0x10d   : > { %3682 = vmatpush3.bf16.msra.mxu1 %v3681_v13  ;;  %3652 = vmatprep.subr.bf16.mxu0 %v3651_v14  ;;  %v632_v47 = vld [vmem:[%s5104_s0 + $0x398] sm:$0xff]  ;;  %v485_v48 = vld [vmem:[#allocation2] sm:$0xff]  ;;  %v3725_v51 = vpack.c.bf16 %v614_v43, %v613_v41  ;;  %v583_v53 = vld [vmem:[%s5104_s0 + $0x210] sm:$0xff] }
 0x10e   : > { %3684 = vmatprep.subr.bf16.mxu1 %v3683_v18  ;;  %v487_v49 = vld [vmem:[#allocation2 + $0x10] sm:$0xff]  ;;  %v615_v55 = vld [vmem:[%s5104_s0 + $0x310] sm:$0xff]  ;;  %v3727_v56 = vpack.c.bf16 %v632_v47, %v631_v46  ;;  %v601_v58 = vld [vmem:[%s5104_s0 + $0x2a0] sm:$0xff] }
 0x10f   : > { %v584_v54 = vld [vmem:[%s5104_s0 + $0x218] sm:$0xff]  ;;  %v602_v59 = vld [vmem:[%s5104_s0 + $0x2a8] sm:$0xff]  ;;  %v633_v60 = vld [vmem:[%s5104_s0 + $0x3a0] sm:$0xff] }
 0x110   : > { %3654 = vmatpush3.bf16.msra.mxu0 %v3653_v24  ;;  %v616_v57 = vld [vmem:[%s5104_s0 + $0x318] sm:$0xff]  ;;  %v634_v61 = vld [vmem:[%s5104_s0 + $0x3a8] sm:$0xff]  ;;  %v3697_v62 = vpack.c.bf16 %v584_v54, %v583_v53  ;;  %v3699_v0 = vpack.c.bf16 %v602_v59, %v601_v58  ;;  %v585_v1 = vld [vmem:[%s5104_s0 + $0x220] sm:$0xff] }
 0x111   : > { %3686 = vmatpush3.bf16.msra.mxu1 %v3685_v25  ;;  %3656 = vmatprep.subr.bf16.mxu0 %v3655_v26  ;;  %v3729_v63 = vpack.c.bf16 %v616_v57, %v615_v55  ;;  %v586_v2 = vld [vmem:[%s5104_s0 + $0x228] sm:$0xff]  ;;  %v617_v3 = vld [vmem:[%s5104_s0 + $0x320] sm:$0xff]  ;;  %v3731_v4 = vpack.c.bf16 %v634_v61, %v633_v60  ;;  %v603_v6 = vld [vmem:[%s5104_s0 + $0x2b0] sm:$0xff] }
 0x112   : > { %3688 = vmatprep.subr.bf16.mxu1 %v3687_v30  ;;  %v618_v5 = vld [vmem:[%s5104_s0 + $0x328] sm:$0xff]  ;;  %v604_v7 = vld [vmem:[%s5104_s0 + $0x2b8] sm:$0xff]  ;;  %v635_v8 = vld [vmem:[%s5104_s0 + $0x3b0] sm:$0xff]  ;;  %v3701_v10 = vpack.c.bf16 %v586_v2, %v585_v1 }
 0x113   : > { %v636_v9 = vld [vmem:[%s5104_s0 + $0x3b8] sm:$0xff]  ;;  %v3733_v11 = vpack.c.bf16 %v618_v5, %v617_v3  ;;  %v3703_v12 = vpack.c.bf16 %v604_v7, %v603_v6  ;;  %v587_v13 = vld [vmem:[%s5104_s0 + $0x230] sm:$0xff]  ;;  %v605_v18 = vld [vmem:[%s5104_s0 + $0x2c0] sm:$0xff] }
 0x114   : > { %3658 = vmatpush3.bf16.msra.mxu0 %v3657_v36  ;;  %v588_v14 = vld [vmem:[%s5104_s0 + $0x238] sm:$0xff]  ;;  %v619_v15 = vld [vmem:[%s5104_s0 + $0x330] sm:$0xff]  ;;  %v3735_v16 = vpack.c.bf16 %v636_v9, %v635_v8  ;;  %v606_v19 = vld [vmem:[%s5104_s0 + $0x2c8] sm:$0xff] }
 0x115   : > { %3690 = vmatpush3.bf16.msra.mxu1 %v3689_v37  ;;  %3692 = vmatprep.subr.bf16.mxu0 %v3691_v38  ;;  %v620_v17 = vld [vmem:[%s5104_s0 + $0x338] sm:$0xff]  ;;  %v637_v20 = vld [vmem:[%s5104_s0 + $0x3c0] sm:$0xff]  ;;  %v638_v21 = vld [vmem:[%s5104_s0 + $0x3c8] sm:$0xff]  ;;  %v3705_v22 = vpack.c.bf16 %v588_v14, %v587_v13  ;;  %v3707_v26 = vpack.c.bf16 %v606_v19, %v605_v18 }
 0x116   : > { %3724 = vmatprep.subr.bf16.mxu1 %v3723_v42  ;;  %v490_v23 = vld [vmem:[#allocation2 + $0x28] sm:$0xff]  ;;  %v492_v24 = vld [vmem:[#allocation2 + $0x38] sm:$0xff]  ;;  %v3737_v25 = vpack.c.bf16 %v620_v17, %v619_v15  ;;  %v590_v28 = vld [vmem:[%s5104_s0 + $0x248] sm:$0xff]  ;;  %v3739_v30 = vpack.c.bf16 %v638_v21, %v637_v20 }
 0x117   : > { %1094 = vmatmul.mubr.f32.vlgmr.msra.gmra.mrb[0].mxu0 %v485_v48  ;;  %v589_v27 = vld [vmem:[%s5104_s0 + $0x240] sm:$0xff]  ;;  %v622_v31 = vld [vmem:[%s5104_s0 + $0x348] sm:$0xff]  ;;  %v607_v32 = vld [vmem:[%s5104_s0 + $0x2d0] sm:$0xff] }
 0x118   : > { %1164 = vmatmul.mubr.f32.vlgmr.msra.gmra.mrb[0].mxu1 %v487_v49  ;;  %3694 = vmatpush3.bf16.msra.mxu0 %v3693_v50  ;;  %v621_v29 = vld [vmem:[%s5104_s0 + $0x340] sm:$0xff]  ;;  %v608_v33 = vld [vmem:[%s5104_s0 + $0x2d8] sm:$0xff]  ;;  %v639_v34 = vld [vmem:[%s5104_s0 + $0x3d0] sm:$0xff]  ;;  %v3709_v36 = vpack.c.bf16 %v590_v28, %v589_v27 }
 0x119   : > { %3726 = vmatpush3.bf16.msra.mxu1 %v3725_v51  ;;  %3696 = vmatprep.subr.bf16.mxu0 %v3695_v52  ;;  %v640_v35 = vld [vmem:[%s5104_s0 + $0x3d8] sm:$0xff]  ;;  %v3741_v37 = vpack.c.bf16 %v622_v31, %v621_v29  ;;  %v3711_v38 = vpack.c.bf16 %v608_v33, %v607_v32  ;;  %v591_v39 = vld [vmem:[%s5104_s0 + $0x250] sm:$0xff]  ;;  %v609_v44 = vld [vmem:[%s5104_s0 + $0x2e0] sm:$0xff] }
 0x11a   : > { %3728 = vmatprep.subr.bf16.mxu1 %v3727_v56  ;;  %1233 = vmatprep.mubr.f32.mxu0 %v490_v23  ;;  %v592_v40 = vld [vmem:[%s5104_s0 + $0x258] sm:$0xff]  ;;  %v623_v41 = vld [vmem:[%s5104_s0 + $0x350] sm:$0xff]  ;;  %v3743_v42 = vpack.c.bf16 %v640_v35, %v639_v34  ;;  %v610_v45 = vld [vmem:[%s5104_s0 + $0x2e8] sm:$0xff] }
 0x11b   : > { %1303 = vmatprep.mubr.f32.mxu1 %v492_v24  ;;  %v624_v43 = vld [vmem:[%s5104_s0 + $0x358] sm:$0xff]  ;;  %v641_v46 = vld [vmem:[%s5104_s0 + $0x3e0] sm:$0xff]  ;;  %v642_v47 = vld [vmem:[%s5104_s0 + $0x3e8] sm:$0xff]  ;;  %v3713_v48 = vpack.c.bf16 %v592_v40, %v591_v39  ;;  %v3715_v50 = vpack.c.bf16 %v610_v45, %v609_v44 }
 0x11c   : > { %3698 = vmatpush3.bf16.msra.mxu0 %v3697_v62  ;;  %v3745_v49 = vpack.c.bf16 %v624_v43, %v623_v41  ;;  %v593_v51 = vld [vmem:[%s5104_s0 + $0x260] sm:$0xff]  ;;  %v594_v52 = vld [vmem:[%s5104_s0 + $0x268] sm:$0xff]  ;;  %v3747_v54 = vpack.c.bf16 %v642_v47, %v641_v46  ;;  %v611_v56 = vld [vmem:[%s5104_s0 + $0x2f0] sm:$0xff] }
 0x11d   : > { %3730 = vmatpush3.bf16.msra.mxu1 %v3729_v63  ;;  %3700 = vmatprep.subr.bf16.mxu0 %v3699_v0  ;;  %v625_v53 = vld [vmem:[%s5104_s0 + $0x360] sm:$0xff]  ;;  %v626_v55 = vld [vmem:[%s5104_s0 + $0x368] sm:$0xff]  ;;  %v612_v57 = vld [vmem:[%s5104_s0 + $0x2f8] sm:$0xff]  ;;  %v3717_v60 = vpack.c.bf16 %v594_v52, %v593_v51 }
 0x11e   : > { %3732 = vmatprep.subr.bf16.mxu1 %v3731_v4  ;;  %v643_v58 = vld [vmem:[%s5104_s0 + $0x3f0] sm:$0xff]  ;;  %v644_v59 = vld [vmem:[%s5104_s0 + $0x3f8] sm:$0xff]  ;;  %v3749_v61 = vpack.c.bf16 %v626_v55, %v625_v53  ;;  %v3719_v62 = vpack.c.bf16 %v612_v57, %v611_v56  ;;  %v661_v4 = vld [vmem:[%s5104_s0 + $0x480] sm:$0xff] }
 0x11f   : > { %v595_v63 = vld [vmem:[%s5104_s0 + $0x270] sm:$0xff]  ;;  %v596_v0 = vld [vmem:[%s5104_s0 + $0x278] sm:$0xff]  ;;  %v3751_v2 = vpack.c.bf16 %v644_v59, %v643_v58  ;;  %v662_v5 = vld [vmem:[%s5104_s0 + $0x488] sm:$0xff] }
 0x120   : > { %3702 = vmatpush3.bf16.msra.mxu0 %v3701_v10  ;;  %v627_v1 = vld [vmem:[%s5104_s0 + $0x370] sm:$0xff]  ;;  %v628_v3 = vld [vmem:[%s5104_s0 + $0x378] sm:$0xff]  ;;  %v693_v6 = vld [vmem:[%s5104_s0 + $0x580] sm:$0xff]  ;;  %v3721_v8 = vpack.c.bf16 %v596_v0, %v595_v63  ;;  %v3755_v10 = vpack.c.bf16 %v662_v5, %v661_v4 }
 0x121   : > { %3734 = vmatpush3.bf16.msra.mxu1 %v3733_v11  ;;  %3704 = vmatprep.subr.bf16.mxu0 %v3703_v12  ;;  %v694_v7 = vld [vmem:[%s5104_s0 + $0x588] sm:$0xff]  ;;  %v3753_v9 = vpack.c.bf16 %v628_v3, %v627_v1  ;;  %v645_v11 = vld [vmem:[%s5104_s0 + $0x400] sm:$0xff]  ;;  %v664_v17 = vld [vmem:[%s5104_s0 + $0x498] sm:$0xff] }
 0x122   : > { %3736 = vmatprep.subr.bf16.mxu1 %v3735_v16  ;;  %v646_v12 = vld [vmem:[%s5104_s0 + $0x408] sm:$0xff]  ;;  %v677_v13 = vld [vmem:[%s5104_s0 + $0x500] sm:$0xff]  ;;  %v3787_v14 = vpack.c.bf16 %v694_v7, %v693_v6  ;;  %v663_v16 = vld [vmem:[%s5104_s0 + $0x490] sm:$0xff] }
 0x123   : > { %v678_v15 = vld [vmem:[%s5104_s0 + $0x508] sm:$0xff]  ;;  %v695_v18 = vld [vmem:[%s5104_s0 + $0x590] sm:$0xff]  ;;  %v696_v19 = vld [vmem:[%s5104_s0 + $0x598] sm:$0xff]  ;;  %v3759_v24 = vpack.c.bf16 %v664_v17, %v663_v16 }
 0x124   : > { %3706 = vmatpush3.bf16.msra.mxu0 %v3705_v22  ;;  %v489_v20 = vld [vmem:[#allocation2 + $0x20] sm:$0xff]  ;;  %v491_v21 = vld [vmem:[#allocation2 + $0x30] sm:$0xff]  ;;  %v3757_v22 = vpack.c.bf16 %v646_v12, %v645_v11  ;;  %v3789_v23 = vpack.c.bf16 %v678_v15, %v677_v13  ;;  %v679_v27 = vld [vmem:[%s5104_s0 + $0x510] sm:$0xff]  ;;  %v3791_v28 = vpack.c.bf16 %v696_v19, %v695_v18 }
 0x125   : > { %3738 = vmatpush3.bf16.msra.mxu1 %v3737_v25  ;;  %3708 = vmatprep.subr.bf16.mxu0 %v3707_v26  ;;  %v647_v25 = vld [vmem:[%s5104_s0 + $0x410] sm:$0xff]  ;;  %v648_v26 = vld [vmem:[%s5104_s0 + $0x418] sm:$0xff]  ;;  %v666_v31 = vld [vmem:[%s5104_s0 + $0x4a8] sm:$0xff] }
 0x126   : > { %3740 = vmatprep.subr.bf16.mxu1 %v3739_v30  ;;  %v680_v29 = vld [vmem:[%s5104_s0 + $0x518] sm:$0xff]  ;;  %v665_v30 = vld [vmem:[%s5104_s0 + $0x4a0] sm:$0xff]  ;;  %v698_v33 = vld [vmem:[%s5104_s0 + $0x5a8] sm:$0xff]  ;;  %v3761_v35 = vpack.c.bf16 %v648_v26, %v647_v25 }
 0x127   : > { %v697_v32 = vld [vmem:[%s5104_s0 + $0x5a0] sm:$0xff]  ;;  %v494_v34 = vld [vmem:[#allocation2 + $0x48] sm:$0xff]  ;;  %v650_v40 = vld [vmem:[%s5104_s0 + $0x428] sm:$0xff] }
 0x128   : > { %3710 = vmatpush3.bf16.msra.mxu0 %v3709_v36  ;;  %v496_v36 = vld [vmem:[#allocation2 + $0x58] sm:$0xff]  ;;  %v682_v43 = vld [vmem:[%s5104_s0 + $0x528] sm:$0xff]  ;;  %v667_v44 = vld [vmem:[%s5104_s0 + $0x4b0] sm:$0xff] }
 0x129   : > { %3742 = vmatpush3.bf16.msra.mxu1 %v3741_v37  ;;  %3712 = vmatprep.subr.bf16.mxu0 %v3711_v38  ;;  %v3793_v37 = vpack.c.bf16 %v680_v29, %v679_v27  ;;  %v3763_v38 = vpack.c.bf16 %v666_v31, %v665_v30  ;;  %v649_v39 = vld [vmem:[%s5104_s0 + $0x420] sm:$0xff]  ;;  %v668_v45 = vld [vmem:[%s5104_s0 + $0x4b8] sm:$0xff]  ;;  %v699_v46 = vld [vmem:[%s5104_s0 + $0x5b0] sm:$0xff] }
 0x12a   : > { %3744 = vmatprep.subr.bf16.mxu1 %v3743_v42  ;;  %v681_v41 = vld [vmem:[%s5104_s0 + $0x520] sm:$0xff]  ;;  %v3795_v42 = vpack.c.bf16 %v698_v33, %v697_v32  ;;  %v700_v47 = vld [vmem:[%s5104_s0 + $0x5b8] sm:$0xff]  ;;  %v651_v51 = vld [vmem:[%s5104_s0 + $0x430] sm:$0xff] }
 0x12b   : > { %v652_v52 = vld [vmem:[%s5104_s0 + $0x438] sm:$0xff]  ;;  %v683_v53 = vld [vmem:[%s5104_s0 + $0x530] sm:$0xff]  ;;  %v669_v56 = vld [vmem:[%s5104_s0 + $0x4c0] sm:$0xff] }
 0x12c   : > { %3714 = vmatpush3.bf16.msra.mxu0 %v3713_v48  ;;  %v3765_v48 = vpack.c.bf16 %v650_v40, %v649_v39  ;;  %v684_v55 = vld [vmem:[%s5104_s0 + $0x538] sm:$0xff]  ;;  %v670_v57 = vld [vmem:[%s5104_s0 + $0x4c8] sm:$0xff]  ;;  %v701_v58 = vld [vmem:[%s5104_s0 + $0x5c0] sm:$0xff] }
 0x12d   : > { %3746 = vmatpush3.bf16.msra.mxu1 %v3745_v49  ;;  %3716 = vmatprep.subr.bf16.mxu0 %v3715_v50  ;;  %v3797_v49 = vpack.c.bf16 %v682_v43, %v681_v41  ;;  %v3767_v50 = vpack.c.bf16 %v668_v45, %v667_v44  ;;  %v702_v59 = vld [vmem:[%s5104_s0 + $0x5c8] sm:$0xff]  ;;  %v653_v63 = vld [vmem:[%s5104_s0 + $0x440] sm:$0xff]  ;;  %v671_v4 = vld [vmem:[%s5104_s0 + $0x4d0] sm:$0xff] }
 0x12e   : > { %3748 = vmatprep.subr.bf16.mxu1 %v3747_v54  ;;  %v3799_v54 = vpack.c.bf16 %v700_v47, %v699_v46  ;;  %v654_v0 = vld [vmem:[%s5104_s0 + $0x448] sm:$0xff]  ;;  %v685_v1 = vld [vmem:[%s5104_s0 + $0x540] sm:$0xff]  ;;  %v672_v5 = vld [vmem:[%s5104_s0 + $0x4d8] sm:$0xff] }
 0x12f   : > { %v686_v3 = vld [vmem:[%s5104_s0 + $0x548] sm:$0xff]  ;;  %v703_v6 = vld [vmem:[%s5104_s0 + $0x5d0] sm:$0xff]  ;;  %v704_v7 = vld [vmem:[%s5104_s0 + $0x5d8] sm:$0xff] }
 0x130   : > { %3718 = vmatpush3.bf16.msra.mxu0 %v3717_v60  ;;  %v3769_v60 = vpack.c.bf16 %v652_v52, %v651_v51  ;;  %v655_v11 = vld [vmem:[%s5104_s0 + $0x450] sm:$0xff]  ;;  %v656_v12 = vld [vmem:[%s5104_s0 + $0x458] sm:$0xff]  ;;  %v673_v16 = vld [vmem:[%s5104_s0 + $0x4e0] sm:$0xff] }
 0x131   : > { %3750 = vmatpush3.bf16.msra.mxu1 %v3749_v61  ;;  %3720 = vmatprep.subr.bf16.mxu0 %v3719_v62  ;;  %v3801_v61 = vpack.c.bf16 %v684_v55, %v683_v53  ;;  %v3771_v62 = vpack.c.bf16 %v670_v57, %v669_v56  ;;  %v687_v13 = vld [vmem:[%s5104_s0 + $0x550] sm:$0xff]  ;;  %v688_v15 = vld [vmem:[%s5104_s0 + $0x558] sm:$0xff]  ;;  %v674_v17 = vld [vmem:[%s5104_s0 + $0x4e8] sm:$0xff] }
 0x132   : > { %3752 = vmatprep.subr.bf16.mxu1 %v3751_v2  ;;  %v3803_v2 = vpack.c.bf16 %v702_v59, %v701_v58  ;;  %v705_v18 = vld [vmem:[%s5104_s0 + $0x5e0] sm:$0xff]  ;;  %v706_v19 = vld [vmem:[%s5104_s0 + $0x5e8] sm:$0xff]  ;;  %v676_v29 = vld [vmem:[%s5104_s0 + $0x4f8] sm:$0xff] }
 0x133   : > { %v689_v25 = vld [vmem:[%s5104_s0 + $0x560] sm:$0xff]  ;;  %v3811_v26 = vpack.c.bf16 %v706_v19, %v705_v18  ;;  %v690_v27 = vld [vmem:[%s5104_s0 + $0x568] sm:$0xff]  ;;  %v707_v30 = vld [vmem:[%s5104_s0 + $0x5f0] sm:$0xff] }
 0x134   : > { %3722 = vmatpush3.bf16.msra.mxu0 %v3721_v8  ;;  %v3773_v8 = vpack.c.bf16 %v654_v0, %v653_v63  ;;  %v708_v31 = vld [vmem:[%s5104_s0 + $0x5f8] sm:$0xff]  ;;  %v3813_v33 = vpack.c.bf16 %v690_v27, %v689_v25  ;;  %v725_v40 = vld [vmem:[%s5104_s0 + $0x680] sm:$0xff]  ;;  %v726_v41 = vld [vmem:[%s5104_s0 + $0x688] sm:$0xff] }
 0x135   : > { %3754 = vmatpush3.bf16.msra.mxu1 %v3753_v9  ;;  %3756 = vmatprep.subr.bf16.mxu0 %v3755_v10  ;;  %v3805_v9 = vpack.c.bf16 %v686_v3, %v685_v1  ;;  %v3775_v10 = vpack.c.bf16 %v672_v5, %v671_v4  ;;  %v692_v39 = vld [vmem:[%s5104_s0 + $0x578] sm:$0xff]  ;;  %v758_v43 = vld [vmem:[%s5104_s0 + $0x788] sm:$0xff]  ;;  %v3819_v46 = vpack.c.bf16 %v726_v41, %v725_v40  ;;  %v709_v47 = vld [vmem:[%s5104_s0 + $0x600] sm:$0xff] }
 0x136   : > { %3788 = vmatprep.subr.bf16.mxu1 %v3787_v14  ;;  %v3807_v14 = vpack.c.bf16 %v704_v7, %v703_v6  ;;  %v742_v51 = vld [vmem:[%s5104_s0 + $0x708] sm:$0xff]  ;;  %v727_v52 = vld [vmem:[%s5104_s0 + $0x690] sm:$0xff]  ;;  %v728_v53 = vld [vmem:[%s5104_s0 + $0x698] sm:$0xff] }
 0x137   : > { %1234 = vmatmul.mubr.f32.vlgmr.msra.gmra.mrb[2].mxu0 %v489_v20  ;;  %v3777_v20 = vpack.c.bf16 %v656_v12, %v655_v11  ;;  %v760_v55 = vld [vmem:[%s5104_s0 + $0x798] sm:$0xff]  ;;  %v493_v56 = vld [vmem:[#allocation2 + $0x40] sm:$0xff]  ;;  %v743_v63 = vld [vmem:[%s5104_s0 + $0x710] sm:$0xff] }
 0x138   : > { %1304 = vmatmul.mubr.f32.vlgmr.msra.gmra.mrb[2].mxu1 %v491_v21  ;;  %3758 = vmatpush3.bf16.msra.mxu0 %v3757_v22  ;;  %v3809_v21 = vpack.c.bf16 %v688_v15, %v687_v13  ;;  %v3779_v22 = vpack.c.bf16 %v674_v17, %v673_v16  ;;  %v495_v57 = vld [vmem:[#allocation2 + $0x50] sm:$0xff]  ;;  %v730_v3 = vld [vmem:[%s5104_s0 + $0x6a8] sm:$0xff]  ;;  %v761_v4 = vld [vmem:[%s5104_s0 + $0x7a0] sm:$0xff] }
 0x139   : > { %3790 = vmatpush3.bf16.msra.mxu1 %v3789_v23  ;;  %3760 = vmatprep.subr.bf16.mxu0 %v3759_v24  ;;  %v657_v23 = vld [vmem:[%s5104_s0 + $0x460] sm:$0xff]  ;;  %v658_v24 = vld [vmem:[%s5104_s0 + $0x468] sm:$0xff]  ;;  %v744_v1 = vld [vmem:[%s5104_s0 + $0x718] sm:$0xff] }
 0x13a   : > { %3792 = vmatprep.subr.bf16.mxu1 %v3791_v28  ;;  %1373 = vmatprep.mubr.f32.mxu0 %v494_v34  ;;  %v675_v28 = vld [vmem:[%s5104_s0 + $0x4f0] sm:$0xff]  ;;  %v3781_v32 = vpack.c.bf16 %v658_v24, %v657_v23  ;;  %v762_v5 = vld [vmem:[%s5104_s0 + $0x7a8] sm:$0xff]  ;;  %v713_v11 = vld [vmem:[%s5104_s0 + $0x620] sm:$0xff] }
 0x13b   : > { %1443 = vmatprep.mubr.f32.mxu1 %v496_v36  ;;  %v3783_v34 = vpack.c.bf16 %v676_v29, %v675_v28  ;;  %v660_v36 = vld [vmem:[%s5104_s0 + $0x478] sm:$0xff]  ;;  %v498_v6 = vld [vmem:[#allocation2 + $0x68] sm:$0xff]  ;;  %v714_v12 = vld [vmem:[%s5104_s0 + $0x628] sm:$0xff] }
 0x13c   : > { %3762 = vmatpush3.bf16.msra.mxu0 %v3761_v35  ;;  %v659_v35 = vld [vmem:[%s5104_s0 + $0x470] sm:$0xff]  ;;  %v745_v13 = vld [vmem:[%s5104_s0 + $0x720] sm:$0xff]  ;;  %v746_v15 = vld [vmem:[%s5104_s0 + $0x728] sm:$0xff] }
 0x13d   : > { %3794 = vmatpush3.bf16.msra.mxu1 %v3793_v37  ;;  %3764 = vmatprep.subr.bf16.mxu0 %v3763_v38  ;;  %v691_v37 = vld [vmem:[%s5104_s0 + $0x570] sm:$0xff]  ;;  %v3815_v38 = vpack.c.bf16 %v708_v31, %v707_v30  ;;  %v3785_v44 = vpack.c.bf16 %v660_v36, %v659_v35  ;;  %v732_v17 = vld [vmem:[%s5104_s0 + $0x6b8] sm:$0xff]  ;;  %v733_v28 = vld [vmem:[%s5104_s0 + $0x6c0] sm:$0xff] }
 0x13e   : > { %3796 = vmatprep.subr.bf16.mxu1 %v3795_v42  ;;  %v757_v42 = vld [vmem:[%s5104_s0 + $0x780] sm:$0xff]  ;;  %v3817_v45 = vpack.c.bf16 %v692_v39, %v691_v37  ;;  %v731_v16 = vld [vmem:[%s5104_s0 + $0x6b0] sm:$0xff]  ;;  %v764_v19 = vld [vmem:[%s5104_s0 + $0x7b8] sm:$0xff] }
 0x13f   : > { %v763_v18 = vld [vmem:[%s5104_s0 + $0x7b0] sm:$0xff]  ;;  %v716_v24 = vld [vmem:[%s5104_s0 + $0x638] sm:$0xff]  ;;  %v734_v29 = vld [vmem:[%s5104_s0 + $0x6c8] sm:$0xff] }
 0x140   : > { %3766 = vmatpush3.bf16.msra.mxu0 %v3765_v48  ;;  %v710_v48 = vld [vmem:[%s5104_s0 + $0x608] sm:$0xff]  ;;  %v715_v23 = vld [vmem:[%s5104_s0 + $0x630] sm:$0xff]  ;;  %v748_v27 = vld [vmem:[%s5104_s0 + $0x738] sm:$0xff] }
 0x141   : > { %3798 = vmatpush3.bf16.msra.mxu1 %v3797_v49  ;;  %3768 = vmatprep.subr.bf16.mxu0 %v3767_v50  ;;  %v741_v49 = vld [vmem:[%s5104_s0 + $0x700] sm:$0xff]  ;;  %v3851_v50 = vpack.c.bf16 %v758_v43, %v757_v42  ;;  %v3821_v58 = vpack.c.bf16 %v710_v48, %v709_v47  ;;  %v747_v25 = vld [vmem:[%s5104_s0 + $0x730] sm:$0xff]  ;;  %v766_v31 = vld [vmem:[%s5104_s0 + $0x7c8] sm:$0xff] }
 0x142   : > { %3800 = vmatprep.subr.bf16.mxu1 %v3799_v54  ;;  %v759_v54 = vld [vmem:[%s5104_s0 + $0x790] sm:$0xff]  ;;  %v3853_v59 = vpack.c.bf16 %v742_v51, %v741_v49  ;;  %v765_v30 = vld [vmem:[%s5104_s0 + $0x7c0] sm:$0xff]  ;;  %v718_v36 = vld [vmem:[%s5104_s0 + $0x648] sm:$0xff] }
 0x143   : > { %v3855_v0 = vpack.c.bf16 %v760_v55, %v759_v54  ;;  %v717_v35 = vld [vmem:[%s5104_s0 + $0x640] sm:$0xff]  ;;  %v750_v39 = vld [vmem:[%s5104_s0 + $0x748] sm:$0xff]  ;;  %v735_v40 = vld [vmem:[%s5104_s0 + $0x6d0] sm:$0xff] }
 0x144   : > { %3770 = vmatpush3.bf16.msra.mxu0 %v3769_v60  ;;  %v3823_v60 = vpack.c.bf16 %v728_v53, %v727_v52  ;;  %v749_v37 = vld [vmem:[%s5104_s0 + $0x740] sm:$0xff]  ;;  %v736_v41 = vld [vmem:[%s5104_s0 + $0x6d8] sm:$0xff]  ;;  %v767_v42 = vld [vmem:[%s5104_s0 + $0x7d0] sm:$0xff] }
 0x145   : > { %3802 = vmatpush3.bf16.msra.mxu1 %v3801_v61  ;;  %3772 = vmatprep.subr.bf16.mxu0 %v3771_v62  ;;  %v711_v61 = vld [vmem:[%s5104_s0 + $0x610] sm:$0xff]  ;;  %v712_v62 = vld [vmem:[%s5104_s0 + $0x618] sm:$0xff]  ;;  %v737_v52 = vld [vmem:[%s5104_s0 + $0x6e0] sm:$0xff] }
 0x146   : > { %3804 = vmatprep.subr.bf16.mxu1 %v3803_v2  ;;  %v729_v2 = vld [vmem:[%s5104_s0 + $0x6a0] sm:$0xff]  ;;  %v3825_v7 = vpack.c.bf16 %v712_v62, %v711_v61  ;;  %v768_v43 = vld [vmem:[%s5104_s0 + $0x7d8] sm:$0xff]  ;;  %v719_v47 = vld [vmem:[%s5104_s0 + $0x650] sm:$0xff] }
 0x147   : > { %v720_v48 = vld [vmem:[%s5104_s0 + $0x658] sm:$0xff]  ;;  %v751_v49 = vld [vmem:[%s5104_s0 + $0x750] sm:$0xff]  ;;  %v738_v53 = vld [vmem:[%s5104_s0 + $0x6e8] sm:$0xff] }
 0x148   : > { %3774 = vmatpush3.bf16.msra.mxu0 %v3773_v8  ;;  %v500_v8 = vld [vmem:[#allocation2 + $0x78] sm:$0xff]  ;;  %v752_v51 = vld [vmem:[%s5104_s0 + $0x758] sm:$0xff]  ;;  %v770_v55 = vld [vmem:[%s5104_s0 + $0x7e8] sm:$0xff] }
 0x149   : > { %3806 = vmatpush3.bf16.msra.mxu1 %v3805_v9  ;;  %3776 = vmatprep.subr.bf16.mxu0 %v3775_v10  ;;  %v3857_v9 = vpack.c.bf16 %v744_v1, %v743_v63  ;;  %v3827_v10 = vpack.c.bf16 %v730_v3, %v729_v2  ;;  %v769_v54 = vld [vmem:[%s5104_s0 + $0x7e0] sm:$0xff]  ;;  %v754_v63 = vld [vmem:[%s5104_s0 + $0x768] sm:$0xff]  ;;  %v740_v1 = vld [vmem:[%s5104_s0 + $0x6f8] sm:$0xff] }
 0x14a   : > { %3808 = vmatprep.subr.bf16.mxu1 %v3807_v14  ;;  %v3859_v14 = vpack.c.bf16 %v762_v5, %v761_v4  ;;  %v753_v61 = vld [vmem:[%s5104_s0 + $0x760] sm:$0xff]  ;;  %v3875_v62 = vpack.c.bf16 %v770_v55, %v769_v54  ;;  %v771_v2 = vld [vmem:[%s5104_s0 + $0x7f0] sm:$0xff]  ;;  %v772_v3 = vld [vmem:[%s5104_s0 + $0x7f8] sm:$0xff] }
 0x14b   : > { %v3877_v5 = vpack.c.bf16 %v754_v63, %v753_v61  ;;  %v827_v54 = vld [vmem:[%s5104_s0 + $0x9b0] sm:$0xff]  ;;  %v828_v55 = vld [vmem:[%s5104_s0 + $0x9b8] sm:$0xff] }
 0x14c   : > { %3778 = vmatpush3.bf16.msra.mxu0 %v3777_v20  ;;  %v3829_v20 = vpack.c.bf16 %v714_v12, %v713_v11  ;;  %v756_v11 = vld [vmem:[%s5104_s0 + $0x778] sm:$0xff]  ;;  %v789_v12 = vld [vmem:[%s5104_s0 + $0x880] sm:$0xff]  ;;  %v811_v61 = vld [vmem:[%s5104_s0 + $0x930] sm:$0xff] }
 0x14d   : > { %3810 = vmatpush3.bf16.msra.mxu1 %v3809_v21  ;;  %3780 = vmatprep.subr.bf16.mxu0 %v3779_v22  ;;  %v3861_v21 = vpack.c.bf16 %v746_v15, %v745_v13  ;;  %v3831_v22 = vpack.c.bf16 %v732_v17, %v731_v16  ;;  %v790_v13 = vld [vmem:[%s5104_s0 + $0x888] sm:$0xff]  ;;  %v812_v63 = vld [vmem:[%s5104_s0 + $0x938] sm:$0xff] }
 0x14e   : > { %3812 = vmatprep.subr.bf16.mxu1 %v3811_v26  ;;  %v3863_v26 = vpack.c.bf16 %v764_v19, %v763_v18  ;;  %v822_v15 = vld [vmem:[%s5104_s0 + $0x988] sm:$0xff]  ;;  %v3883_v18 = vpack.c.bf16 %v790_v13, %v789_v12  ;;  %v773_v19 = vld [vmem:[%s5104_s0 + $0x800] sm:$0xff]  ;;  %v799_v12 = vld [vmem:[%s5104_s0 + $0x8d0] sm:$0xff] }
 0x14f   : > { %v800_v13 = vld [vmem:[%s5104_s0 + $0x8d8] sm:$0xff] }
 0x150   : > { %3782 = vmatpush3.bf16.msra.mxu0 %v3781_v32  ;;  %v3833_v32 = vpack.c.bf16 %v716_v24, %v715_v23  ;;  %v806_v23 = vld [vmem:[%s5104_s0 + $0x908] sm:$0xff]  ;;  %v791_v24 = vld [vmem:[%s5104_s0 + $0x890] sm:$0xff] }
 0x151   : > { %3814 = vmatpush3.bf16.msra.mxu1 %v3813_v33  ;;  %3784 = vmatprep.subr.bf16.mxu0 %v3783_v34  ;;  %v3865_v33 = vpack.c.bf16 %v748_v27, %v747_v25  ;;  %v3835_v34 = vpack.c.bf16 %v734_v29, %v733_v28  ;;  %v792_v25 = vld [vmem:[%s5104_s0 + $0x898] sm:$0xff]  ;;  %v497_v28 = vld [vmem:[#allocation2 + $0x60] sm:$0xff] }
 0x152   : > { %3816 = vmatprep.subr.bf16.mxu1 %v3815_v38  ;;  %v3867_v38 = vpack.c.bf16 %v766_v31, %v765_v30  ;;  %v824_v27 = vld [vmem:[%s5104_s0 + $0x998] sm:$0xff] }
 0x153   : > { %v499_v29 = vld [vmem:[#allocation2 + $0x70] sm:$0xff] }
 0x154   : > { %3786 = vmatpush3.bf16.msra.mxu0 %v3785_v44  ;;  %v3837_v44 = vpack.c.bf16 %v718_v36, %v717_v35  ;;  %v807_v35 = vld [vmem:[%s5104_s0 + $0x910] sm:$0xff] }
 0x155   : > { %3818 = vmatpush3.bf16.msra.mxu1 %v3817_v45  ;;  %3820 = vmatprep.subr.bf16.mxu0 %v3819_v46  ;;  %v3869_v45 = vpack.c.bf16 %v750_v39, %v749_v37  ;;  %v3839_v46 = vpack.c.bf16 %v736_v41, %v735_v40  ;;  %v808_v37 = vld [vmem:[%s5104_s0 + $0x918] sm:$0xff]  ;;  %v794_v39 = vld [vmem:[%s5104_s0 + $0x8a8] sm:$0xff]  ;;  %v825_v40 = vld [vmem:[%s5104_s0 + $0x9a0] sm:$0xff] }
 0x156   : > { %3852 = vmatprep.subr.bf16.mxu1 %v3851_v50  ;;  %v3871_v50 = vpack.c.bf16 %v768_v43, %v767_v42  ;;  %v826_v41 = vld [vmem:[%s5104_s0 + $0x9a8] sm:$0xff]  ;;  %v502_v42 = vld [vmem:[#allocation2 + $0x88] sm:$0xff] }
 0x157   : > { %1374 = vmatmul.mubr.f32.vlgmr.msra.gmra.mrb[4].mxu0 %v493_v56  ;;  %v3841_v56 = vpack.c.bf16 %v720_v48, %v719_v47  ;;  %v777_v47 = vld [vmem:[%s5104_s0 + $0x820] sm:$0xff]  ;;  %v778_v48 = vld [vmem:[%s5104_s0 + $0x828] sm:$0xff] }
 0x158   : > { %1444 = vmatmul.mubr.f32.vlgmr.msra.gmra.mrb[4].mxu1 %v495_v57  ;;  %3822 = vmatpush3.bf16.msra.mxu0 %v3821_v58  ;;  %v3873_v57 = vpack.c.bf16 %v752_v51, %v751_v49  ;;  %v3843_v58 = vpack.c.bf16 %v738_v53, %v737_v52  ;;  %v809_v49 = vld [vmem:[%s5104_s0 + $0x920] sm:$0xff]  ;;  %v810_v51 = vld [vmem:[%s5104_s0 + $0x928] sm:$0xff]  ;;  %v795_v52 = vld [vmem:[%s5104_s0 + $0x8b0] sm:$0xff] }
 0x159   : > { %3854 = vmatpush3.bf16.msra.mxu1 %v3853_v59  ;;  %3824 = vmatprep.subr.bf16.mxu0 %v3823_v60  ;;  %v721_v59 = vld [vmem:[%s5104_s0 + $0x660] sm:$0xff]  ;;  %v722_v60 = vld [vmem:[%s5104_s0 + $0x668] sm:$0xff]  ;;  %v796_v53 = vld [vmem:[%s5104_s0 + $0x8b8] sm:$0xff] }
 0x15a   : > { %3856 = vmatprep.subr.bf16.mxu1 %v3855_v0  ;;  %1513 = vmatprep.mubr.f32.mxu0 %v498_v6  ;;  %v739_v0 = vld [vmem:[%s5104_s0 + $0x6f0] sm:$0xff]  ;;  %v3845_v4 = vpack.c.bf16 %v722_v60, %v721_v59  ;;  %v780_v60 = vld [vmem:[%s5104_s0 + $0x838] sm:$0xff] }
 0x15b   : > { %1583 = vmatprep.mubr.f32.mxu1 %v500_v8  ;;  %v3847_v6 = vpack.c.bf16 %v740_v1, %v739_v0  ;;  %v724_v8 = vld [vmem:[%s5104_s0 + $0x678] sm:$0xff]  ;;  %v779_v59 = vld [vmem:[%s5104_s0 + $0x830] sm:$0xff]  ;;  %v797_v0 = vld [vmem:[%s5104_s0 + $0x8c0] sm:$0xff] }
 0x15c   : > { %3826 = vmatpush3.bf16.msra.mxu0 %v3825_v7  ;;  %v723_v7 = vld [vmem:[%s5104_s0 + $0x670] sm:$0xff]  ;;  %v798_v1 = vld [vmem:[%s5104_s0 + $0x8c8] sm:$0xff] }
 0x15d   : > { %3858 = vmatpush3.bf16.msra.mxu1 %v3857_v9  ;;  %3828 = vmatprep.subr.bf16.mxu0 %v3827_v10  ;;  %v755_v9 = vld [vmem:[%s5104_s0 + $0x770] sm:$0xff]  ;;  %v3879_v10 = vpack.c.bf16 %v772_v3, %v771_v2  ;;  %v3849_v16 = vpack.c.bf16 %v724_v8, %v723_v7  ;;  %v829_v2 = vld [vmem:[%s5104_s0 + $0x9c0] sm:$0xff]  ;;  %v830_v3 = vld [vmem:[%s5104_s0 + $0x9c8] sm:$0xff] }
 0x15e   : > { %3860 = vmatprep.subr.bf16.mxu1 %v3859_v14  ;;  %v821_v14 = vld [vmem:[%s5104_s0 + $0x980] sm:$0xff]  ;;  %v3881_v17 = vpack.c.bf16 %v756_v11, %v755_v9  ;;  %v782_v8 = vld [vmem:[%s5104_s0 + $0x848] sm:$0xff] }
 0x15f   : > { %v781_v7 = vld [vmem:[%s5104_s0 + $0x840] sm:$0xff]  ;;  %v814_v11 = vld [vmem:[%s5104_s0 + $0x948] sm:$0xff] }
 0x160   : > { %3830 = vmatpush3.bf16.msra.mxu0 %v3829_v20  ;;  %v774_v20 = vld [vmem:[%s5104_s0 + $0x808] sm:$0xff]  ;;  %v813_v9 = vld [vmem:[%s5104_s0 + $0x940] sm:$0xff] }
 0x161   : > { %3862 = vmatpush3.bf16.msra.mxu1 %v3861_v21  ;;  %3832 = vmatprep.subr.bf16.mxu0 %v3831_v22  ;;  %v805_v21 = vld [vmem:[%s5104_s0 + $0x900] sm:$0xff]  ;;  %v3915_v22 = vpack.c.bf16 %v822_v15, %v821_v14  ;;  %v3885_v30 = vpack.c.bf16 %v774_v20, %v773_v19  ;;  %v831_v14 = vld [vmem:[%s5104_s0 + $0x9d0] sm:$0xff]  ;;  %v832_v15 = vld [vmem:[%s5104_s0 + $0x9d8] sm:$0xff] }
 0x162   : > { %3864 = vmatprep.subr.bf16.mxu1 %v3863_v26  ;;  %v823_v26 = vld [vmem:[%s5104_s0 + $0x990] sm:$0xff]  ;;  %v3917_v31 = vpack.c.bf16 %v806_v23, %v805_v21  ;;  %v784_v20 = vld [vmem:[%s5104_s0 + $0x858] sm:$0xff] }
 0x163   : > { %v3919_v36 = vpack.c.bf16 %v824_v27, %v823_v26  ;;  %v783_v19 = vld [vmem:[%s5104_s0 + $0x850] sm:$0xff]  ;;  %v816_v23 = vld [vmem:[%s5104_s0 + $0x958] sm:$0xff]  ;;  %v833_v26 = vld [vmem:[%s5104_s0 + $0x9e0] sm:$0xff] }
 0x164   : > { %3834 = vmatpush3.bf16.msra.mxu0 %v3833_v32  ;;  %v3887_v32 = vpack.c.bf16 %v792_v25, %v791_v24  ;;  %v815_v21 = vld [vmem:[%s5104_s0 + $0x950] sm:$0xff]  ;;  %v801_v24 = vld [vmem:[%s5104_s0 + $0x8e0] sm:$0xff]  ;;  %v802_v25 = vld [vmem:[%s5104_s0 + $0x8e8] sm:$0xff] }
 0x165   : > { %3866 = vmatpush3.bf16.msra.mxu1 %v3865_v33  ;;  %3836 = vmatprep.subr.bf16.mxu0 %v3835_v34  ;;  %v775_v33 = vld [vmem:[%s5104_s0 + $0x810] sm:$0xff]  ;;  %v776_v34 = vld [vmem:[%s5104_s0 + $0x818] sm:$0xff]  ;;  %v834_v27 = vld [vmem:[%s5104_s0 + $0x9e8] sm:$0xff] }
 0x166   : > { %3868 = vmatprep.subr.bf16.mxu1 %v3867_v38  ;;  %v793_v38 = vld [vmem:[%s5104_s0 + $0x8a0] sm:$0xff]  ;;  %v3889_v43 = vpack.c.bf16 %v776_v34, %v775_v33  ;;  %v3939_v34 = vpack.c.bf16 %v834_v27, %v833_v26  ;;  %v891_v26 = vld [vmem:[%s5104_s0 + $0xbb0] sm:$0xff]  ;;  %v892_v27 = vld [vmem:[%s5104_s0 + $0xbb8] sm:$0xff] }
 0x167   : > { %v817_v33 = vld [vmem:[%s5104_s0 + $0x960] sm:$0xff] }
 0x168   : > { %3838 = vmatpush3.bf16.msra.mxu0 %v3837_v44  ;;  %v504_v44 = vld [vmem:[#allocation2 + $0x98] sm:$0xff] }
 0x169   : > { %3870 = vmatpush3.bf16.msra.mxu1 %v3869_v45  ;;  %3840 = vmatprep.subr.bf16.mxu0 %v3839_v46  ;;  %v3921_v45 = vpack.c.bf16 %v808_v37, %v807_v35  ;;  %v3891_v46 = vpack.c.bf16 %v794_v39, %v793_v38  ;;  %v818_v35 = vld [vmem:[%s5104_s0 + $0x968] sm:$0xff]  ;;  %v804_v37 = vld [vmem:[%s5104_s0 + $0x8f8] sm:$0xff]  ;;  %v835_v38 = vld [vmem:[%s5104_s0 + $0x9f0] sm:$0xff] }
 0x16a   : > { %3872 = vmatprep.subr.bf16.mxu1 %v3871_v50  ;;  %v3923_v50 = vpack.c.bf16 %v826_v41, %v825_v40  ;;  %v836_v39 = vld [vmem:[%s5104_s0 + $0x9f8] sm:$0xff]  ;;  %v3941_v41 = vpack.c.bf16 %v818_v35, %v817_v33  ;;  %v875_v33 = vld [vmem:[%s5104_s0 + $0xb30] sm:$0xff] }
 0x16b   : > { %v876_v35 = vld [vmem:[%s5104_s0 + $0xb38] sm:$0xff] }
 0x16c   : > { %3842 = vmatpush3.bf16.msra.mxu0 %v3841_v56  ;;  %v3893_v56 = vpack.c.bf16 %v778_v48, %v777_v47  ;;  %v820_v47 = vld [vmem:[%s5104_s0 + $0x978] sm:$0xff]  ;;  %v853_v48 = vld [vmem:[%s5104_s0 + $0xa80] sm:$0xff] }
 0x16d   : > { %3874 = vmatpush3.bf16.msra.mxu1 %v3873_v57  ;;  %3844 = vmatprep.subr.bf16.mxu0 %v3843_v58  ;;  %v3925_v57 = vpack.c.bf16 %v810_v51, %v809_v49  ;;  %v3895_v58 = vpack.c.bf16 %v796_v53, %v795_v52  ;;  %v854_v49 = vld [vmem:[%s5104_s0 + $0xa88] sm:$0xff] }
 0x16e   : > { %3876 = vmatprep.subr.bf16.mxu1 %v3875_v62  ;;  %v3927_v62 = vpack.c.bf16 %v828_v55, %v827_v54  ;;  %v886_v51 = vld [vmem:[%s5104_s0 + $0xb88] sm:$0xff]  ;;  %v3947_v54 = vpack.c.bf16 %v854_v49, %v853_v48  ;;  %v837_v55 = vld [vmem:[%s5104_s0 + $0xa00] sm:$0xff]  ;;  %v863_v48 = vld [vmem:[%s5104_s0 + $0xad0] sm:$0xff] }
 0x16f   : > { %v864_v49 = vld [vmem:[%s5104_s0 + $0xad8] sm:$0xff] }
 0x170   : > { %3846 = vmatpush3.bf16.msra.mxu0 %v3845_v4  ;;  %v3897_v4 = vpack.c.bf16 %v780_v60, %v779_v59  ;;  %v870_v59 = vld [vmem:[%s5104_s0 + $0xb08] sm:$0xff]  ;;  %v855_v60 = vld [vmem:[%s5104_s0 + $0xa90] sm:$0xff] }
 0x171   : > { %3878 = vmatpush3.bf16.msra.mxu1 %v3877_v5  ;;  %3848 = vmatprep.subr.bf16.mxu0 %v3847_v6  ;;  %v3929_v5 = vpack.c.bf16 %v812_v63, %v811_v61  ;;  %v3899_v6 = vpack.c.bf16 %v798_v1, %v797_v0  ;;  %v856_v61 = vld [vmem:[%s5104_s0 + $0xa98] sm:$0xff]  ;;  %v501_v0 = vld [vmem:[#allocation2 + $0x80] sm:$0xff] }
 0x172   : > { %3880 = vmatprep.subr.bf16.mxu1 %v3879_v10  ;;  %v3931_v10 = vpack.c.bf16 %v830_v3, %v829_v2  ;;  %v888_v63 = vld [vmem:[%s5104_s0 + $0xb98] sm:$0xff] }
 0x173   : > { %v503_v1 = vld [vmem:[#allocation2 + $0x90] sm:$0xff] }
 0x174   : > { %3850 = vmatpush3.bf16.msra.mxu0 %v3849_v16  ;;  %v3901_v16 = vpack.c.bf16 %v782_v8, %v781_v7  ;;  %v871_v7 = vld [vmem:[%s5104_s0 + $0xb10] sm:$0xff] }
 0x175   : > { %3882 = vmatpush3.bf16.msra.mxu1 %v3881_v17  ;;  %3884 = vmatprep.subr.bf16.mxu0 %v3883_v18  ;;  %v3933_v17 = vpack.c.bf16 %v814_v11, %v813_v9  ;;  %v3903_v18 = vpack.c.bf16 %v800_v13, %v799_v12  ;;  %v872_v9 = vld [vmem:[%s5104_s0 + $0xb18] sm:$0xff]  ;;  %v858_v11 = vld [vmem:[%s5104_s0 + $0xaa8] sm:$0xff]  ;;  %v889_v12 = vld [vmem:[%s5104_s0 + $0xba0] sm:$0xff] }
 0x176   : > { %3916 = vmatprep.subr.bf16.mxu1 %v3915_v22  ;;  %v3935_v22 = vpack.c.bf16 %v832_v15, %v831_v14  ;;  %v890_v13 = vld [vmem:[%s5104_s0 + $0xba8] sm:$0xff]  ;;  %v506_v14 = vld [vmem:[#allocation2 + $0xa8] sm:$0xff] }
 0x177   : > { %1514 = vmatmul.mubr.f32.vlgmr.msra.gmra.mrb[6].mxu0 %v497_v28  ;;  %v3905_v28 = vpack.c.bf16 %v784_v20, %v783_v19  ;;  %v841_v19 = vld [vmem:[%s5104_s0 + $0xa20] sm:$0xff]  ;;  %v842_v20 = vld [vmem:[%s5104_s0 + $0xa28] sm:$0xff] }
 0x178   : > { %1584 = vmatmul.mubr.f32.vlgmr.msra.gmra.mrb[6].mxu1 %v499_v29  ;;  %3886 = vmatpush3.bf16.msra.mxu0 %v3885_v30  ;;  %v3937_v29 = vpack.c.bf16 %v816_v23, %v815_v21  ;;  %v3907_v30 = vpack.c.bf16 %v802_v25, %v801_v24  ;;  %v873_v21 = vld [vmem:[%s5104_s0 + $0xb20] sm:$0xff]  ;;  %v874_v23 = vld [vmem:[%s5104_s0 + $0xb28] sm:$0xff]  ;;  %v859_v24 = vld [vmem:[%s5104_s0 + $0xab0] sm:$0xff] }
 0x179   : > { %3918 = vmatpush3.bf16.msra.mxu1 %v3917_v31  ;;  %3888 = vmatprep.subr.bf16.mxu0 %v3887_v32  ;;  %v785_v31 = vld [vmem:[%s5104_s0 + $0x860] sm:$0xff]  ;;  %v786_v32 = vld [vmem:[%s5104_s0 + $0x868] sm:$0xff]  ;;  %v860_v25 = vld [vmem:[%s5104_s0 + $0xab8] sm:$0xff] }
 0x17a   : > { %3920 = vmatprep.subr.bf16.mxu1 %v3919_v36  ;;  %1653 = vmatprep.mubr.f32.mxu0 %v502_v42  ;;  %v803_v36 = vld [vmem:[%s5104_s0 + $0x8f0] sm:$0xff]  ;;  %v3909_v40 = vpack.c.bf16 %v786_v32, %v785_v31  ;;  %v844_v32 = vld [vmem:[%s5104_s0 + $0xa38] sm:$0xff] }
 0x17b   : > { %1723 = vmatprep.mubr.f32.mxu1 %v504_v44  ;;  %v3911_v42 = vpack.c.bf16 %v804_v37, %v803_v36  ;;  %v788_v44 = vld [vmem:[%s5104_s0 + $0x878] sm:$0xff]  ;;  %v843_v31 = vld [vmem:[%s5104_s0 + $0xa30] sm:$0xff]  ;;  %v861_v36 = vld [vmem:[%s5104_s0 + $0xac0] sm:$0xff] }
 0x17c   : > { %3890 = vmatpush3.bf16.msra.mxu0 %v3889_v43  ;;  %v787_v43 = vld [vmem:[%s5104_s0 + $0x870] sm:$0xff]  ;;  %v862_v37 = vld [vmem:[%s5104_s0 + $0xac8] sm:$0xff] }
 0x17d   : > { %3922 = vmatpush3.bf16.msra.mxu1 %v3921_v45  ;;  %3892 = vmatprep.subr.bf16.mxu0 %v3891_v46  ;;  %v819_v45 = vld [vmem:[%s5104_s0 + $0x970] sm:$0xff]  ;;  %v3943_v46 = vpack.c.bf16 %v836_v39, %v835_v38  ;;  %v3913_v52 = vpack.c.bf16 %v788_v44, %v787_v43  ;;  %v893_v38 = vld [vmem:[%s5104_s0 + $0xbc0] sm:$0xff]  ;;  %v894_v39 = vld [vmem:[%s5104_s0 + $0xbc8] sm:$0xff] }
 0x17e   : > { %3924 = vmatprep.subr.bf16.mxu1 %v3923_v50  ;;  %v885_v50 = vld [vmem:[%s5104_s0 + $0xb80] sm:$0xff]  ;;  %v3945_v53 = vpack.c.bf16 %v820_v47, %v819_v45  ;;  %v846_v44 = vld [vmem:[%s5104_s0 + $0xa48] sm:$0xff] }
 0x17f   : > { %v845_v43 = vld [vmem:[%s5104_s0 + $0xa40] sm:$0xff]  ;;  %v878_v47 = vld [vmem:[%s5104_s0 + $0xb48] sm:$0xff] }
 0x180   : > { %3894 = vmatpush3.bf16.msra.mxu0 %v3893_v56  ;;  %v838_v56 = vld [vmem:[%s5104_s0 + $0xa08] sm:$0xff]  ;;  %v877_v45 = vld [vmem:[%s5104_s0 + $0xb40] sm:$0xff] }
 0x181   : > { %3926 = vmatpush3.bf16.msra.mxu1 %v3925_v57  ;;  %3896 = vmatprep.subr.bf16.mxu0 %v3895_v58  ;;  %v869_v57 = vld [vmem:[%s5104_s0 + $0xb00] sm:$0xff]  ;;  %v3979_v58 = vpack.c.bf16 %v886_v51, %v885_v50  ;;  %v3949_v2 = vpack.c.bf16 %v838_v56, %v837_v55  ;;  %v895_v50 = vld [vmem:[%s5104_s0 + $0xbd0] sm:$0xff]  ;;  %v896_v51 = vld [vmem:[%s5104_s0 + $0xbd8] sm:$0xff] }
 0x182   : > { %3928 = vmatprep.subr.bf16.mxu1 %v3927_v62  ;;  %v887_v62 = vld [vmem:[%s5104_s0 + $0xb90] sm:$0xff]  ;;  %v3981_v3 = vpack.c.bf16 %v870_v59, %v869_v57  ;;  %v848_v56 = vld [vmem:[%s5104_s0 + $0xa58] sm:$0xff] }
 0x183   : > { %v3983_v8 = vpack.c.bf16 %v888_v63, %v887_v62  ;;  %v847_v55 = vld [vmem:[%s5104_s0 + $0xa50] sm:$0xff]  ;;  %v880_v59 = vld [vmem:[%s5104_s0 + $0xb58] sm:$0xff]  ;;  %v897_v62 = vld [vmem:[%s5104_s0 + $0xbe0] sm:$0xff] }
 0x184   : > { %3898 = vmatpush3.bf16.msra.mxu0 %v3897_v4  ;;  %v3951_v4 = vpack.c.bf16 %v856_v61, %v855_v60  ;;  %v879_v57 = vld [vmem:[%s5104_s0 + $0xb50] sm:$0xff]  ;;  %v865_v60 = vld [vmem:[%s5104_s0 + $0xae0] sm:$0xff]  ;;  %v866_v61 = vld [vmem:[%s5104_s0 + $0xae8] sm:$0xff] }
 0x185   : > { %3930 = vmatpush3.bf16.msra.mxu1 %v3929_v5  ;;  %3900 = vmatprep.subr.bf16.mxu0 %v3899_v6  ;;  %v839_v5 = vld [vmem:[%s5104_s0 + $0xa10] sm:$0xff]  ;;  %v840_v6 = vld [vmem:[%s5104_s0 + $0xa18] sm:$0xff]  ;;  %v898_v63 = vld [vmem:[%s5104_s0 + $0xbe8] sm:$0xff] }
 0x186   : > { %3932 = vmatprep.subr.bf16.mxu1 %v3931_v10  ;;  %v857_v10 = vld [vmem:[%s5104_s0 + $0xaa0] sm:$0xff]  ;;  %v3953_v15 = vpack.c.bf16 %v840_v6, %v839_v5  ;;  %v4003_v6 = vpack.c.bf16 %v898_v63, %v897_v62  ;;  %v955_v62 = vld [vmem:[%s5104_s0 + $0xdb0] sm:$0xff]  ;;  %v956_v63 = vld [vmem:[%s5104_s0 + $0xdb8] sm:$0xff] }
 0x187   : > { %v881_v5 = vld [vmem:[%s5104_s0 + $0xb60] sm:$0xff] }
 0x188   : > { %3902 = vmatpush3.bf16.msra.mxu0 %v3901_v16  ;;  %v508_v16 = vld [vmem:[#allocation2 + $0xb8] sm:$0xff] }
 0x189   : > { %3934 = vmatpush3.bf16.msra.mxu1 %v3933_v17  ;;  %3904 = vmatprep.subr.bf16.mxu0 %v3903_v18  ;;  %v3985_v17 = vpack.c.bf16 %v872_v9, %v871_v7  ;;  %v3955_v18 = vpack.c.bf16 %v858_v11, %v857_v10  ;;  %v882_v7 = vld [vmem:[%s5104_s0 + $0xb68] sm:$0xff]  ;;  %v868_v9 = vld [vmem:[%s5104_s0 + $0xaf8] sm:$0xff]  ;;  %v899_v10 = vld [vmem:[%s5104_s0 + $0xbf0] sm:$0xff] }
 0x18a   : > { %3936 = vmatprep.subr.bf16.mxu1 %v3935_v22  ;;  %v3987_v22 = vpack.c.bf16 %v890_v13, %v889_v12  ;;  %v900_v11 = vld [vmem:[%s5104_s0 + $0xbf8] sm:$0xff]  ;;  %v4005_v13 = vpack.c.bf16 %v882_v7, %v881_v5  ;;  %v939_v5 = vld [vmem:[%s5104_s0 + $0xd30] sm:$0xff] }
 0x18b   : > { %v940_v7 = vld [vmem:[%s5104_s0 + $0xd38] sm:$0xff] }
 0x18c   : > { %3906 = vmatpush3.bf16.msra.mxu0 %v3905_v28  ;;  %v3957_v28 = vpack.c.bf16 %v842_v20, %v841_v19  ;;  %v884_v19 = vld [vmem:[%s5104_s0 + $0xb78] sm:$0xff]  ;;  %v917_v20 = vld [vmem:[%s5104_s0 + $0xc80] sm:$0xff] }
 0x18d   : > { %3938 = vmatpush3.bf16.msra.mxu1 %v3937_v29  ;;  %3908 = vmatprep.subr.bf16.mxu0 %v3907_v30  ;;  %v3989_v29 = vpack.c.bf16 %v874_v23, %v873_v21  ;;  %v3959_v30 = vpack.c.bf16 %v860_v25, %v859_v24  ;;  %v918_v21 = vld [vmem:[%s5104_s0 + $0xc88] sm:$0xff] }
 0x18e   : > { %3940 = vmatprep.subr.bf16.mxu1 %v3939_v34  ;;  %v3991_v34 = vpack.c.bf16 %v892_v27, %v891_v26  ;;  %v950_v23 = vld [vmem:[%s5104_s0 + $0xd88] sm:$0xff]  ;;  %v4011_v26 = vpack.c.bf16 %v918_v21, %v917_v20  ;;  %v901_v27 = vld [vmem:[%s5104_s0 + $0xc00] sm:$0xff]  ;;  %v927_v20 = vld [vmem:[%s5104_s0 + $0xcd0] sm:$0xff] }
 0x18f   : > { %v928_v21 = vld [vmem:[%s5104_s0 + $0xcd8] sm:$0xff] }
 0x190   : > { %3910 = vmatpush3.bf16.msra.mxu0 %v3909_v40  ;;  %v3961_v40 = vpack.c.bf16 %v844_v32, %v843_v31  ;;  %v934_v31 = vld [vmem:[%s5104_s0 + $0xd08] sm:$0xff]  ;;  %v919_v32 = vld [vmem:[%s5104_s0 + $0xc90] sm:$0xff] }
 0x191   : > { %3942 = vmatpush3.bf16.msra.mxu1 %v3941_v41  ;;  %3912 = vmatprep.subr.bf16.mxu0 %v3911_v42  ;;  %v3993_v41 = vpack.c.bf16 %v876_v35, %v875_v33  ;;  %v3963_v42 = vpack.c.bf16 %v862_v37, %v861_v36  ;;  %v920_v33 = vld [vmem:[%s5104_s0 + $0xc98] sm:$0xff]  ;;  %v505_v36 = vld [vmem:[#allocation2 + $0xa0] sm:$0xff] }
 0x192   : > { %3944 = vmatprep.subr.bf16.mxu1 %v3943_v46  ;;  %v3995_v46 = vpack.c.bf16 %v894_v39, %v893_v38  ;;  %v952_v35 = vld [vmem:[%s5104_s0 + $0xd98] sm:$0xff] }
 0x193   : > { %v507_v37 = vld [vmem:[#allocation2 + $0xb0] sm:$0xff] }
 0x194   : > { %3914 = vmatpush3.bf16.msra.mxu0 %v3913_v52  ;;  %v3965_v52 = vpack.c.bf16 %v846_v44, %v845_v43  ;;  %v935_v43 = vld [vmem:[%s5104_s0 + $0xd10] sm:$0xff] }
 0x195   : > { %3946 = vmatpush3.bf16.msra.mxu1 %v3945_v53  ;;  %3948 = vmatprep.subr.bf16.mxu0 %v3947_v54  ;;  %v3997_v53 = vpack.c.bf16 %v878_v47, %v877_v45  ;;  %v3967_v54 = vpack.c.bf16 %v864_v49, %v863_v48  ;;  %v936_v45 = vld [vmem:[%s5104_s0 + $0xd18] sm:$0xff]  ;;  %v922_v47 = vld [vmem:[%s5104_s0 + $0xca8] sm:$0xff]  ;;  %v953_v48 = vld [vmem:[%s5104_s0 + $0xda0] sm:$0xff] }
 0x196   : > { %3980 = vmatprep.subr.bf16.mxu1 %v3979_v58  ;;  %v3999_v58 = vpack.c.bf16 %v896_v51, %v895_v50  ;;  %v954_v49 = vld [vmem:[%s5104_s0 + $0xda8] sm:$0xff]  ;;  %v510_v50 = vld [vmem:[#allocation2 + $0xc8] sm:$0xff] }
 0x197   : > { %1654 = vmatmul.mubr.f32.vlgmr.msra.gmra.mrb[8].mxu0 %v501_v0  ;;  %v3969_v0 = vpack.c.bf16 %v848_v56, %v847_v55  ;;  %v905_v55 = vld [vmem:[%s5104_s0 + $0xc20] sm:$0xff]  ;;  %v906_v56 = vld [vmem:[%s5104_s0 + $0xc28] sm:$0xff] }
 0x198   : > { %1724 = vmatmul.mubr.f32.vlgmr.msra.gmra.mrb[8].mxu1 %v503_v1  ;;  %3950 = vmatpush3.bf16.msra.mxu0 %v3949_v2  ;;  %v4001_v1 = vpack.c.bf16 %v880_v59, %v879_v57  ;;  %v3971_v2 = vpack.c.bf16 %v866_v61, %v865_v60  ;;  %v937_v57 = vld [vmem:[%s5104_s0 + $0xd20] sm:$0xff]  ;;  %v938_v59 = vld [vmem:[%s5104_s0 + $0xd28] sm:$0xff]  ;;  %v923_v60 = vld [vmem:[%s5104_s0 + $0xcb0] sm:$0xff] }
 0x199   : > { %3982 = vmatpush3.bf16.msra.mxu1 %v3981_v3  ;;  %3952 = vmatprep.subr.bf16.mxu0 %v3951_v4  ;;  %v849_v3 = vld [vmem:[%s5104_s0 + $0xa60] sm:$0xff]  ;;  %v850_v4 = vld [vmem:[%s5104_s0 + $0xa68] sm:$0xff]  ;;  %v924_v61 = vld [vmem:[%s5104_s0 + $0xcb8] sm:$0xff] }
 0x19a   : > { %3984 = vmatprep.subr.bf16.mxu1 %v3983_v8  ;;  %1793 = vmatprep.mubr.f32.mxu0 %v506_v14  ;;  %v867_v8 = vld [vmem:[%s5104_s0 + $0xaf0] sm:$0xff]  ;;  %v3973_v12 = vpack.c.bf16 %v850_v4, %v849_v3  ;;  %v908_v4 = vld [vmem:[%s5104_s0 + $0xc38] sm:$0xff] }
 0x19b   : > { %1863 = vmatprep.mubr.f32.mxu1 %v508_v16  ;;  %v3975_v14 = vpack.c.bf16 %v868_v9, %v867_v8  ;;  %v852_v16 = vld [vmem:[%s5104_s0 + $0xa78] sm:$0xff]  ;;  %v907_v3 = vld [vmem:[%s5104_s0 + $0xc30] sm:$0xff]  ;;  %v925_v8 = vld [vmem:[%s5104_s0 + $0xcc0] sm:$0xff] }
 0x19c   : > { %3954 = vmatpush3.bf16.msra.mxu0 %v3953_v15  ;;  %v851_v15 = vld [vmem:[%s5104_s0 + $0xa70] sm:$0xff]  ;;  %v926_v9 = vld [vmem:[%s5104_s0 + $0xcc8] sm:$0xff] }
 0x19d   : > { %3986 = vmatpush3.bf16.msra.mxu1 %v3985_v17  ;;  %3956 = vmatprep.subr.bf16.mxu0 %v3955_v18  ;;  %v883_v17 = vld [vmem:[%s5104_s0 + $0xb70] sm:$0xff]  ;;  %v4007_v18 = vpack.c.bf16 %v900_v11, %v899_v10  ;;  %v3977_v24 = vpack.c.bf16 %v852_v16, %v851_v15  ;;  %v957_v10 = vld [vmem:[%s5104_s0 + $0xdc0] sm:$0xff]  ;;  %v958_v11 = vld [vmem:[%s5104_s0 + $0xdc8] sm:$0xff] }
 0x19e   : > { %3988 = vmatprep.subr.bf16.mxu1 %v3987_v22  ;;  %v949_v22 = vld [vmem:[%s5104_s0 + $0xd80] sm:$0xff]  ;;  %v4009_v25 = vpack.c.bf16 %v884_v19, %v883_v17  ;;  %v910_v16 = vld [vmem:[%s5104_s0 + $0xc48] sm:$0xff] }
 0x19f   : > { %v909_v15 = vld [vmem:[%s5104_s0 + $0xc40] sm:$0xff]  ;;  %v942_v19 = vld [vmem:[%s5104_s0 + $0xd48] sm:$0xff] }
 0x1a0   : > { %3958 = vmatpush3.bf16.msra.mxu0 %v3957_v28  ;;  %v902_v28 = vld [vmem:[%s5104_s0 + $0xc08] sm:$0xff]  ;;  %v941_v17 = vld [vmem:[%s5104_s0 + $0xd40] sm:$0xff] }
 0x1a1   : > { %3990 = vmatpush3.bf16.msra.mxu1 %v3989_v29  ;;  %3960 = vmatprep.subr.bf16.mxu0 %v3959_v30  ;;  %v933_v29 = vld [vmem:[%s5104_s0 + $0xd00] sm:$0xff]  ;;  %v4043_v30 = vpack.c.bf16 %v950_v23, %v949_v22  ;;  %v4013_v38 = vpack.c.bf16 %v902_v28, %v901_v27  ;;  %v959_v22 = vld [vmem:[%s5104_s0 + $0xdd0] sm:$0xff]  ;;  %v960_v23 = vld [vmem:[%s5104_s0 + $0xdd8] sm:$0xff] }
 0x1a2   : > { %3992 = vmatprep.subr.bf16.mxu1 %v3991_v34  ;;  %v951_v34 = vld [vmem:[%s5104_s0 + $0xd90] sm:$0xff]  ;;  %v4045_v39 = vpack.c.bf16 %v934_v31, %v933_v29  ;;  %v912_v28 = vld [vmem:[%s5104_s0 + $0xc58] sm:$0xff] }
 0x1a3   : > { %v4047_v44 = vpack.c.bf16 %v952_v35, %v951_v34  ;;  %v911_v27 = vld [vmem:[%s5104_s0 + $0xc50] sm:$0xff]  ;;  %v944_v31 = vld [vmem:[%s5104_s0 + $0xd58] sm:$0xff]  ;;  %v961_v34 = vld [vmem:[%s5104_s0 + $0xde0] sm:$0xff] }
 0x1a4   : > { %3962 = vmatpush3.bf16.msra.mxu0 %v3961_v40  ;;  %v4015_v40 = vpack.c.bf16 %v920_v33, %v919_v32  ;;  %v943_v29 = vld [vmem:[%s5104_s0 + $0xd50] sm:$0xff]  ;;  %v929_v32 = vld [vmem:[%s5104_s0 + $0xce0] sm:$0xff]  ;;  %v930_v33 = vld [vmem:[%s5104_s0 + $0xce8] sm:$0xff] }
 0x1a5   : > { %3994 = vmatpush3.bf16.msra.mxu1 %v3993_v41  ;;  %3964 = vmatprep.subr.bf16.mxu0 %v3963_v42  ;;  %v903_v41 = vld [vmem:[%s5104_s0 + $0xc10] sm:$0xff]  ;;  %v904_v42 = vld [vmem:[%s5104_s0 + $0xc18] sm:$0xff]  ;;  %v962_v35 = vld [vmem:[%s5104_s0 + $0xde8] sm:$0xff] }
 0x1a6   : > { %3996 = vmatprep.subr.bf16.mxu1 %v3995_v46  ;;  %v921_v46 = vld [vmem:[%s5104_s0 + $0xca0] sm:$0xff]  ;;  %v4017_v51 = vpack.c.bf16 %v904_v42, %v903_v41  ;;  %v4067_v42 = vpack.c.bf16 %v962_v35, %v961_v34  ;;  %v1019_v34 = vld [vmem:[%s5104_s0 + $0xfb0] sm:$0xff]  ;;  %v1020_v35 = vld [vmem:[%s5104_s0 + $0xfb8] sm:$0xff] }
 0x1a7   : > { %v945_v41 = vld [vmem:[%s5104_s0 + $0xd60] sm:$0xff] }
 0x1a8   : > { %3966 = vmatpush3.bf16.msra.mxu0 %v3965_v52  ;;  %v512_v52 = vld [vmem:[#allocation2 + $0xd8] sm:$0xff] }
 0x1a9   : > { %3998 = vmatpush3.bf16.msra.mxu1 %v3997_v53  ;;  %3968 = vmatprep.subr.bf16.mxu0 %v3967_v54  ;;  %v4049_v53 = vpack.c.bf16 %v936_v45, %v935_v43  ;;  %v4019_v54 = vpack.c.bf16 %v922_v47, %v921_v46  ;;  %v946_v43 = vld [vmem:[%s5104_s0 + $0xd68] sm:$0xff]  ;;  %v932_v45 = vld [vmem:[%s5104_s0 + $0xcf8] sm:$0xff]  ;;  %v963_v46 = vld [vmem:[%s5104_s0 + $0xdf0] sm:$0xff] }
 0x1aa   : > { %4000 = vmatprep.subr.bf16.mxu1 %v3999_v58  ;;  %v4051_v58 = vpack.c.bf16 %v954_v49, %v953_v48  ;;  %v964_v47 = vld [vmem:[%s5104_s0 + $0xdf8] sm:$0xff]  ;;  %v4069_v49 = vpack.c.bf16 %v946_v43, %v945_v41  ;;  %v1003_v41 = vld [vmem:[%s5104_s0 + $0xf30] sm:$0xff] }
 0x1ab   : > { %v1004_v43 = vld [vmem:[%s5104_s0 + $0xf38] sm:$0xff] }
 0x1ac   : > { %3970 = vmatpush3.bf16.msra.mxu0 %v3969_v0  ;;  %v4021_v0 = vpack.c.bf16 %v906_v56, %v905_v55  ;;  %v948_v55 = vld [vmem:[%s5104_s0 + $0xd78] sm:$0xff]  ;;  %v981_v56 = vld [vmem:[%s5104_s0 + $0xe80] sm:$0xff] }
 0x1ad   : > { %4002 = vmatpush3.bf16.msra.mxu1 %v4001_v1  ;;  %3972 = vmatprep.subr.bf16.mxu0 %v3971_v2  ;;  %v4053_v1 = vpack.c.bf16 %v938_v59, %v937_v57  ;;  %v4023_v2 = vpack.c.bf16 %v924_v61, %v923_v60  ;;  %v982_v57 = vld [vmem:[%s5104_s0 + $0xe88] sm:$0xff] }
 0x1ae   : > { %4004 = vmatprep.subr.bf16.mxu1 %v4003_v6  ;;  %v4055_v6 = vpack.c.bf16 %v956_v63, %v955_v62  ;;  %v1014_v59 = vld [vmem:[%s5104_s0 + $0xf88] sm:$0xff]  ;;  %v4075_v62 = vpack.c.bf16 %v982_v57, %v981_v56  ;;  %v965_v63 = vld [vmem:[%s5104_s0 + $0xe00] sm:$0xff]  ;;  %v991_v56 = vld [vmem:[%s5104_s0 + $0xed0] sm:$0xff] }
 0x1af   : > { %v992_v57 = vld [vmem:[%s5104_s0 + $0xed8] sm:$0xff] }
 0x1b0   : > { %3974 = vmatpush3.bf16.msra.mxu0 %v3973_v12  ;;  %v4025_v12 = vpack.c.bf16 %v908_v4, %v907_v3  ;;  %v998_v3 = vld [vmem:[%s5104_s0 + $0xf08] sm:$0xff]  ;;  %v983_v4 = vld [vmem:[%s5104_s0 + $0xe90] sm:$0xff] }
 0x1b1   : > { %4006 = vmatpush3.bf16.msra.mxu1 %v4005_v13  ;;  %3976 = vmatprep.subr.bf16.mxu0 %v3975_v14  ;;  %v4057_v13 = vpack.c.bf16 %v940_v7, %v939_v5  ;;  %v4027_v14 = vpack.c.bf16 %v926_v9, %v925_v8  ;;  %v984_v5 = vld [vmem:[%s5104_s0 + $0xe98] sm:$0xff]  ;;  %v509_v8 = vld [vmem:[#allocation2 + $0xc0] sm:$0xff] }
 0x1b2   : > { %4008 = vmatprep.subr.bf16.mxu1 %v4007_v18  ;;  %v4059_v18 = vpack.c.bf16 %v958_v11, %v957_v10  ;;  %v1016_v7 = vld [vmem:[%s5104_s0 + $0xf98] sm:$0xff] }
 0x1b3   : > { %v511_v9 = vld [vmem:[#allocation2 + $0xd0] sm:$0xff] }
 0x1b4   : > { %3978 = vmatpush3.bf16.msra.mxu0 %v3977_v24  ;;  %v4029_v24 = vpack.c.bf16 %v910_v16, %v909_v15  ;;  %v999_v15 = vld [vmem:[%s5104_s0 + $0xf10] sm:$0xff] }
 0x1b5   : > { %4010 = vmatpush3.bf16.msra.mxu1 %v4009_v25  ;;  %4012 = vmatprep.subr.bf16.mxu0 %v4011_v26  ;;  %v4061_v25 = vpack.c.bf16 %v942_v19, %v941_v17  ;;  %v4031_v26 = vpack.c.bf16 %v928_v21, %v927_v20  ;;  %v1000_v17 = vld [vmem:[%s5104_s0 + $0xf18] sm:$0xff]  ;;  %v986_v19 = vld [vmem:[%s5104_s0 + $0xea8] sm:$0xff]  ;;  %v1017_v20 = vld [vmem:[%s5104_s0 + $0xfa0] sm:$0xff] }
 0x1b6   : > { %4044 = vmatprep.subr.bf16.mxu1 %v4043_v30  ;;  %v4063_v30 = vpack.c.bf16 %v960_v23, %v959_v22  ;;  %v1018_v21 = vld [vmem:[%s5104_s0 + $0xfa8] sm:$0xff]  ;;  %v514_v22 = vld [vmem:[#allocation2 + $0xe8] sm:$0xff] }
 0x1b7   : > { %1794 = vmatmul.mubr.f32.vlgmr.msra.gmra.mrb[10].mxu0 %v505_v36  ;;  %v4033_v36 = vpack.c.bf16 %v912_v28, %v911_v27  ;;  %v969_v27 = vld [vmem:[%s5104_s0 + $0xe20] sm:$0xff]  ;;  %v970_v28 = vld [vmem:[%s5104_s0 + $0xe28] sm:$0xff] }
 0x1b8   : > { %1864 = vmatmul.mubr.f32.vlgmr.msra.gmra.mrb[10].mxu1 %v507_v37  ;;  %4014 = vmatpush3.bf16.msra.mxu0 %v4013_v38  ;;  %v4065_v37 = vpack.c.bf16 %v944_v31, %v943_v29  ;;  %v4035_v38 = vpack.c.bf16 %v930_v33, %v929_v32  ;;  %v1001_v29 = vld [vmem:[%s5104_s0 + $0xf20] sm:$0xff]  ;;  %v1002_v31 = vld [vmem:[%s5104_s0 + $0xf28] sm:$0xff]  ;;  %v987_v32 = vld [vmem:[%s5104_s0 + $0xeb0] sm:$0xff] }
 0x1b9   : > { %4046 = vmatpush3.bf16.msra.mxu1 %v4045_v39  ;;  %4016 = vmatprep.subr.bf16.mxu0 %v4015_v40  ;;  %v913_v39 = vld [vmem:[%s5104_s0 + $0xc60] sm:$0xff]  ;;  %v914_v40 = vld [vmem:[%s5104_s0 + $0xc68] sm:$0xff]  ;;  %v988_v33 = vld [vmem:[%s5104_s0 + $0xeb8] sm:$0xff] }
 0x1ba   : > { %4048 = vmatprep.subr.bf16.mxu1 %v4047_v44  ;;  %1933 = vmatprep.mubr.f32.mxu0 %v510_v50  ;;  %v931_v44 = vld [vmem:[%s5104_s0 + $0xcf0] sm:$0xff]  ;;  %v4037_v48 = vpack.c.bf16 %v914_v40, %v913_v39  ;;  %v972_v40 = vld [vmem:[%s5104_s0 + $0xe38] sm:$0xff] }
 0x1bb   : > { %2003 = vmatprep.mubr.f32.mxu1 %v512_v52  ;;  %v4039_v50 = vpack.c.bf16 %v932_v45, %v931_v44  ;;  %v916_v52 = vld [vmem:[%s5104_s0 + $0xc78] sm:$0xff]  ;;  %v971_v39 = vld [vmem:[%s5104_s0 + $0xe30] sm:$0xff]  ;;  %v989_v44 = vld [vmem:[%s5104_s0 + $0xec0] sm:$0xff] }
 0x1bc   : > { %4018 = vmatpush3.bf16.msra.mxu0 %v4017_v51  ;;  %v915_v51 = vld [vmem:[%s5104_s0 + $0xc70] sm:$0xff]  ;;  %v990_v45 = vld [vmem:[%s5104_s0 + $0xec8] sm:$0xff] }
 0x1bd   : > { %4050 = vmatpush3.bf16.msra.mxu1 %v4049_v53  ;;  %4020 = vmatprep.subr.bf16.mxu0 %v4019_v54  ;;  %v947_v53 = vld [vmem:[%s5104_s0 + $0xd70] sm:$0xff]  ;;  %v4071_v54 = vpack.c.bf16 %v964_v47, %v963_v46  ;;  %v4041_v60 = vpack.c.bf16 %v916_v52, %v915_v51  ;;  %v1021_v46 = vld [vmem:[%s5104_s0 + $0xfc0] sm:$0xff]  ;;  %v1022_v47 = vld [vmem:[%s5104_s0 + $0xfc8] sm:$0xff] }
 0x1be   : > { %4052 = vmatprep.subr.bf16.mxu1 %v4051_v58  ;;  %v1013_v58 = vld [vmem:[%s5104_s0 + $0xf80] sm:$0xff]  ;;  %v4073_v61 = vpack.c.bf16 %v948_v55, %v947_v53  ;;  %v974_v52 = vld [vmem:[%s5104_s0 + $0xe48] sm:$0xff] }
 0x1bf   : > { %v973_v51 = vld [vmem:[%s5104_s0 + $0xe40] sm:$0xff]  ;;  %v1006_v55 = vld [vmem:[%s5104_s0 + $0xf48] sm:$0xff] }
 0x1c0   : > { %4022 = vmatpush3.bf16.msra.mxu0 %v4021_v0  ;;  %v966_v0 = vld [vmem:[%s5104_s0 + $0xe08] sm:$0xff]  ;;  %v1005_v53 = vld [vmem:[%s5104_s0 + $0xf40] sm:$0xff] }
 0x1c1   : > { %4054 = vmatpush3.bf16.msra.mxu1 %v4053_v1  ;;  %4024 = vmatprep.subr.bf16.mxu0 %v4023_v2  ;;  %v997_v1 = vld [vmem:[%s5104_s0 + $0xf00] sm:$0xff]  ;;  %v4107_v2 = vpack.c.bf16 %v1014_v59, %v1013_v58  ;;  %v4077_v10 = vpack.c.bf16 %v966_v0, %v965_v63  ;;  %v1023_v58 = vld [vmem:[%s5104_s0 + $0xfd0] sm:$0xff]  ;;  %v1024_v59 = vld [vmem:[%s5104_s0 + $0xfd8] sm:$0xff] }
 0x1c2   : > { %4056 = vmatprep.subr.bf16.mxu1 %v4055_v6  ;;  %v1015_v6 = vld [vmem:[%s5104_s0 + $0xf90] sm:$0xff]  ;;  %v4109_v11 = vpack.c.bf16 %v998_v3, %v997_v1  ;;  %v976_v0 = vld [vmem:[%s5104_s0 + $0xe58] sm:$0xff] }
 0x1c3   : > { %v4111_v16 = vpack.c.bf16 %v1016_v7, %v1015_v6  ;;  %v975_v63 = vld [vmem:[%s5104_s0 + $0xe50] sm:$0xff]  ;;  %v1008_v3 = vld [vmem:[%s5104_s0 + $0xf58] sm:$0xff]  ;;  %v1025_v6 = vld [vmem:[%s5104_s0 + $0xfe0] sm:$0xff] }
 0x1c4   : > { %4026 = vmatpush3.bf16.msra.mxu0 %v4025_v12  ;;  %v4079_v12 = vpack.c.bf16 %v984_v5, %v983_v4  ;;  %v1007_v1 = vld [vmem:[%s5104_s0 + $0xf50] sm:$0xff]  ;;  %v993_v4 = vld [vmem:[%s5104_s0 + $0xee0] sm:$0xff]  ;;  %v994_v5 = vld [vmem:[%s5104_s0 + $0xee8] sm:$0xff] }
 0x1c5   : > { %4058 = vmatpush3.bf16.msra.mxu1 %v4057_v13  ;;  %4028 = vmatprep.subr.bf16.mxu0 %v4027_v14  ;;  %v967_v13 = vld [vmem:[%s5104_s0 + $0xe10] sm:$0xff]  ;;  %v968_v14 = vld [vmem:[%s5104_s0 + $0xe18] sm:$0xff]  ;;  %v1026_v7 = vld [vmem:[%s5104_s0 + $0xfe8] sm:$0xff] }
 0x1c6   : > { %4060 = vmatprep.subr.bf16.mxu1 %v4059_v18  ;;  %v985_v18 = vld [vmem:[%s5104_s0 + $0xea0] sm:$0xff]  ;;  %v4081_v23 = vpack.c.bf16 %v968_v14, %v967_v13 }
 0x1c7   : > { %v1009_v13 = vld [vmem:[%s5104_s0 + $0xf60] sm:$0xff] }
 0x1c8   : > { %4030 = vmatpush3.bf16.msra.mxu0 %v4029_v24  ;;  %v516_v24 = vld [vmem:[#allocation2 + $0xf8] sm:$0xff] }
 0x1c9   : > { %4062 = vmatpush3.bf16.msra.mxu1 %v4061_v25  ;;  %4032 = vmatprep.subr.bf16.mxu0 %v4031_v26  ;;  %v4113_v25 = vpack.c.bf16 %v1000_v17, %v999_v15  ;;  %v4083_v26 = vpack.c.bf16 %v986_v19, %v985_v18  ;;  %v4131_v15 = vpack.c.bf16 %v1026_v7, %v1025_v6  ;;  %v995_v17 = vld [vmem:[%s5104_s0 + $0xef0] sm:$0xff]  ;;  %v996_v18 = vld [vmem:[%s5104_s0 + $0xef8] sm:$0xff]  ;;  %v2166_v6 = vld [vmem:[%s5112_s22 + $0x20] sm:$0xff] }
 0x1ca   : > { %4064 = vmatprep.subr.bf16.mxu1 %v4063_v30  ;;  %v4115_v30 = vpack.c.bf16 %v1018_v21, %v1017_v20  ;;  %v1027_v21 = vld [vmem:[%s5104_s0 + $0xff0] sm:$0xff]  ;;  %v2167_v7 = vld [vmem:[%s5112_s22 + $0x28] sm:$0xff] }
 0x1cc   : > { %4034 = vmatpush3.bf16.msra.mxu0 %v4033_v36  ;;  %v4085_v36 = vpack.c.bf16 %v970_v28, %v969_v27  ;;  %v4103_v28 = vpack.c.bf16 %v996_v18, %v995_v17  ;;  %v2168_v18 = vld [vmem:[%s5112_s22 + $0x30] sm:$0xff] }
 0x1cd   : > { %4066 = vmatpush3.bf16.msra.mxu1 %v4065_v37  ;;  %4036 = vmatprep.subr.bf16.mxu0 %v4035_v38  ;;  %v4117_v37 = vpack.c.bf16 %v1002_v31, %v1001_v29  ;;  %v4087_v38 = vpack.c.bf16 %v988_v33, %v987_v32  ;;  %v979_v29 = vld [vmem:[%s5104_s0 + $0xe70] sm:$0xff]  ;;  %v1012_v33 = vld [vmem:[%s5104_s0 + $0xf78] sm:$0xff] }
 0x1ce   : > { %4068 = vmatprep.subr.bf16.mxu1 %v4067_v42  ;;  %v4119_v42 = vpack.c.bf16 %v1020_v35, %v1019_v34  ;;  %v1011_v31 = vld [vmem:[%s5104_s0 + $0xf70] sm:$0xff]  ;;  %v2178_v34 = vld [vmem:[%s5112_s22 + $0x80] sm:$0xff]  ;;  %v2179_v35 = vld [vmem:[%s5112_s22 + $0x88] sm:$0xff] }
 0x1d0   : > { %4038 = vmatpush3.bf16.msra.mxu0 %v4037_v48  ;;  %v4089_v48 = vpack.c.bf16 %v972_v40, %v971_v39  ;;  %v4137_v40 = vpack.c.bf16 %v1012_v33, %v1011_v31  ;;  %v2171_v31 = vld [vmem:[%s5112_s22 + $0x48] sm:$0xff] }
 0x1d1   : > { %4070 = vmatpush3.bf16.msra.mxu1 %v4069_v49  ;;  %4040 = vmatprep.subr.bf16.mxu0 %v4039_v50  ;;  %v4121_v49 = vpack.c.bf16 %v1004_v43, %v1003_v41  ;;  %v4091_v50 = vpack.c.bf16 %v990_v45, %v989_v44  ;;  %v4139_v41 = vpack.c.bf16 %v2179_v35, %v2178_v34  ;;  %v2163_v43 = vld [vmem:[%s5112_s22 + $0x8] sm:$0xff]  ;;  %v2194_v44 = vld [vmem:[%s5112_s22 + $0x100] sm:$0xff]  ;;  %v2188_v35 = vld [vmem:[%s5112_s22 + $0xd0] sm:$0xff] }
 0x1d2   : > { %4072 = vmatprep.subr.bf16.mxu1 %v4071_v54  ;;  %v4123_v54 = vpack.c.bf16 %v1022_v47, %v1021_v46  ;;  %v2195_v46 = vld [vmem:[%s5112_s22 + $0x108] sm:$0xff]  ;;  %v2180_v47 = vld [vmem:[%s5112_s22 + $0x90] sm:$0xff] }
 0x1d3   : > { %v2203_v34 = vld [vmem:[%s5112_s22 + $0x148] sm:$0xff] }
 0x1d4   : > { %4042 = vmatpush3.bf16.msra.mxu0 %v4041_v60  ;;  %v4093_v60 = vpack.c.bf16 %v974_v52, %v973_v51  ;;  %v513_v51 = vld [vmem:[#allocation2 + $0xe0] sm:$0xff]  ;;  %v515_v52 = vld [vmem:[#allocation2 + $0xf0] sm:$0xff] }
 0x1d5   : > { %4074 = vmatpush3.bf16.msra.mxu1 %v4073_v61  ;;  %4076 = vmatprep.subr.bf16.mxu0 %v4075_v62  ;;  %v4125_v61 = vpack.c.bf16 %v1006_v55, %v1005_v53  ;;  %v4095_v62 = vpack.c.bf16 %v992_v57, %v991_v56  ;;  %v2164_v56 = vld [vmem:[%s5112_s22 + $0x10] sm:$0xff]  ;;  %v2165_v57 = vld [vmem:[%s5112_s22 + $0x18] sm:$0xff] }
 0x1d6   : > { %4108 = vmatprep.subr.bf16.mxu1 %v4107_v2  ;;  %v4127_v2 = vpack.c.bf16 %v1024_v59, %v1023_v58  ;;  %v2196_v58 = vld [vmem:[%s5112_s22 + $0x110] sm:$0xff] }
 0x1d7   : > { %1934 = vmatmul.mubr.f32.vlgmr.msra.gmra.mrb[12].mxu0 %v509_v8  ;;  %v4097_v8 = vpack.c.bf16 %v976_v0, %v975_v63  ;;  %v2214_v63 = vld [vmem:[%s5112_s22 + $0x1a0] sm:$0xff]  ;;  %v2215_v0 = vld [vmem:[%s5112_s22 + $0x1a8] sm:$0xff] }
 0x1d8   : > { %2004 = vmatmul.mubr.f32.vlgmr.msra.gmra.mrb[12].mxu1 %v511_v9  ;;  %4078 = vmatpush3.bf16.msra.mxu0 %v4077_v10  ;;  %v4129_v9 = vpack.c.bf16 %v1008_v3, %v1007_v1  ;;  %v4099_v10 = vpack.c.bf16 %v994_v5, %v993_v4  ;;  %v2155_v1 = vld [vmem:[#allocation5 + $0x8] sm:$0xff]  ;;  %v2157_v3 = vld [vmem:[#allocation5 + $0x18] sm:$0xff] }
 0x1d9   : > { %4110 = vmatpush3.bf16.msra.mxu1 %v4109_v11  ;;  %4080 = vmatprep.subr.bf16.mxu0 %v4079_v12  ;;  %v977_v11 = vld [vmem:[%s5104_s0 + $0xe60] sm:$0xff]  ;;  %v978_v12 = vld [vmem:[%s5104_s0 + $0xe68] sm:$0xff] }
 0x1da   : > { %4112 = vmatprep.subr.bf16.mxu1 %v4111_v16  ;;  %2073 = vmatprep.mubr.f32.mxu0 %v514_v22  ;;  %v1010_v16 = vld [vmem:[%s5104_s0 + $0xf68] sm:$0xff]  ;;  %v1028_v22 = vld [vmem:[%s5104_s0 + $0xff8] sm:$0xff] }
 0x1db   : > { %2143 = vmatprep.mubr.f32.mxu1 %v516_v24  ;;  %v4133_v27 = vpack.c.bf16 %v1010_v16, %v1009_v13  ;;  %v4135_v32 = vpack.c.bf16 %v1028_v22, %v1027_v21  ;;  %v2216_v13 = vld [vmem:[%s5112_s22 + $0x1b0] sm:$0xff]  ;;  %v2201_v22 = vld [vmem:[%s5112_s22 + $0x138] sm:$0xff] }
 0x1dc   : > { %4082 = vmatpush3.bf16.msra.mxu0 %v4081_v23 }
 0x1dd   : > { %4114 = vmatpush3.bf16.msra.mxu1 %v4113_v25  ;;  %4084 = vmatprep.subr.bf16.mxu0 %v4083_v26  ;;  %v4101_v25 = vpack.c.bf16 %v978_v12, %v977_v11  ;;  %v2184_v11 = vld [vmem:[%s5112_s22 + $0xb0] sm:$0xff]  ;;  %v2185_v12 = vld [vmem:[%s5112_s22 + $0xb8] sm:$0xff] }
 0x1de   : > { %4116 = vmatprep.subr.bf16.mxu1 %v4115_v30  ;;  %v980_v30 = vld [vmem:[%s5104_s0 + $0xe78] sm:$0xff]  ;;  %v4151_v17 = vpack.c.bf16 %v2185_v12, %v2184_v11  ;;  %v2208_v11 = vld [vmem:[%s5112_s22 + $0x170] sm:$0xff] }
 0x1df   : > { %v4105_v39 = vpack.c.bf16 %v980_v30, %v979_v29  ;;  %v2170_v30 = vld [vmem:[%s5112_s22 + $0x40] sm:$0xff] }
 0x1e0   : > { %4086 = vmatpush3.bf16.msra.mxu0 %v4085_v36 }
 0x1e1   : > { %4118 = vmatpush3.bf16.msra.mxu1 %v4117_v37  ;;  %4088 = vmatprep.subr.bf16.mxu0 %v4087_v38  ;;  %v2210_v37 = vld [vmem:[%s5112_s22 + $0x180] sm:$0xff]  ;;  %v2211_v38 = vld [vmem:[%s5112_s22 + $0x188] sm:$0xff] }
 0x1e2   : > { %4120 = vmatprep.subr.bf16.mxu1 %v4119_v42  ;;  %v2162_v42 = vld [vmem:[%s5112_s22] sm:$0xff]  ;;  %v4171_v45 = vpack.c.bf16 %v2211_v38, %v2210_v37  ;;  %v2189_v37 = vld [vmem:[%s5112_s22 + $0xd8] sm:$0xff]  ;;  %v2220_v38 = vld [vmem:[%s5112_s22 + $0x1d0] sm:$0xff] }
 0x1e3   : > { %v4141_v53 = vpack.c.bf16 %v2163_v43, %v2162_v42  ;;  %v4159_v42 = vpack.c.bf16 %v2189_v37, %v2188_v35  ;;  %v2172_v43 = vld [vmem:[%s5112_s22 + $0x50] sm:$0xff] }
 0x1e4   : > { %4090 = vmatpush3.bf16.msra.mxu0 %v4089_v48  ;;  %v2181_v48 = vld [vmem:[%s5112_s22 + $0x98] sm:$0xff]  ;;  %v2228_v37 = vld [vmem:[%s5112_s22 + $0x210] sm:$0xff] }
 0x1e5   : > { %4122 = vmatpush3.bf16.msra.mxu1 %v4121_v49  ;;  %4092 = vmatprep.subr.bf16.mxu0 %v4091_v50  ;;  %v2212_v49 = vld [vmem:[%s5112_s22 + $0x190] sm:$0xff]  ;;  %v2213_v50 = vld [vmem:[%s5112_s22 + $0x198] sm:$0xff]  ;;  %v4143_v55 = vpack.c.bf16 %v2181_v48, %v2180_v47  ;;  %v2190_v48 = vld [vmem:[%s5112_s22 + $0xe0] sm:$0xff] }
 0x1e6   : > { %4124 = vmatprep.subr.bf16.mxu1 %v4123_v54  ;;  %v4173_v54 = vpack.c.bf16 %v2195_v46, %v2194_v44  ;;  %v4175_v59 = vpack.c.bf16 %v2213_v50, %v2212_v49  ;;  %v2173_v44 = vld [vmem:[%s5112_s22 + $0x58] sm:$0xff]  ;;  %v2191_v49 = vld [vmem:[%s5112_s22 + $0xe8] sm:$0xff]  ;;  %v2222_v50 = vld [vmem:[%s5112_s22 + $0x1e0] sm:$0xff] }
 0x1e7   : > { %v2205_v47 = vld [vmem:[%s5112_s22 + $0x158] sm:$0xff] }
 0x1e8   : > { %4094 = vmatpush3.bf16.msra.mxu0 %v4093_v60  ;;  %v2197_v60 = vld [vmem:[%s5112_s22 + $0x118] sm:$0xff] }
 0x1e9   : > { %4126 = vmatpush3.bf16.msra.mxu1 %v4125_v61  ;;  %4096 = vmatprep.subr.bf16.mxu0 %v4095_v62  ;;  %v2182_v61 = vld [vmem:[%s5112_s22 + $0xa0] sm:$0xff]  ;;  %v2183_v62 = vld [vmem:[%s5112_s22 + $0xa8] sm:$0xff]  ;;  %v4177_v4 = vpack.c.bf16 %v2197_v60, %v2196_v58 }
 0x1ea   : > { %v2931_v14 = vpop.f32.mrb[0].mxu0  ;;  %4128 = vmatprep.subr.bf16.mxu1 %v4127_v2  ;;  %v4145_v2 = vpack.c.bf16 %v2165_v57, %v2164_v56  ;;  %v4147_v5 = vpack.c.bf16 %v2183_v62, %v2182_v61  ;;  %v2175_v56 = vld [vmem:[%s5112_s22 + $0x68] sm:$0xff]  ;;  %v2206_v57 = vld [vmem:[%s5112_s22 + $0x160] sm:$0xff]  ;;  %v2192_v61 = vld [vmem:[%s5112_s22 + $0xf0] sm:$0xff] }
 0x1eb   : > { %v2966_v19 = vpop.f32.mrb[0].mxu1  ;;  %v2932_v20 = vpop.f32.mrb[1].mxu0  ;;  %v2207_v60 = vld [vmem:[%s5112_s22 + $0x168] sm:$0xff]  ;;  %v2193_v62 = vld [vmem:[%s5112_s22 + $0xf8] sm:$0xff] }
 0x1ec   : > { %v2933_v23 = vadd.f32 %v2932_v20, %v2931_v14  ;;  %v2967_v24 = vpop.f32.mrb[1].mxu1  ;;  %4098 = vmatpush3.bf16.msra.mxu0 %v4097_v8  ;;  %v2198_v8 = vld [vmem:[%s5112_s22 + $0x120] sm:$0xff]  ;;  %v2217_v14 = vld [vmem:[%s5112_s22 + $0x1b8] sm:$0xff]  ;;  %v2200_v20 = vld [vmem:[%s5112_s22 + $0x130] sm:$0xff] }
 0x1ed   : > { %v2968_v26 = vadd.f32 %v2967_v24, %v2966_v19  ;;  %4130 = vmatpush3.bf16.msra.mxu1 %v4129_v9  ;;  %4100 = vmatprep.subr.bf16.mxu0 %v4099_v10  ;;  %v4179_v9 = vpack.c.bf16 %v2215_v0, %v2214_v63  ;;  %v2199_v10 = vld [vmem:[%s5112_s22 + $0x128] sm:$0xff]  ;;  %v2169_v19 = vld [vmem:[%s5112_s22 + $0x38] sm:$0xff]  ;;  %v4183_v21 = vpack.c.bf16 %v2217_v14, %v2216_v13 }
 0x1ee   : > { %4132 = vmatprep.subr.bf16.mxu1 %v4131_v15  ;;  %v4149_v15 = vpack.c.bf16 %v2167_v7, %v2166_v6  ;;  %v4181_v16 = vpack.c.bf16 %v2199_v10, %v2198_v8  ;;  %v2187_v24 = vld [vmem:[%s5112_s22 + $0xc8] sm:$0xff]  ;;  %v4197_v7 = vpack.c.bf16 %v2207_v60, %v2206_v57  ;;  %v4167_v8 = vpack.c.bf16 %v2193_v62, %v2192_v61  ;;  %v2177_v10 = vld [vmem:[%s5112_s22 + $0x78] sm:$0xff] }
 0x1ef   : > { %v5635_v36 = vadd.f32 %v2968_v26, %v2933_v23  ;;  %v2186_v23 = vld [vmem:[%s5112_s22 + $0xc0] sm:$0xff]  ;;  %v2219_v26 = vld [vmem:[%s5112_s22 + $0x1c8] sm:$0xff]  ;;  %v2209_v14 = vld [vmem:[%s5112_s22 + $0x178] sm:$0xff] }
 0x1f0   : > { %4102 = vmatpush3.bf16.msra.mxu0 %v4101_v25  ;;  %v2218_v25 = vld [vmem:[%s5112_s22 + $0x1c0] sm:$0xff]  ;;  %v4155_v29 = vpack.c.bf16 %v2187_v24, %v2186_v23  ;;  %v2227_v23 = vld [vmem:[%s5112_s22 + $0x208] sm:$0xff]  ;;  %v2249_v57 = vld [vmem:[%s5112_s22 + $0x2b8] sm:$0xff] }
 0x1f1   : > { %4134 = vmatpush3.bf16.msra.mxu1 %v4133_v27  ;;  %4104 = vmatprep.subr.bf16.mxu0 %v4103_v28  ;;  %v4153_v27 = vpack.c.bf16 %v2169_v19, %v2168_v18  ;;  %v4185_v28 = vpack.c.bf16 %v2201_v22, %v2200_v20  ;;  %v4187_v33 = vpack.c.bf16 %v2219_v26, %v2218_v25  ;;  %v2275_v18 = vld [vmem:[%s5112_s22 + $0x388] sm:$0xff]  ;;  %v2226_v22 = vld [vmem:[%s5112_s22 + $0x200] sm:$0xff] }
 0x1f2   : > { %4136 = vmatprep.subr.bf16.mxu1 %v4135_v32  ;;  %v2202_v32 = vld [vmem:[%s5112_s22 + $0x140] sm:$0xff]  ;;  %v2259_v26 = vld [vmem:[%s5112_s22 + $0x308] sm:$0xff] }
 0x1f3   : > { %v2258_v24 = vld [vmem:[%s5112_s22 + $0x300] sm:$0xff] }
 0x1f4   : > { %4106 = vmatpush3.bf16.msra.mxu0 %v4105_v39  ;;  %v2221_v39 = vld [vmem:[%s5112_s22 + $0x1d8] sm:$0xff] }
 0x1f5   : > { %4138 = vmatpush3.bf16.msra.mxu1 %v4137_v40  ;;  %4140 = vmatprep.subr.bf16.mxu0 %v4139_v41  ;;  %v4157_v40 = vpack.c.bf16 %v2171_v31, %v2170_v30  ;;  %v4189_v41 = vpack.c.bf16 %v2203_v34, %v2202_v32  ;;  %v4191_v46 = vpack.c.bf16 %v2221_v39, %v2220_v38  ;;  %v2277_v30 = vld [vmem:[%s5112_s22 + $0x398] sm:$0xff]  ;;  %v2154_v31 = vld [vmem:[#allocation5] sm:$0xff]  ;;  %v2260_v39 = vld [vmem:[%s5112_s22 + $0x310] sm:$0xff] }
 0x1f6   : > { %4172 = vmatprep.subr.bf16.mxu1 %v4171_v45  ;;  %v2204_v45 = vld [vmem:[%s5112_s22 + $0x150] sm:$0xff]  ;;  %v2156_v32 = vld [vmem:[#allocation5 + $0x10] sm:$0xff]  ;;  %v4237_v34 = vpack.c.bf16 %v2259_v26, %v2258_v24 }
 0x1f7   : > { %2074 = vmatmul.mubr.f32.vlgmr.msra.gmra.mrb[14].mxu0 %v513_v51  ;;  %v2223_v51 = vld [vmem:[%s5112_s22 + $0x1e8] sm:$0xff]  ;;  %v2229_v38 = vld [vmem:[%s5112_s22 + $0x218] sm:$0xff] }
 0x1f8   : > { %2144 = vmatmul.mubr.f32.vlgmr.msra.gmra.mrb[14].mxu1 %v515_v52  ;;  %4142 = vmatpush3.bf16.msra.mxu0 %v4141_v53  ;;  %v4161_v52 = vpack.c.bf16 %v2173_v44, %v2172_v43  ;;  %v4193_v53 = vpack.c.bf16 %v2205_v47, %v2204_v45  ;;  %v2247_v43 = vld [vmem:[%s5112_s22 + $0x2a8] sm:$0xff]  ;;  %v2278_v44 = vld [vmem:[%s5112_s22 + $0x3a0] sm:$0xff]  ;;  %v4209_v47 = vpack.c.bf16 %v2229_v38, %v2228_v37  ;;  %v2237_v24 = vld [vmem:[%s5112_s22 + $0x258] sm:$0xff] }
 0x1f9   : > { %4174 = vmatpush3.bf16.msra.mxu1 %v4173_v54  ;;  %4144 = vmatprep.subr.bf16.mxu0 %v4143_v55  ;;  %v4163_v54 = vpack.c.bf16 %v2191_v49, %v2190_v48  ;;  %v2174_v55 = vld [vmem:[%s5112_s22 + $0x60] sm:$0xff]  ;;  %v2279_v45 = vld [vmem:[%s5112_s22 + $0x3a8] sm:$0xff] }
 0x1fa   : > { %4176 = vmatprep.subr.bf16.mxu1 %v4175_v59  ;;  %2354 = vmatprep.mubr.f32.mxu0 %v2155_v1  ;;  %v4195_v59 = vpack.c.bf16 %v2223_v51, %v2222_v50  ;;  %v2224_v1 = vld [vmem:[%s5112_s22 + $0x1f0] sm:$0xff]  ;;  %v2161_v48 = vld [vmem:[#allocation5 + $0x38] sm:$0xff]  ;;  %v2239_v37 = vld [vmem:[%s5112_s22 + $0x268] sm:$0xff] }
 0x1fb   : > { %2424 = vmatprep.mubr.f32.mxu1 %v2157_v3  ;;  %v2230_v51 = vld [vmem:[%s5112_s22 + $0x220] sm:$0xff] }
 0x1fc   : > { %4146 = vmatpush3.bf16.msra.mxu0 %v4145_v2  ;;  %v2225_v2 = vld [vmem:[%s5112_s22 + $0x1f8] sm:$0xff]  ;;  %v2270_v38 = vld [vmem:[%s5112_s22 + $0x360] sm:$0xff] }
 0x1fd   : > { %4178 = vmatpush3.bf16.msra.mxu1 %v4177_v4  ;;  %4148 = vmatprep.subr.bf16.mxu0 %v4147_v5  ;;  %v4165_v5 = vpack.c.bf16 %v2175_v56, %v2174_v55  ;;  %v4199_v13 = vpack.c.bf16 %v2225_v2, %v2224_v1  ;;  %v2263_v55 = vld [vmem:[%s5112_s22 + $0x328] sm:$0xff]  ;;  %v2248_v56 = vld [vmem:[%s5112_s22 + $0x2b0] sm:$0xff] }
 0x1fe   : > { %4180 = vmatprep.subr.bf16.mxu1 %v4179_v9  ;;  %v2176_v9 = vld [vmem:[%s5112_s22 + $0x70] sm:$0xff]  ;;  %v4215_v62 = vpack.c.bf16 %v2249_v57, %v2248_v56 }
 0x1ff   : > { %v4169_v20 = vpack.c.bf16 %v2177_v10, %v2176_v9  ;;  %v2264_v1 = vld [vmem:[%s5112_s22 + $0x330] sm:$0xff] }
 0x200   : > { %4150 = vmatpush3.bf16.msra.mxu0 %v4149_v15  ;;  %v2242_v15 = vld [vmem:[%s5112_s22 + $0x280] sm:$0xff] }
 0x201   : > { %4182 = vmatpush3.bf16.msra.mxu1 %v4181_v16  ;;  %4152 = vmatprep.subr.bf16.mxu0 %v4151_v17  ;;  %v2243_v16 = vld [vmem:[%s5112_s22 + $0x288] sm:$0xff]  ;;  %v2274_v17 = vld [vmem:[%s5112_s22 + $0x380] sm:$0xff] }
 0x202   : > { %4184 = vmatprep.subr.bf16.mxu1 %v4183_v21  ;;  %v4203_v21 = vpack.c.bf16 %v2243_v16, %v2242_v15  ;;  %v4235_v25 = vpack.c.bf16 %v2275_v18, %v2274_v17  ;;  %v2267_v15 = vld [vmem:[%s5112_s22 + $0x348] sm:$0xff]  ;;  %v2252_v16 = vld [vmem:[%s5112_s22 + $0x2d0] sm:$0xff]  ;;  %v2253_v17 = vld [vmem:[%s5112_s22 + $0x2d8] sm:$0xff] }
 0x203   : > { %v2284_v18 = vld [vmem:[%s5112_s22 + $0x3d0] sm:$0xff] }
 0x204   : > { %4154 = vmatpush3.bf16.msra.mxu0 %v4153_v27  ;;  %v2244_v27 = vld [vmem:[%s5112_s22 + $0x290] sm:$0xff] }
 0x205   : > { %4186 = vmatpush3.bf16.msra.mxu1 %v4185_v28  ;;  %4156 = vmatprep.subr.bf16.mxu0 %v4155_v29  ;;  %v2245_v28 = vld [vmem:[%s5112_s22 + $0x298] sm:$0xff]  ;;  %v2276_v29 = vld [vmem:[%s5112_s22 + $0x390] sm:$0xff] }
 0x206   : > { %4188 = vmatprep.subr.bf16.mxu1 %v4187_v33  ;;  %v4205_v33 = vpack.c.bf16 %v2227_v23, %v2226_v22  ;;  %v4207_v35 = vpack.c.bf16 %v2245_v28, %v2244_v27  ;;  %v4223_v22 = vpack.c.bf16 %v2253_v17, %v2252_v16  ;;  %v2236_v23 = vld [vmem:[%s5112_s22 + $0x250] sm:$0xff]  ;;  %v2269_v27 = vld [vmem:[%s5112_s22 + $0x358] sm:$0xff]  ;;  %v2254_v28 = vld [vmem:[%s5112_s22 + $0x2e0] sm:$0xff] }
 0x208   : > { %4158 = vmatpush3.bf16.msra.mxu0 %v4157_v40  ;;  %v4239_v40 = vpack.c.bf16 %v2277_v30, %v2276_v29  ;;  %v2255_v29 = vld [vmem:[%s5112_s22 + $0x2e8] sm:$0xff]  ;;  %v2286_v30 = vld [vmem:[%s5112_s22 + $0x3e0] sm:$0xff] }
 0x209   : > { %4190 = vmatpush3.bf16.msra.mxu1 %v4189_v41  ;;  %4160 = vmatprep.subr.bf16.mxu0 %v4159_v42  ;;  %v2261_v41 = vld [vmem:[%s5112_s22 + $0x318] sm:$0xff]  ;;  %v2246_v42 = vld [vmem:[%s5112_s22 + $0x2a0] sm:$0xff] }
 0x20a   : > { %v3001_v58 = vpop.f32.mrb[2].mxu0  ;;  %4192 = vmatprep.subr.bf16.mxu1 %v4191_v46  ;;  %v2159_v46 = vld [vmem:[#allocation5 + $0x28] sm:$0xff]  ;;  %v4241_v49 = vpack.c.bf16 %v2261_v41, %v2260_v39  ;;  %v4211_v50 = vpack.c.bf16 %v2247_v43, %v2246_v42  ;;  %v2271_v41 = vld [vmem:[%s5112_s22 + $0x368] sm:$0xff]  ;;  %v2257_v43 = vld [vmem:[%s5112_s22 + $0x2f8] sm:$0xff] }
 0x20b   : > { %v3002_v63 = vpop.f32.mrb[3].mxu0  ;;  %v3036_v0 = vpop.f32.mrb[2].mxu1  ;;  %v2256_v42 = vld [vmem:[%s5112_s22 + $0x2f0] sm:$0xff] }
 0x20c   : > { %v3003_v3 = vadd.f32 %v3002_v63, %v3001_v58  ;;  %4162 = vmatpush3.bf16.msra.mxu0 %v4161_v52  ;;  %v3037_v4 = vpop.f32.mrb[3].mxu1  ;;  %v2231_v52 = vld [vmem:[%s5112_s22 + $0x228] sm:$0xff]  ;;  %v2280_v58 = vld [vmem:[%s5112_s22 + $0x3b0] sm:$0xff] }
 0x20d   : > { %4194 = vmatpush3.bf16.msra.mxu1 %v4193_v53  ;;  %v3038_v6 = vadd.f32 %v3037_v4, %v3036_v0  ;;  %4164 = vmatprep.subr.bf16.mxu0 %v4163_v54  ;;  %v2262_v53 = vld [vmem:[%s5112_s22 + $0x320] sm:$0xff]  ;;  %v4243_v54 = vpack.c.bf16 %v2279_v45, %v2278_v44  ;;  %v4213_v60 = vpack.c.bf16 %v2231_v52, %v2230_v51  ;;  %v2232_v63 = vld [vmem:[%s5112_s22 + $0x230] sm:$0xff]  ;;  %v2233_v0 = vld [vmem:[%s5112_s22 + $0x238] sm:$0xff] }
 0x20e   : > { %v1236_v12 = vadd.f32 %v3003_v3, %v5635_v36  ;;  %4196 = vmatprep.subr.bf16.mxu1 %v4195_v59  ;;  %v4201_v36 = vpack.c.bf16 %v2209_v14, %v2208_v11  ;;  %v2281_v59 = vld [vmem:[%s5112_s22 + $0x3b8] sm:$0xff]  ;;  %v4245_v61 = vpack.c.bf16 %v2263_v55, %v2262_v53  ;;  %v2250_v4 = vld [vmem:[%s5112_s22 + $0x2c0] sm:$0xff]  ;;  %v4261_v52 = vpack.c.bf16 %v2271_v41, %v2270_v38 }
 0x20f   : > { %v4247_v2 = vpack.c.bf16 %v2281_v59, %v2280_v58  ;;  %v2265_v3 = vld [vmem:[%s5112_s22 + $0x338] sm:$0xff]  ;;  %v2234_v11 = vld [vmem:[%s5112_s22 + $0x240] sm:$0xff]  ;;  %v4231_v53 = vpack.c.bf16 %v2257_v43, %v2256_v42  ;;  %v2272_v58 = vld [vmem:[%s5112_s22 + $0x370] sm:$0xff] }
 0x210   : > { %v5704_v19 = vadd.f32 %v3038_v6, %v1236_v12  ;;  %4166 = vmatpush3.bf16.msra.mxu0 %v4165_v5  ;;  %v2251_v5 = vld [vmem:[%s5112_s22 + $0x2c8] sm:$0xff]  ;;  %v2282_v6 = vld [vmem:[%s5112_s22 + $0x3c0] sm:$0xff]  ;;  %v4249_v9 = vpack.c.bf16 %v2265_v3, %v2264_v1  ;;  %v2241_v55 = vld [vmem:[%s5112_s22 + $0x278] sm:$0xff] }
 0x211   : > { %4198 = vmatpush3.bf16.msra.mxu1 %v4197_v7  ;;  %4168 = vmatprep.subr.bf16.mxu0 %v4167_v8  ;;  %v2283_v7 = vld [vmem:[%s5112_s22 + $0x3c8] sm:$0xff]  ;;  %v4217_v8 = vpack.c.bf16 %v2233_v0, %v2232_v63  ;;  %v4219_v10 = vpack.c.bf16 %v2251_v5, %v2250_v4  ;;  %v2273_v59 = vld [vmem:[%s5112_s22 + $0x378] sm:$0xff]  ;;  %v2582_v63 = vld [vmem:[%s5115_s10] sm:$0xff] }
 0x212   : > { %4200 = vmatprep.subr.bf16.mxu1 %v4199_v13  ;;  %v2235_v12 = vld [vmem:[%s5112_s22 + $0x248] sm:$0xff]  ;;  %v2266_v13 = vld [vmem:[%s5112_s22 + $0x340] sm:$0xff]  ;;  %v4251_v14 = vpack.c.bf16 %v2283_v7, %v2282_v6  ;;  %v2160_v3 = vld [vmem:[#allocation5 + $0x30] sm:$0xff] }
 0x213   : > { %v2583_v0 = vld [vmem:[%s5115_s10 + $0x8] sm:$0xff]  ;;  %v2584_v4 = vld [vmem:[%s5115_s10 + $0x10] sm:$0xff]  ;;  %v2585_v5 = vld [vmem:[%s5115_s10 + $0x18] sm:$0xff] }
 0x214   : > { %4170 = vmatpush3.bf16.msra.mxu0 %v4169_v20  ;;  %v2285_v20 = vld [vmem:[%s5112_s22 + $0x3d8] sm:$0xff]  ;;  %v2158_v1 = vld [vmem:[#allocation5 + $0x20] sm:$0xff]  ;;  %v4271_v6 = vpack.c.bf16 %v2585_v5, %v2584_v4  ;;  %v2586_v7 = vld [vmem:[%s5115_s10 + $0x20] sm:$0xff] }
 0x215   : > { %4202 = vmatpush3.bf16.msra.mxu1 %v4201_v36  ;;  %4204 = vmatprep.subr.bf16.mxu0 %v4203_v21  ;;  %v4221_v36 = vpack.c.bf16 %v2235_v12, %v2234_v11  ;;  %v4253_v21 = vpack.c.bf16 %v2267_v15, %v2266_v13  ;;  %v4255_v26 = vpack.c.bf16 %v2285_v20, %v2284_v18  ;;  %v2588_v11 = vld [vmem:[%s5115_s10 + $0x30] sm:$0xff]  ;;  %v2589_v12 = vld [vmem:[%s5115_s10 + $0x38] sm:$0xff] }
 0x216   : > { %4236 = vmatprep.subr.bf16.mxu1 %v4235_v25  ;;  %v2268_v25 = vld [vmem:[%s5112_s22 + $0x350] sm:$0xff]  ;;  %v4277_v13 = vpack.c.bf16 %v2589_v12, %v2588_v11 }
 0x217   : > { %2355 = vmatmul.mubr.f32.vlgmr.msra.gmra.mrb[16].mxu0 %v2154_v31  ;;  %v2287_v31 = vld [vmem:[%s5112_s22 + $0x3e8] sm:$0xff] }
 0x218   : > { %2425 = vmatmul.mubr.f32.vlgmr.msra.gmra.mrb[16].mxu1 %v2156_v32  ;;  %4206 = vmatpush3.bf16.msra.mxu0 %v4205_v33  ;;  %v4225_v32 = vpack.c.bf16 %v2237_v24, %v2236_v23  ;;  %v4257_v33 = vpack.c.bf16 %v2269_v27, %v2268_v25  ;;  %v2575_v23 = vld [vmem:[%s5093_s12] sm:$0xff]  ;;  %s4607_s12 = scalar_lea.vmem %s4606_s18, 1024 }
 0x219   : > { %4238 = vmatpush3.bf16.msra.mxu1 %v4237_v34  ;;  %4208 = vmatprep.subr.bf16.mxu0 %v4207_v35  ;;  %v4227_v34 = vpack.c.bf16 %v2255_v29, %v2254_v28  ;;  %v2238_v35 = vld [vmem:[%s5112_s22 + $0x260] sm:$0xff]  ;;  %v2577_v24 = vcombine.high %v2575_v23, %v2575_v23  ;;  %2579 = vst [vmem:[%s5777_s27 + $0x8] sm:$0xf] %v2575_v23  ;;  %p4609_p2 = scmp.lt.s32.totalorder %s4607_s12, %s4601_s17 }
 0x21a   : > { %4240 = vmatprep.subr.bf16.mxu1 %v4239_v40  ;;  %2494 = vmatprep.mubr.f32.mxu0 %v2159_v46  ;;  %v4259_v40 = vpack.c.bf16 %v2287_v31, %v2286_v30  ;;  %v2288_v46 = vld [vmem:[%s5112_s22 + $0x3f0] sm:$0xff] }
 0x21b   : > { %2564 = vmatprep.mubr.f32.mxu1 %v2161_v48  ;;  %2580 = vst [vmem:[%s5777_s27 + $0x18] sm:$0xf] %v2577_v24  ;;  %p4610_p9 = por %p4609_p2, %p4608_p10 }
 0x21c   : > { %4210 = vmatpush3.bf16.msra.mxu0 %v4209_v47  ;;  %v2289_v47 = vld [vmem:[%s5112_s22 + $0x3f8] sm:$0xff] }
 0x21d   : > { %4242 = vmatpush3.bf16.msra.mxu1 %v4241_v49  ;;  %4212 = vmatprep.subr.bf16.mxu0 %v4211_v50  ;;  %v4229_v50 = vpack.c.bf16 %v2239_v37, %v2238_v35  ;;  %v4263_v57 = vpack.c.bf16 %v2289_v47, %v2288_v46  ;;  %p4611_p5 = pnand %p4610_p9, %p4604_p13 }
 0x21e   : > { %4244 = vmatprep.subr.bf16.mxu1 %v4243_v54  ;;  %v2240_v54 = vld [vmem:[%s5112_s22 + $0x270] sm:$0xff] }
 0x220   : > { %4214 = vmatpush3.bf16.msra.mxu0 %v4213_v60 }
 0x221   : > { %4246 = vmatpush3.bf16.msra.mxu1 %v4245_v61  ;;  %4216 = vmatprep.subr.bf16.mxu0 %v4215_v62  ;;  %v4233_v61 = vpack.c.bf16 %v2241_v55, %v2240_v54  ;;  %v4265_v62 = vpack.c.bf16 %v2273_v59, %v2272_v58 }
 0x222   : > { %4248 = vmatprep.subr.bf16.mxu1 %v4247_v2  ;;  %v4715_v2 = vmov 0.0|0.0  }
 0x224   : > { %4218 = vmatpush3.bf16.msra.mxu0 %v4217_v8  ;;  %v2587_v8 = vld [vmem:[%s5115_s10 + $0x28] sm:$0xff] }
 0x225   : > { %4250 = vmatpush3.bf16.msra.mxu1 %v4249_v9  ;;  %4220 = vmatprep.subr.bf16.mxu0 %v4219_v10  ;;  %v4717_v9 = vmov 0.0   ;;  %v4274_v10 = vpack.c.bf16 %v2587_v8, %v2586_v7 }
 0x226   : > { %4252 = vmatprep.subr.bf16.mxu1 %v4251_v14  ;;  %v2581_v14 = vld [vmem:[#allocation8] sm:$0xff] }
 0x228   : > { %4222 = vmatpush3.bf16.msra.mxu0 %v4221_v36 }
 0x229   : > { %4254 = vmatpush3.bf16.msra.mxu1 %v4253_v21  ;;  %4224 = vmatprep.subr.bf16.mxu0 %v4223_v22 }
 0x22a   : > { %v3071_v39 = vpop.f32.mrb[4].mxu0  ;;  %4256 = vmatprep.subr.bf16.mxu1 %v4255_v26 }
 0x22b   : > { %v3072_v44 = vpop.f32.mrb[5].mxu0  ;;  %v3106_v45 = vpop.f32.mrb[4].mxu1 }
 0x22c   : > { %v3073_v48 = vadd.f32 %v3072_v44, %v3071_v39  ;;  %4226 = vmatpush3.bf16.msra.mxu0 %v4225_v32  ;;  %v3107_v49 = vpop.f32.mrb[5].mxu1 }
 0x22d   : > { %v3108_v51 = vadd.f32 %v3107_v49, %v3106_v45  ;;  %4258 = vmatpush3.bf16.msra.mxu1 %v4257_v33  ;;  %4228 = vmatprep.subr.bf16.mxu0 %v4227_v34 }
 0x22e   : > { %v1376_v56 = vadd.f32 %v3073_v48, %v5704_v19  ;;  %4260 = vmatprep.subr.bf16.mxu1 %v4259_v40  ;;  %v4268_v19 = vpack.c.bf16 %v2583_v0, %v2582_v63 }
 0x230   : > { %v1446_v60 = vadd.f32 %v3108_v51, %v1376_v56  ;;  %4230 = vmatpush3.bf16.msra.mxu0 %v4229_v50 }
 0x231   : > { %4262 = vmatpush3.bf16.msra.mxu1 %v4261_v52  ;;  %4232 = vmatprep.subr.bf16.mxu0 %v4231_v53 }
 0x232   : > { %4264 = vmatprep.subr.bf16.mxu1 %v4263_v57 }
 0x234   : > { %4234 = vmatpush3.bf16.msra.mxu0 %v4233_v61 }
 0x235   : > { %4266 = vmatpush3.bf16.msra.mxu1 %v4265_v62  ;;  %4267 = vmatprep.subr.bf16.mxu0 %v4715_v2 }
 0x237   : > { %2495 = vmatmul.mubr.f32.vlgmr.msra.gmra.mrb[18].mxu0 %v2158_v1 }
 0x238   : > { %4269 = vmatpush3.bf16.msra.mxu0 %v4268_v19  ;;  %2565 = vmatmul.mubr.f32.vlgmr.msra.gmra.mrb[18].mxu1 %v2160_v3 }
 0x239   : > { %4270 = vmatprep.subr.bf16.mxu0 %v4715_v2  ;;  %3624 = vmatprep.mubr.msk.f32.mxu0 %vm4716_vm0, %v4717_v9 }
 0x23c   : > { %4272 = vmatpush3.bf16.msra.mxu0 %v4271_v6 }
 0x23d   : > { %4273 = vmatprep.subr.bf16.mxu0 %v4715_v2 }
 0x240   : > { %4275 = vmatpush3.bf16.msra.mxu0 %v4274_v10 }
 0x241   : > { %4276 = vmatprep.subr.bf16.mxu0 %v4715_v2 }
 0x244   : > { %4278 = vmatpush3.bf16.msra.mxu0 %v4277_v13 }
 0x247   : > { %3625 = vmatmul.mubr.msk.f32.vlgmr.msra.gmra.mrb[20].mxu0 %vm2590_vm1, %v2581_v14 }
 0x24a   : > { %v3141_v15 = vpop.f32.mrb[6].mxu0 }
 0x24b   : > { %v3142_v16 = vpop.f32.mrb[7].mxu0  ;;  %v3176_v17 = vpop.f32.mrb[6].mxu1 }
 0x24c   : > { %v3143_v18 = vadd.f32 %v3142_v16, %v3141_v15  ;;  %v3177_v20 = vpop.f32.mrb[7].mxu1 }
 0x24d   : > { %v3178_v36 = vadd.f32 %v3177_v20, %v3176_v17 }
 0x24e   : > { %v1516_v21 = vadd.f32 %v3143_v18, %v1446_v60 }
 0x250   : > { %v1586_v22 = vadd.f32 %v3178_v36, %v1516_v21 }
 0x26a   : > { %v3211_v25 = vpop.f32.mrb[8].mxu0 }
 0x26b   : > { %v3212_v26 = vpop.f32.mrb[9].mxu0  ;;  %v3246_v27 = vpop.f32.mrb[8].mxu1 }
 0x26c   : > { %v3213_v28 = vadd.f32 %v3212_v26, %v3211_v25  ;;  %v3247_v29 = vpop.f32.mrb[9].mxu1 }
 0x26d   : > { %v3248_v30 = vadd.f32 %v3247_v29, %v3246_v27 }
 0x26e   : > { %v1656_v31 = vadd.f32 %v3213_v28, %v1586_v22 }
 0x270   : > { %v1726_v32 = vadd.f32 %v3248_v30, %v1656_v31 }
 0x28a   : > { %v3281_v33 = vpop.f32.mrb[10].mxu0 }
 0x28b   : > { %v3282_v34 = vpop.f32.mrb[11].mxu0  ;;  %v3316_v35 = vpop.f32.mrb[10].mxu1 }
 0x28c   : > { %v3283_v37 = vadd.f32 %v3282_v34, %v3281_v33  ;;  %v3317_v38 = vpop.f32.mrb[11].mxu1 }
 0x28d   : > { %v3318_v39 = vadd.f32 %v3317_v38, %v3316_v35 }
 0x28e   : > { %v1796_v40 = vadd.f32 %v3283_v37, %v1726_v32 }
 0x290   : > { %v1866_v41 = vadd.f32 %v3318_v39, %v1796_v40 }
 0x2aa   : > { %v3351_v42 = vpop.f32.mrb[12].mxu0 }
 0x2ab   : > { %v3352_v43 = vpop.f32.mrb[13].mxu0  ;;  %v3386_v44 = vpop.f32.mrb[12].mxu1 }
 0x2ac   : > { %v3353_v45 = vadd.f32 %v3352_v43, %v3351_v42  ;;  %v3387_v46 = vpop.f32.mrb[13].mxu1 }
 0x2ad   : > { %v3388_v47 = vadd.f32 %v3387_v46, %v3386_v44 }
 0x2ae   : > { %v1936_v48 = vadd.f32 %v3353_v45, %v1866_v41 }
 0x2b0   : > { %v2006_v49 = vadd.f32 %v3388_v47, %v1936_v48 }
 0x2ca   : > { %v3421_v50 = vpop.f32.mrb[14].mxu0 }
 0x2cb   : > { %v3422_v51 = vpop.f32.mrb[15].mxu0  ;;  %v3456_v52 = vpop.f32.mrb[14].mxu1 }
 0x2cc   : > { %v3423_v53 = vadd.f32 %v3422_v51, %v3421_v50  ;;  %v3457_v54 = vpop.f32.mrb[15].mxu1 }
 0x2cd   : > { %v3458_v55 = vadd.f32 %v3457_v54, %v3456_v52 }
 0x2ce   : > { %v2076_v56 = vadd.f32 %v3423_v53, %v2006_v49 }
 0x2d0   : > { %v2146_v57 = vadd.f32 %v3458_v55, %v2076_v56 }
 0x2d2   : > { %v2150_v58 = vcombine.high %v2146_v57, %v2146_v57  ;;  %2152 = vst [vmem:[%s5777_s27] sm:$0xf] %v2146_v57 }
 0x2d4   : > { %2153 = vst [vmem:[%s5777_s27 + $0x10] sm:$0xf] %v2150_v58 }
 0x2ea   : > { %v3491_v59 = vpop.f32.mrb[16].mxu0 }
 0x2eb   : > { %v3526_v60 = vpop.f32.mrb[16].mxu1  ;;  %v3492_v61 = vpop.f32.mrb[17].mxu0 }
 0x2ec   : > { %v3493_v62 = vadd.f32 %v3492_v61, %v3491_v59  ;;  %v3527_v63 = vpop.f32.mrb[17].mxu1 }
 0x2ed   : > { %v3528_v0 = vadd.f32 %v3527_v63, %v3526_v60 }
 0x2ef   : > { %v2427_v1 = vadd.f32 %v3528_v0, %v3493_v62 }
 0x30a   : > { %v3561_v19 = vpop.f32.mrb[18].mxu0 }
 0x30b   : > { %v3562_v2 = vpop.f32.mrb[19].mxu0  ;;  %v3596_v3 = vpop.f32.mrb[18].mxu1 }
 0x30c   : > { %v3563_v4 = vadd.f32 %v3562_v2, %v3561_v19  ;;  %v3597_v5 = vpop.f32.mrb[19].mxu1 }
 0x30d   : > { %v3598_v6 = vadd.f32 %v3597_v5, %v3596_v3 }
 0x30e   : > { %v2497_v7 = vadd.f32 %v3563_v4, %v2427_v1 }
 0x310   : > { %v2567_v8 = vadd.f32 %v3598_v6, %v2497_v7 }
 0x312   : > { %v2571_v9 = vcombine.high %v2567_v8, %v2567_v8  ;;  %2573 = vst [vmem:[%s5777_s27 + $0x4] sm:$0xf] %v2567_v8 }
 0x314   : > { %2574 = vst [vmem:[%s5777_s27 + $0x14] sm:$0xf] %v2571_v9 }
 0x31a   : > { %v2660_v10 = vpop.f32.mrb[20].mxu0 }
 0x31b   : > { %v2665_v11 = vcombine.high %v2660_v10, %v2660_v10  ;;  %2667 = vst [vmem:[%s5777_s27 + $0xc] sm:$0xf] %v2660_v10  ;;  %v3626_v12 = vpop.f32.mrb[21].mxu0 }
 0x31d   : > { %2668 = vst [vmem:[%s5777_s27 + $0x1c] sm:$0xf] %v2665_v11 }
 0x31e   : > { %4614 = shalt.err (!%p4611_p5)
}
 0x31f   : > { %s4615_s19 = scalar_lea.hbm %s5792_s8, 512  ;;  %s4619_s1 = scalar_lea.hbm %s5910_s13, 1024 }
 0x320   : > { %p4616_p8 = scmp.ne.s32.totalorder %s5792_s8, %s4615_s19  ;;  %p4620_p4 = scmp.lt.u32.totalorder %s5792_s8, %s5910_s13 }
 0x321   : > { %p4621_p1 = scmp.lt.u32.totalorder %s4619_s1, %s4615_s19  ;;  %p4623_p12 = scmp.lt.u32.totalorder %s4615_s19, %s5792_s8 }
 0x322   : > { %p4617_p6 = pnand %p4616_p8, %p5911_p7 }
 0x323   : > { %p4622_p0 = por %p4621_p1, %p4620_p4 }
 0x324   : > { %p4618_p11 = pneg %p4617_p6 }
 0x325   : > { %p4624_p3 = por %p4623_p12, %p4622_p0 }
 0x327   : > { %p4625_p13 = pnand %p4624_p3, %p4618_p11 }
 0x329   : > { %4628 = shalt.err (!%p4625_p13)
}
 0x32a   : > { %s4719_s30 = smov 128   ;;  %s4720_s10 = smov 256  }
 0x32b   : > { %s4721_s11 = smov 8  }
 0x32c   : > { %4299 = dma.vmem_to_hbm [thread:$0]  (%p5911_p7), %s5787_s16, 512, %s5792_s8, %s2670_s21, %s4719_s30, %s4720_s10, %s4721_s11  }
 0x32d PF: > { %s5912_s27 = sld [smem:[#allocation22_spill]]  ;;  %s5913_s15 = sld [smem:[#allocation27_spill]] }
 0x32e   : > { %p5915_p2 = scmp.ge.s32.totalorder %s4703_s29, 2 }
 0x333   : > { %s2700_s23 = sand.u32 1, %s5912_s27   ;;  %p5914_p10 = scmp.ne.s32.totalorder %s5913_s15, 0 }
 0x334   : > { %s2701_s4 = scalar_lea.sflag [#allocation4], %s2700_s23 }
 0x335   : > { %p4325_p9 = pnand %p5915_p2, %p5914_p10 }
 0x337   : > { %4678 = dma.done.wait (!%p4325_p9), %s2701_s4, 512  }
 0x338   : > { %4680 = vsyncadd (!%p4325_p9), %s2701_s4, 4294966784  ;;  %s28_s29 = sadd.s32 1, %s4703_s29   ;;  %s5916_s20 = sld [smem:[#allocation23_spill]] }
 0x339   : > { %p25_p5 = scmp.ge.s32.totalorder %s28_s29, 4   ;;  %s5917_s26 = sld [smem:[#allocation29_spill]] }
 0x33a   : > { %s5918_s27 = sld [smem:[#allocation25_spill]]  ;;  %s5919_s28 = sld [smem:[#allocation28_spill]] }
 0x33b   : > { %s5920_s24 = smov %s4687_s25  ;;  %27 = sbr.rel (!%p25_p5) target bundleno = 15 (0xf), region = 144 }
 0x33e   : > { %s5921_s25 = smov %s5916_s20 }
 0x342   :  { %2706 = vsyncpa [#allocation3], 1 }
 0x343   :  { %2708 = vsyncpa [#allocation3 + $0x1], 1 }
 0x344   :  { %2709 = vsyncpa [#allocation6], 1 }
 0x345   :  { %2710 = vsyncpa [#allocation10], 1 }
 0x346   :  { %2712 = vsyncpa [#allocation10 + $0x1], 1 }
 0x347   :  { %2713 = vsyncpa [#allocation13], 1 }
 0x348   :  { %2715 = vsyncpa [#allocation13 + $0x1], 1 }
 0x349   :  { %2716 = vsyncpa [#allocation4], 1 }
 0x34a   :  { %2718 = vsyncpa [#allocation4 + $0x1], 1 }

// kernel: tpu_custom_call.1
= control target key start
LH: loop header
LB: loop body
LE: loop exit
PB: predicated region body
PF: predicated region fallthrough
CT: control target
= control target key end

     0   :  { %s5843_s0 = inlined_call_operand.hbm [shape: f32[8,4096], index: 0, kind: input, shape index: {}]   ;;  %s5844_s1 = inlined_call_operand.hbm [shape: f32[8,1024], index: 1, kind: input, shape index: {}]   ;;  %s5845_s2 = inlined_call_operand.hbm [shape: f32[8,256], index: 2, kind: input, shape index: {}]   ;;  %s5846_s3 = inlined_call_operand.hbm [shape: f32[8,64], index: 3, kind: input, shape index: {}]   ;;  %s5847_s4 = inlined_call_operand.hbm [shape: f32[4096,256], index: 4, kind: input, shape index: {}]   ;;  %s5848_s5 = inlined_call_operand.hbm [shape: f32[1024,256], index: 5, kind: input, shape index: {}]   ;;  %s5849_s6 = inlined_call_operand.hbm [shape: f32[64,256], index: 6, kind: input, shape index: {}]   ;;  %s5850_s7 = inlined_call_operand.hbm [shape: f32[2,16,256], index: 7, kind: output, shape index: {}]  }
   0x1   :  { %5868 = sst [smem:[#allocation30_spill]] %s5843_s0 }
   0x2   :  { %5869 = sst [smem:[#allocation31_spill]] %s5844_s1 }
   0x3   :  { %5870 = sst [smem:[#allocation32_spill]] %s5847_s4 }
   0x4   :  { %5871 = sst [smem:[#allocation33_spill]] %s5850_s7 }
   0x5   :  { %12 = vsyncpa [#allocation3], 0 }
   0x6   :  { %13 = vsyncpa [#allocation6], 0 }
   0x7   :  { %14 = vsyncpa [#allocation10], 0 }
   0x8   :  { %16 = vsyncpa [#allocation10 + $0x1], 0 }
   0x9   :  { %17 = vsyncpa [#allocation13], 0 }
   0xa   :  { %19 = vsyncpa [#allocation13 + $0x1], 0 }
   0xb   :  { %20 = vsyncpa [#allocation4], 0 }
   0xc   :  { %22 = vsyncpa [#allocation4 + $0x1], 0  ;;  %s4762_s24 = smov 0   ;;  %s4764_s25 = smov 0  }
   0xd   :  { %s4766_s26 = smov 0   ;;  %s4768_s27 = smov 0  }
   0xe   :  { %s4770_s28 = smov 0   ;;  %s4772_s29 = smov 0  }
   0xf LB: > { %5872 = sst [smem:[#allocation22_spill]] %s4683_s24  ;;  %s4793_s30 = sadd.s32 4294967295, %s4703_s29   ;;  %s4703_s29 = sphi %s4772_s29, %s28_s29   ;;  %s4699_s28 = sphi %s4770_s28, %s5919_s28   ;;  %s4695_s27 = sphi %s4768_s27, %s5918_s27   ;;  %s4691_s26 = sphi %s4766_s26, %s5917_s26   ;;  %s4687_s25 = sphi %s4764_s25, %s5921_s25   ;;  %s4683_s24 = sphi %s4762_s24, %s5920_s24  }
  0x10   : > { %5873 = sst [smem:[#allocation23_spill]] %s4691_s26  ;;  %s2871_s8 = sadd.s32 4294967294, %s4703_s29  }
  0x11   : > { %5874 = sst [smem:[#allocation24_spill]] %s4695_s27  ;;  %p108_p0 = scmp.ne.s32.totalorder %s4691_s26, %s4687_s25 }
  0x12   : > { %5875 = sst [smem:[#allocation25_spill]] %s4699_s28  ;;  %p109_p1 = scmp.eq.s32.totalorder %s4703_s29, 0 }
  0x13   : > { %p114_p2 = scmp.ne.s32.totalorder %s4687_s25, %s4683_s24  ;;  %p5851_p3 = scmp.eq.s32.totalorder %s4793_s30, 0 }
  0x14   : > { %p244_p4 = scmp.eq.s32.totalorder %s4793_s30, 1  ;;  %p4804_p5 = por %p109_p1, %p108_p0 }
  0x15   : > { %p250_p6 = scmp.eq.s32.totalorder %s2871_s8, 1  ;;  %p4810_p7 = por %p5851_p3, %p114_p2 }
  0x16   : > { %p4814_p8 = por %p244_p4, %p108_p0  ;;  %p2872_p10 = scmp.ge.s32.totalorder %s4703_s29, 1 }
  0x17   : > { %s5877_s11 = scalar_select %p4810_p7, 1, 0 }
  0x18   : > { %s5878_s12 = scalar_select %p4814_p8, 1, 0 }
  0x19   : > { %p4818_p9 = por %p250_p6, %p114_p2  ;;  %p257_p11 = scmp.lt.s32.totalorder %s4703_s29, 3 }
  0x1a   : > { %5879 = sst [smem:[#allocation26_spill]] %s5878_s12  ;;  %s4705_s15 = smov [#allocation2]  }
  0x1b   : > { %s5880_s13 = scalar_select %p4818_p9, 1, 0 }
  0x1c   : > { %p4825_p13 = pnand %p2872_p10, %p257_p11  ;;  %s273_s16 = sshll.u32 %s4705_s15, 4  ;;  %s274_s16 = int_to_ptr.vmem [resolvable:$true] %s273_s16 }
  0x1d   : > { %5881 = sst [smem:[#allocation27_spill]] %s5880_s13  ;;  %p4331_p1 = scmp.lt.s32.totalorder %s4703_s29, 2 }
  0x1e   : > { %s5882_s14 = scalar_select %p4825_p13, 1, 0 }
  0x1f   : > { %p4301_p0 = pneg %p4825_p13  ;;  %p4834_p4 = pnand %p4331_p1, %p4804_p5 }
  0x20   : > { %s4706_s18 = smov [#allocation5]   ;;  %s5885_s0 = sld [smem:[#allocation30_spill]] }
  0x21   : > { %s5883_s17 = scalar_select %p4834_p4, 1, 0 }
  0x22   : > { %s287_s19 = sshll.u32 %s4706_s18, 4  ;;  %p4840_p2 = pnand %p4301_p0, %p5851_p3  ;;  %s4844_s19 = int_to_ptr.vmem [resolvable:$true] %s287_s19 }
  0x24   : > { %s5884_s20 = scalar_select %p4840_p2, 1, 0 }
  0x25   : > { %p4854_p6 = pneg %p4840_p2 }
  0x26   : > { %s4397_s23 = scalar_lea.hbm %s5885_s0, 4096 }
  0x27   : > { %p4398_p5 = scmp.ne.s32.totalorder %s5885_s0, %s4397_s23  ;;  %p4404_p1 = scmp.lt.u32.totalorder %s4397_s23, %s5885_s0 }
  0x28   : > { %s5886_s15 = scalar_select %p4854_p6, 1, 0 }
  0x29   : > { %p4400_p10 = pnand %p4854_p6, %p4398_p5 }
  0x2b   : > { %p4401_p11 = pneg %p4400_p10 }
  0x2d   : > { %p4406_p0 = pnand %p4404_p1, %p4401_p11 }
  0x2f   : > { %4409 = shalt.err (!%p4406_p0)
}
  0x30   : > { %s4410_s21 = scalar_lea.vmem %s274_s16, 4096  ;;  %p4418_p8 = scmp.lt.s32.totalorder %s274_s16, %s274_s16 }
  0x31   : > { %p4411_p12 = scmp.ne.s32.totalorder %s274_s16, %s4410_s21  ;;  %p4419_p7 = scmp.lt.s32.totalorder %s4410_s21, %s4410_s21 }
  0x33   : > { %p4413_p3 = pnand %p4411_p12, %p4854_p6  ;;  %p4420_p13 = por %p4419_p7, %p4418_p8 }
  0x35   : > { %p4414_p9 = pneg %p4413_p3 }
  0x37   : > { %p4421_p4 = pnand %p4420_p13, %p4414_p9 }
  0x39   : > { %4424 = shalt.err (!%p4421_p4)
}
  0x3a   : > { %4304 = dma.hbm_to_vmem [thread:$0]  (!%p4840_p2), %s5885_s0, 4096, %s274_s16, [#allocation3]  }
  0x3b   : > { %s5887_s1 = sld [smem:[#allocation31_spill]] }
  0x41   : > { %s4425_s10 = scalar_lea.hbm %s5887_s1, 1024 }
  0x42   : > { %p4426_p3 = scmp.ne.s32.totalorder %s5887_s1, %s4425_s10  ;;  %p4432_p8 = scmp.lt.u32.totalorder %s4425_s10, %s5887_s1 }
  0x44   : > { %p4428_p12 = pnand %p4426_p3, %p4854_p6 }
  0x46   : > { %p4429_p7 = pneg %p4428_p12 }
  0x48   : > { %p4434_p9 = pnand %p4432_p8, %p4429_p7 }
  0x4a   : > { %4437 = shalt.err (!%p4434_p9)
}
  0x4b   : > { %s4438_s16 = scalar_lea.vmem %s4844_s19, 1024  ;;  %p4446_p10 = scmp.lt.s32.totalorder %s4844_s19, %s4844_s19 }
  0x4c   : > { %p4439_p13 = scmp.ne.s32.totalorder %s4844_s19, %s4438_s16  ;;  %p4447_p11 = scmp.lt.s32.totalorder %s4438_s16, %s4438_s16 }
  0x4e   : > { %p4441_p4 = pnand %p4439_p13, %p4854_p6  ;;  %p4448_p1 = por %p4447_p11, %p4446_p10 }
  0x50   : > { %p4442_p5 = pneg %p4441_p4 }
  0x52   : > { %p4449_p0 = pnand %p4448_p1, %p4442_p5 }
  0x54   : > { %4452 = shalt.err (!%p4449_p0)
}
  0x55   : > { %4307 = dma.hbm_to_vmem [thread:$0]  (!%p4840_p2), %s5887_s1, 1024, %s4844_s19, [#allocation6]  }
  0x56   : > { %s37_s22 = sadd.s32 1, %s4699_s28  ;;  %s4896_s9 = sand.u32 1, %s4691_s26  }
  0x57   : > { %p38_p3 = scmp.ge.s32.totalorder %s37_s22, 2  ;;  %s4899_s23 = sshll.u32 %s4699_s28, 7 }
  0x58   : > { %s2879_s10 = sshll.u32 %s4896_s9, 12  ;;  %s5889_s4 = sld [smem:[#allocation32_spill]] }
  0x59   : > { %s5923_s22 = smov (%p38_p3, %s37_s22), 0  ;;  %s335_s24 = scalar_lea.vmem [#allocation9], %s2879_s10 }
  0x5a   : > { %5888 = sst [smem:[#allocation28_spill]] %s5923_s22  ;;  %s97_s19 = ssub.s32 %s4699_s28, %s5923_s22 }
  0x5b   : > { %p99_p12 = scmp.eq.s32.totalorder %s97_s19, 0  ;;  %s341_s13 = sshll.u32 %s335_s24, 4  ;;  %s4912_s13 = int_to_ptr.vmem [resolvable:$true] %s341_s13 }
  0x5c   : > { %s5890_s8 = sadd.s32 1, %s4691_s26  ;;  %s5892_s1 = sand.u32 1, %s4703_s29  }
  0x5d   : > { %s4917_s0 = scalar_select %p99_p12, %s4691_s26, %s5890_s8  }
  0x5e   : > { %s4908_s16 = scalar_lea.hbm %s5889_s4, %s4899_s23  ;;  %s4921_s7 = scalar_lea.sflag [#allocation10], %s5892_s1 }
  0x5f   : > { %5891 = sst [smem:[#allocation29_spill]] %s4917_s0  ;;  %s4453_s12 = scalar_lea.hbm %s4908_s16, 65536 }
  0x60   : > { %p4454_p7 = scmp.ne.s32.totalorder %s4908_s16, %s4453_s12  ;;  %p5893_p8 = scmp.ne.s32.totalorder %s5883_s17, 0 }
  0x61   : > { %s4458_s19 = scalar_lea.hbm %s5889_s4, 131072  ;;  %p4459_p5 = scmp.lt.u32.totalorder %s4908_s16, %s5889_s4 }
  0x62   : > { %p4927_p9 = pneg %p5893_p8  ;;  %p4460_p10 = scmp.lt.u32.totalorder %s4458_s19, %s4453_s12 }
  0x63   : > { %p4462_p1 = scmp.lt.u32.totalorder %s4453_s12, %s4908_s16 }
  0x64   : > { %p4456_p13 = pnand %p4927_p9, %p4454_p7  ;;  %p4461_p11 = por %p4460_p10, %p4459_p5 }
  0x66   : > { %p4457_p4 = pneg %p4456_p13  ;;  %p4463_p0 = por %p4462_p1, %p4461_p11 }
  0x68   : > { %p4464_p3 = pnand %p4463_p0, %p4457_p4 }
  0x6a   : > { %4467 = shalt.err (!%p4464_p3)
}
  0x6b   : > { %s4468_s1 = scalar_lea.vmem %s4912_s13, 65536  ;;  %s4707_s10 = smov [#allocation9]  }
  0x6c   : > { %p4469_p12 = scmp.ne.s32.totalorder %s4912_s13, %s4468_s1  ;;  %s4473_s21 = sshll.u32 %s4707_s10, 4  ;;  %s4474_s21 = int_to_ptr.vmem [resolvable:$false] %s4473_s21 }
  0x6d   : > { %s4475_s8 = scalar_lea.vmem %s4474_s21, 131072  ;;  %p4476_p2 = scmp.lt.s32.totalorder %s4912_s13, %s4474_s21 }
  0x6e   : > { %p4471_p7 = pnand %p4469_p12, %p4927_p9  ;;  %p4477_p6 = scmp.lt.s32.totalorder %s4475_s8, %s4468_s1 }
  0x70   : > { %p4472_p13 = pneg %p4471_p7  ;;  %p4478_p5 = por %p4477_p6, %p4476_p2 }
  0x72   : > { %p4479_p10 = pnand %p4478_p5, %p4472_p13 }
  0x74   : > { %4482 = shalt.err (!%p4479_p10)
}
  0x75   : > { %s4708_s12 = smov 256   ;;  %s4709_s19 = smov 128  }
  0x76   : > { %s4710_s24 = smov 8   ;;  %s4711_s10 = smov [#allocation8]  }
  0x77   : > { %4317 = dma.hbm_to_vmem [thread:$0]  (!%p5893_p8), %s4908_s16, 65536, %s4912_s13, %s4921_s7, %s4708_s12, %s4709_s19, %s4710_s24  }
  0x78   : > { %s300_s21 = sshll.u32 %s4711_s10, 4  ;;  %s2877_s1 = sshll.u32 %s4896_s9, 3  ;;  %s301_s21 = int_to_ptr.vmem [resolvable:$true] %s300_s21 }
  0x79   : > { %s4483_s22 = scalar_lea.hbm %s5846_s3, 128  ;;  %p5895_p6 = scmp.ne.s32.totalorder %s5886_s15, 0 }
  0x7a   : > { %p4484_p2 = scmp.ne.s32.totalorder %s5846_s3, %s4483_s22  ;;  %p4490_p1 = scmp.lt.u32.totalorder %s4483_s22, %s5846_s3 }
  0x7c   : > { %p4486_p4 = pnand %p4484_p2, %p5895_p6 }
  0x7e   : > { %p4487_p11 = pneg %p4486_p4 }
  0x80   : > { %p4492_p0 = pnand %p4490_p1, %p4487_p11 }
  0x82   : > { %4495 = shalt.err (!%p4492_p0)
}
  0x83   : > { %s4496_s16 = scalar_lea.vmem %s301_s21, 128  ;;  %p4504_p13 = scmp.lt.s32.totalorder %s301_s21, %s301_s21 }
  0x84   : > { %p4497_p3 = scmp.ne.s32.totalorder %s301_s21, %s4496_s16  ;;  %p4505_p5 = scmp.lt.s32.totalorder %s4496_s16, %s4496_s16 }
  0x86   : > { %p4499_p12 = pnand %p4497_p3, %p5895_p6  ;;  %p4506_p10 = por %p4505_p5, %p4504_p13 }
  0x88   : > { %p4500_p7 = pneg %p4499_p12 }
  0x8a   : > { %p4507_p8 = pnand %p4506_p10, %p4500_p7 }
  0x8c   : > { %4510 = shalt.err (!%p4507_p8)
}
  0x8d   : > { %p5896_p2 = scmp.ne.s32.totalorder %s5884_s20, 0  ;;  %s4977_s28 = scalar_lea.hbm %s5845_s2, %s4899_s23 }
  0x8e   : > { %s315_s15 = scalar_lea.vmem [#allocation7], %s2877_s1  ;;  %s2881_s20 = sshll.u32 %s4896_s9, 10 }
  0x8f   : > { %4310 = dma.hbm_to_vmem [thread:$0]  (!%p5896_p2), %s5846_s3, 128, %s301_s21, [#allocation6]  }
  0x90   : > { %s324_s22 = sshll.u32 %s315_s15, 4  ;;  %s5897_s13 = sand.u32 1, %s4703_s29   ;;  %s4979_s22 = int_to_ptr.vmem [resolvable:$true] %s324_s22 }
  0x91   : > { %s312_s10 = scalar_lea.sflag [#allocation3], %s5897_s13  ;;  %s4511_s8 = scalar_lea.hbm %s4977_s28, 128 }
  0x92   : > { %p4512_p8 = scmp.ne.s32.totalorder %s4977_s28, %s4511_s8  ;;  %s4516_s0 = scalar_lea.hbm %s5845_s2, 256 }
  0x93   : > { %p4517_p11 = scmp.lt.u32.totalorder %s4977_s28, %s5845_s2  ;;  %p4518_p1 = scmp.lt.u32.totalorder %s4516_s0, %s4511_s8 }
  0x94   : > { %p4514_p6 = pnand %p4512_p8, %p4927_p9  ;;  %p4520_p3 = scmp.lt.u32.totalorder %s4511_s8, %s4977_s28 }
  0x95   : > { %p4519_p0 = por %p4518_p1, %p4517_p11 }
  0x96   : > { %p4515_p4 = pneg %p4514_p6 }
  0x97   : > { %p4521_p12 = por %p4520_p3, %p4519_p0 }
  0x99   : > { %p4522_p7 = pnand %p4521_p12, %p4515_p4 }
  0x9b   : > { %4525 = shalt.err (!%p4522_p7)
}
  0x9c   : > { %s4526_s1 = scalar_lea.vmem %s4979_s22, 128  ;;  %s4712_s27 = smov [#allocation7]  }
  0x9d   : > { %p4527_p13 = scmp.ne.s32.totalorder %s4979_s22, %s4526_s1  ;;  %s4531_s15 = sshll.u32 %s4712_s27, 4  ;;  %s4532_s15 = int_to_ptr.vmem [resolvable:$false] %s4531_s15 }
  0x9e   : > { %s4533_s13 = scalar_lea.vmem %s4532_s15, 256  ;;  %p4534_p2 = scmp.lt.s32.totalorder %s4979_s22, %s4532_s15 }
  0x9f   : > { %p4529_p5 = pnand %p4527_p13, %p4927_p9  ;;  %p4535_p8 = scmp.lt.s32.totalorder %s4533_s13, %s4526_s1 }
  0xa1   : > { %p4530_p10 = pneg %p4529_p5  ;;  %p4536_p6 = por %p4535_p8, %p4534_p2 }
  0xa3   : > { %p4537_p11 = pnand %p4536_p6, %p4530_p10 }
  0xa5   : > { %4540 = shalt.err (!%p4537_p11)
}
  0xa6   : > { %p5898_p4 = scmp.ne.s32.totalorder %s5883_s17, 0  ;;  %s5009_s16 = scalar_lea.hbm %s5848_s5, %s4899_s23 }
  0xa7   : > { %s355_s0 = scalar_lea.vmem [#allocation11], %s2881_s20  ;;  %s2883_s26 = sshll.u32 %s4896_s9, 6 }
  0xa8   : > { %4314 = dma.hbm_to_vmem [thread:$0]  (!%p5898_p4), %s4977_s28, 128, %s4979_s22, %s312_s10  }
  0xa9   : > { %s361_s4 = sshll.u32 %s355_s0, 4  ;;  %s4541_s1 = scalar_lea.hbm %s5009_s16, 16384  ;;  %s5013_s4 = int_to_ptr.vmem [resolvable:$true] %s361_s4 }
  0xaa   : > { %p4542_p1 = scmp.ne.s32.totalorder %s5009_s16, %s4541_s1  ;;  %s4546_s10 = scalar_lea.hbm %s5848_s5, 32768 }
  0xab   : > { %p4547_p12 = scmp.lt.u32.totalorder %s5009_s16, %s5848_s5  ;;  %p4548_p7 = scmp.lt.u32.totalorder %s4546_s10, %s4541_s1 }
  0xac   : > { %p4544_p0 = pnand %p4542_p1, %p4927_p9  ;;  %p4550_p5 = scmp.lt.u32.totalorder %s4541_s1, %s5009_s16 }
  0xad   : > { %p4549_p13 = por %p4548_p7, %p4547_p12 }
  0xae   : > { %p4545_p3 = pneg %p4544_p0 }
  0xaf   : > { %p4551_p10 = por %p4550_p5, %p4549_p13 }
  0xb1   : > { %p4552_p2 = pnand %p4551_p10, %p4545_p3 }
  0xb3   : > { %4555 = shalt.err (!%p4552_p2)
}
  0xb4   : > { %s4556_s20 = scalar_lea.vmem %s5013_s4, 16384  ;;  %s4713_s13 = smov [#allocation11]  }
  0xb5   : > { %p4557_p8 = scmp.ne.s32.totalorder %s5013_s4, %s4556_s20  ;;  %s4561_s8 = sshll.u32 %s4713_s13, 4  ;;  %s4562_s8 = int_to_ptr.vmem [resolvable:$false] %s4561_s8 }
  0xb6   : > { %s4563_s21 = scalar_lea.vmem %s4562_s8, 32768  ;;  %p4564_p1 = scmp.lt.s32.totalorder %s5013_s4, %s4562_s8 }
  0xb7   : > { %p4559_p6 = pnand %p4557_p8, %p4927_p9  ;;  %p4565_p0 = scmp.lt.s32.totalorder %s4563_s21, %s4556_s20 }
  0xb9   : > { %p4560_p11 = pneg %p4559_p6  ;;  %p4566_p12 = por %p4565_p0, %p4564_p1 }
  0xbb   : > { %p4567_p7 = pnand %p4566_p12, %p4560_p11 }
  0xbd   : > { %4570 = shalt.err (!%p4567_p7)
}
  0xbe   : > { %4320 = dma.hbm_to_vmem [thread:$0]  (!%p5898_p4), %s5009_s16, 16384, %s5013_s4, %s4921_s7, %s4708_s12, %s4709_s19, %s4710_s24  }
  0xbf   : > { %s5045_s28 = scalar_lea.hbm %s5849_s6, %s4899_s23  ;;  %s375_s22 = scalar_lea.vmem [#allocation12], %s2883_s26 }
  0xc0   : > { %s381_s10 = sshll.u32 %s375_s22, 4  ;;  %s372_s27 = scalar_lea.sflag [#allocation13], %s4896_s9  ;;  %s5049_s10 = int_to_ptr.vmem [resolvable:$true] %s381_s10 }
  0xc1   : > { %s4571_s15 = scalar_lea.hbm %s5045_s28, 1024  ;;  %s4576_s23 = scalar_lea.hbm %s5849_s6, 2048 }
  0xc2   : > { %p4572_p3 = scmp.ne.s32.totalorder %s5045_s28, %s4571_s15  ;;  %p4577_p10 = scmp.lt.u32.totalorder %s5045_s28, %s5849_s6 }
  0xc3   : > { %p4578_p2 = scmp.lt.u32.totalorder %s4576_s23, %s4571_s15  ;;  %p4580_p6 = scmp.lt.u32.totalorder %s4571_s15, %s5045_s28 }
  0xc4   : > { %p4574_p13 = pnand %p4572_p3, %p4927_p9 }
  0xc5   : > { %p4579_p8 = por %p4578_p2, %p4577_p10 }
  0xc6   : > { %p4575_p5 = pneg %p4574_p13 }
  0xc7   : > { %p4581_p11 = por %p4580_p6, %p4579_p8 }
  0xc9   : > { %p4582_p1 = pnand %p4581_p11, %p4575_p5 }
  0xcb   : > { %4585 = shalt.err (!%p4582_p1)
}
  0xcc   : > { %s4586_s26 = scalar_lea.vmem %s5049_s10, 1024  ;;  %s4714_s13 = smov [#allocation12]  }
  0xcd   : > { %p4587_p0 = scmp.ne.s32.totalorder %s5049_s10, %s4586_s26  ;;  %s4591_s8 = sshll.u32 %s4714_s13, 4  ;;  %s4592_s8 = int_to_ptr.vmem [resolvable:$false] %s4591_s8 }
  0xce   : > { %s4593_s21 = scalar_lea.vmem %s4592_s8, 2048  ;;  %p4594_p3 = scmp.lt.s32.totalorder %s5049_s10, %s4592_s8 }
  0xcf   : > { %p4589_p12 = pnand %p4587_p0, %p4927_p9  ;;  %p4595_p13 = scmp.lt.s32.totalorder %s4593_s21, %s4586_s26 }
  0xd1   : > { %p4590_p7 = pneg %p4589_p12  ;;  %p4596_p10 = por %p4595_p13, %p4594_p3 }
  0xd3   : > { %p4597_p2 = pnand %p4596_p10, %p4590_p7 }
  0xd5   : > { %4600 = shalt.err (!%p4597_p2)
}
  0xd6   : > { %4323 = dma.hbm_to_vmem [thread:$0]  (!%p5898_p4), %s5045_s28, 1024, %s5049_s10, %s372_s27, %s4708_s12, %s4709_s19, %s4710_s24  }
  0xd7   : > { %p5899_p9 = scmp.ne.s32.totalorder %s5882_s14, 0 }
  0xd8   : > { %p5900_p5 = scmp.eq.s32.totalorder (!%p5899_p9), %s4793_s30, 0 }
  0xd9   : > { %393 = sbr.rel (%p5899_p9) target bundleno = 813 (0x32d), region = 48 }
  0xe0   : > { %4654 = dma.done.wait (%p5900_p5), [#allocation3], 4096   ;;  %p5901_p8 = pmov %p5900_p5 }
  0xe1   : > { %p5902_p6 = pmov %p5900_p5 }
  0xe2   : > { %4656 = vsyncadd (%p5901_p8), [#allocation3], 4294963200 }
  0xe3   : > { %4658 = dma.done.wait (%p5902_p6), [#allocation6], 1024   ;;  %p5903_p11 = pmov %p5900_p5 }
  0xe4   : > { %s403_s17 = sand.u32 1, %s4793_s30   ;;  %s5090_s9 = sand.u32 1, %s4687_s25  }
  0xe5   : > { %4660 = vsyncadd (%p5903_p11), [#allocation6], 4294966272  ;;  %s2888_s14 = sshll.u32 %s5090_s9, 3  ;;  %s404_s18 = scalar_lea.sflag [#allocation3], %s403_s17 }
  0xe6   : > { %s5093_s12 = scalar_lea.vmem [#allocation7], %s2888_s14  ;;  %p5904_p4 = scmp.ne.s32.totalorder %s5877_s11, 0 }
  0xe8   : > { %4662 = dma.done.wait (%p5904_p4), %s404_s18, 128  }
  0xe9   : > { %4664 = vsyncadd (%p5904_p4), %s404_s18, 4294967168  ;;  %p5905_p1 = pmov %p5900_p5 }
  0xeb   : > { %4666 = dma.done.wait (%p5905_p1), [#allocation6], 128   ;;  %p5906_p0 = pmov %p5905_p1 }
  0xec   : > { %s2890_s19 = sshll.u32 %s5090_s9, 12  ;;  %s417_s24 = scalar_lea.sflag [#allocation10], %s403_s17 }
  0xed   : > { %4668 = vsyncadd (%p5906_p0), [#allocation6], 4294967168  ;;  %s5104_s0 = scalar_lea.vmem [#allocation9], %s2890_s19 }
  0xee   : > { %4670 = dma.done.wait (%p5904_p4), %s417_s24, 81920  }
  0xef   : > { %4672 = vsyncadd (%p5904_p4), %s417_s24, 4294885376  ;;  %s2891_s1 = sshll.u32 %s5090_s9, 10  ;;  %s2892_s28 = sshll.u32 %s5090_s9, 6 }
  0xf0   : > { %s5112_s22 = scalar_lea.vmem [#allocation11], %s2891_s1  ;;  %s435_s30 = scalar_lea.sflag [#allocation13], %s5090_s9 }
  0xf1   : > { %s5115_s10 = scalar_lea.vmem [#allocation12], %s2892_s28 }
  0xf2   : > { %4674 = dma.done.wait (%p5904_p4), %s435_s30, 1024  }
  0xf3   : > { %4676 = vsyncadd (%p5904_p4), %s435_s30, 4294966272  ;;  %v533_v0 = vld [vmem:[%s5104_s0 + $0x80] sm:$0xff]  ;;  %v534_v1 = vld [vmem:[%s5104_s0 + $0x88] sm:$0xff]  ;;  %vm4716_vm0 = vmmov 0   ;;  %vm2590_vm1 = vcmask 523264   ;;  %s2893_s11 = sshll.u32 %s5090_s9, 5 }
  0xf4   : > { %v565_v2 = vld [vmem:[%s5104_s0 + $0x180] sm:$0xff]  ;;  %v3627_v3 = vpack.c.bf16 %v534_v1, %v533_v0  ;;  %v566_v4 = vld [vmem:[%s5104_s0 + $0x188] sm:$0xff]  ;;  %v535_v11 = vld [vmem:[%s5104_s0 + $0x90] sm:$0xff]  ;;  %s5777_s27 = scalar_lea.vmem [#allocation14], %s2893_s11  ;;  %s5907_s15 = sld [smem:[#allocation24_spill]] }
  0xf5   : > { %v517_v5 = vld [vmem:[%s5104_s0] sm:$0xff]  ;;  %v518_v6 = vld [vmem:[%s5104_s0 + $0x8] sm:$0xff]  ;;  %v3659_v7 = vpack.c.bf16 %v566_v4, %v565_v2  ;;  %v536_v13 = vld [vmem:[%s5104_s0 + $0x98] sm:$0xff]  ;;  %s5908_s7 = sld [smem:[#allocation26_spill]]  ;;  %s2685_s16 = sshll.u32 %s5777_s27, 4  ;;  %s5787_s16 = int_to_ptr.vmem [resolvable:$true] %s2685_s16 }
  0xf6   : > { %v3629_v8 = vpack.c.bf16 %v518_v6, %v517_v5  ;;  %v549_v9 = vld [vmem:[%s5104_s0 + $0x100] sm:$0xff]  ;;  %v550_v10 = vld [vmem:[%s5104_s0 + $0x108] sm:$0xff]  ;;  %3628 = vmatprep.subr.bf16.mxu0 %v3627_v3  ;;  %v567_v14 = vld [vmem:[%s5104_s0 + $0x190] sm:$0xff]  ;;  %v3631_v16 = vpack.c.bf16 %v536_v13, %v535_v11  ;;  %s5909_s26 = sld [smem:[#allocation33_spill]]  ;;  %s2670_s21 = scalar_lea.sflag [#allocation4], %s5090_s9 }
  0xf7   : > { %v3661_v12 = vpack.c.bf16 %v550_v10, %v549_v9  ;;  %v568_v15 = vld [vmem:[%s5104_s0 + $0x198] sm:$0xff]  ;;  %3660 = vmatprep.subr.bf16.mxu1 %v3659_v7  ;;  %v519_v18 = vld [vmem:[%s5104_s0 + $0x10] sm:$0xff]  ;;  %v537_v23 = vld [vmem:[%s5104_s0 + $0xa0] sm:$0xff]  ;;  %s4601_s17 = scalar_lea.vmem %s5787_s16, 512  ;;  %s4718_s14 = smov [#allocation14]  }
  0xf8   : > { %3630 = vmatpush3.bf16.msra.mxu0 %v3629_v8  ;;  %v3663_v17 = vpack.c.bf16 %v568_v15, %v567_v14  ;;  %v520_v19 = vld [vmem:[%s5104_s0 + $0x18] sm:$0xff]  ;;  %v551_v20 = vld [vmem:[%s5104_s0 + $0x110] sm:$0xff]  ;;  %v538_v24 = vld [vmem:[%s5104_s0 + $0xa8] sm:$0xff]  ;;  %p4602_p12 = scmp.ne.s32.totalorder %s5787_s16, %s4601_s17  ;;  %s4605_s18 = sshll.u32 %s4718_s14, 4  ;;  %s4606_s18 = int_to_ptr.vmem [resolvable:$false] %s4605_s18 }
  0xf9   : > { %3662 = vmatpush3.bf16.msra.mxu1 %v3661_v12  ;;  %v3633_v21 = vpack.c.bf16 %v520_v19, %v519_v18  ;;  %v552_v22 = vld [vmem:[%s5104_s0 + $0x118] sm:$0xff]  ;;  %3632 = vmatprep.subr.bf16.mxu0 %v3631_v16  ;;  %v3635_v26 = vpack.c.bf16 %v538_v24, %v537_v23  ;;  %v569_v27 = vld [vmem:[%s5104_s0 + $0x1a0] sm:$0xff]  ;;  %v570_v28 = vld [vmem:[%s5104_s0 + $0x1a8] sm:$0xff]  ;;  %p4608_p10 = scmp.lt.s32.totalorder %s5787_s16, %s4606_s18 }
  0xfa   : > { %3664 = vmatprep.subr.bf16.mxu1 %v3663_v17  ;;  %v3665_v25 = vpack.c.bf16 %v552_v22, %v551_v20  ;;  %v521_v29 = vld [vmem:[%s5104_s0 + $0x20] sm:$0xff]  ;;  %v3667_v30 = vpack.c.bf16 %v570_v28, %v569_v27  ;;  %v522_v31 = vld [vmem:[%s5104_s0 + $0x28] sm:$0xff]  ;;  %v539_v35 = vld [vmem:[%s5104_s0 + $0xb0] sm:$0xff]  ;;  %s2896_s23 = sshll.u32 %s5907_s15, 7 }
  0xfb   : > { %v553_v32 = vld [vmem:[%s5104_s0 + $0x120] sm:$0xff]  ;;  %v554_v33 = vld [vmem:[%s5104_s0 + $0x128] sm:$0xff]  ;;  %v3637_v34 = vpack.c.bf16 %v522_v31, %v521_v29  ;;  %v540_v36 = vld [vmem:[%s5104_s0 + $0xb8] sm:$0xff]  ;;  %p5911_p7 = scmp.ne.s32.totalorder %s5908_s7, 0 }
  0xfc   : > { %3634 = vmatpush3.bf16.msra.mxu0 %v3633_v21  ;;  %v571_v37 = vld [vmem:[%s5104_s0 + $0x1b0] sm:$0xff]  ;;  %v3669_v38 = vpack.c.bf16 %v554_v33, %v553_v32  ;;  %v3639_v39 = vpack.c.bf16 %v540_v36, %v539_v35  ;;  %v572_v40 = vld [vmem:[%s5104_s0 + $0x1b8] sm:$0xff]  ;;  %v541_v46 = vld [vmem:[%s5104_s0 + $0xc0] sm:$0xff]  ;;  %s5910_s13 = smov %s5909_s26  ;;  %s5792_s8 = scalar_lea.hbm %s5909_s26, %s2896_s23 }
  0xfd   : > { %3666 = vmatpush3.bf16.msra.mxu1 %v3665_v25  ;;  %3636 = vmatprep.subr.bf16.mxu0 %v3635_v26  ;;  %v523_v41 = vld [vmem:[%s5104_s0 + $0x30] sm:$0xff]  ;;  %v524_v42 = vld [vmem:[%s5104_s0 + $0x38] sm:$0xff]  ;;  %v3671_v43 = vpack.c.bf16 %v572_v40, %v571_v37  ;;  %v542_v47 = vld [vmem:[%s5104_s0 + $0xc8] sm:$0xff]  ;;  %p4603_p3 = pnand %p4602_p12, %p5911_p7 }
  0xfe   : > { %3668 = vmatprep.subr.bf16.mxu1 %v3667_v30  ;;  %v555_v44 = vld [vmem:[%s5104_s0 + $0x130] sm:$0xff]  ;;  %v556_v45 = vld [vmem:[%s5104_s0 + $0x138] sm:$0xff]  ;;  %v573_v48 = vld [vmem:[%s5104_s0 + $0x1c0] sm:$0xff]  ;;  %v3641_v50 = vpack.c.bf16 %v524_v42, %v523_v41  ;;  %v3643_v52 = vpack.c.bf16 %v542_v47, %v541_v46 }
  0xff   : > { %v574_v49 = vld [vmem:[%s5104_s0 + $0x1c8] sm:$0xff]  ;;  %v3673_v51 = vpack.c.bf16 %v556_v45, %v555_v44  ;;  %v525_v53 = vld [vmem:[%s5104_s0 + $0x40] sm:$0xff]  ;;  %v543_v58 = vld [vmem:[%s5104_s0 + $0xd0] sm:$0xff]  ;;  %p4604_p13 = pneg %p4603_p3 }
 0x100   : > { %3638 = vmatpush3.bf16.msra.mxu0 %v3637_v34  ;;  %v526_v54 = vld [vmem:[%s5104_s0 + $0x48] sm:$0xff]  ;;  %v557_v55 = vld [vmem:[%s5104_s0 + $0x140] sm:$0xff]  ;;  %v3675_v56 = vpack.c.bf16 %v574_v49, %v573_v48  ;;  %v544_v59 = vld [vmem:[%s5104_s0 + $0xd8] sm:$0xff] }
 0x101   : > { %3670 = vmatpush3.bf16.msra.mxu1 %v3669_v38  ;;  %3640 = vmatprep.subr.bf16.mxu0 %v3639_v39  ;;  %v558_v57 = vld [vmem:[%s5104_s0 + $0x148] sm:$0xff]  ;;  %v575_v60 = vld [vmem:[%s5104_s0 + $0x1d0] sm:$0xff]  ;;  %v576_v61 = vld [vmem:[%s5104_s0 + $0x1d8] sm:$0xff]  ;;  %v3645_v62 = vpack.c.bf16 %v526_v54, %v525_v53  ;;  %v3647_v0 = vpack.c.bf16 %v544_v59, %v543_v58 }
 0x102   : > { %3672 = vmatprep.subr.bf16.mxu1 %v3671_v43  ;;  %v3677_v63 = vpack.c.bf16 %v558_v57, %v557_v55  ;;  %v527_v1 = vld [vmem:[%s5104_s0 + $0x50] sm:$0xff]  ;;  %v528_v2 = vld [vmem:[%s5104_s0 + $0x58] sm:$0xff]  ;;  %v3679_v4 = vpack.c.bf16 %v576_v61, %v575_v60  ;;  %v545_v6 = vld [vmem:[%s5104_s0 + $0xe0] sm:$0xff] }
 0x103   : > { %v559_v3 = vld [vmem:[%s5104_s0 + $0x150] sm:$0xff]  ;;  %v560_v5 = vld [vmem:[%s5104_s0 + $0x158] sm:$0xff]  ;;  %v546_v7 = vld [vmem:[%s5104_s0 + $0xe8] sm:$0xff]  ;;  %v3649_v10 = vpack.c.bf16 %v528_v2, %v527_v1 }
 0x104   : > { %3642 = vmatpush3.bf16.msra.mxu0 %v3641_v50  ;;  %v577_v8 = vld [vmem:[%s5104_s0 + $0x1e0] sm:$0xff]  ;;  %v578_v9 = vld [vmem:[%s5104_s0 + $0x1e8] sm:$0xff]  ;;  %v3681_v13 = vpack.c.bf16 %v560_v5, %v559_v3  ;;  %v3651_v14 = vpack.c.bf16 %v546_v7, %v545_v6  ;;  %v486_v16 = vld [vmem:[#allocation2 + $0x8] sm:$0xff] }
 0x105   : > { %3674 = vmatpush3.bf16.msra.mxu1 %v3673_v51  ;;  %3644 = vmatprep.subr.bf16.mxu0 %v3643_v52  ;;  %v529_v11 = vld [vmem:[%s5104_s0 + $0x60] sm:$0xff]  ;;  %v530_v12 = vld [vmem:[%s5104_s0 + $0x68] sm:$0xff]  ;;  %v3683_v18 = vpack.c.bf16 %v578_v9, %v577_v8  ;;  %v547_v20 = vld [vmem:[%s5104_s0 + $0xf0] sm:$0xff] }
 0x106   : > { %3676 = vmatprep.subr.bf16.mxu1 %v3675_v56  ;;  %v561_v15 = vld [vmem:[%s5104_s0 + $0x160] sm:$0xff]  ;;  %v562_v19 = vld [vmem:[%s5104_s0 + $0x168] sm:$0xff]  ;;  %v548_v21 = vld [vmem:[%s5104_s0 + $0xf8] sm:$0xff]  ;;  %1093 = vmatprep.mubr.f32.mxu0 %v486_v16  ;;  %v3653_v24 = vpack.c.bf16 %v530_v12, %v529_v11 }
 0x107   : > { %v488_v17 = vld [vmem:[#allocation2 + $0x18] sm:$0xff]  ;;  %v579_v22 = vld [vmem:[%s5104_s0 + $0x1f0] sm:$0xff]  ;;  %v580_v23 = vld [vmem:[%s5104_s0 + $0x1f8] sm:$0xff]  ;;  %v3685_v25 = vpack.c.bf16 %v562_v19, %v561_v15  ;;  %v3655_v26 = vpack.c.bf16 %v548_v21, %v547_v20 }
 0x108   : > { %3646 = vmatpush3.bf16.msra.mxu0 %v3645_v62  ;;  %1163 = vmatprep.mubr.f32.mxu1 %v488_v17  ;;  %v531_v27 = vld [vmem:[%s5104_s0 + $0x70] sm:$0xff]  ;;  %v532_v28 = vld [vmem:[%s5104_s0 + $0x78] sm:$0xff]  ;;  %v3687_v30 = vpack.c.bf16 %v580_v23, %v579_v22  ;;  %v597_v32 = vld [vmem:[%s5104_s0 + $0x280] sm:$0xff] }
 0x109   : > { %3678 = vmatpush3.bf16.msra.mxu1 %v3677_v63  ;;  %3648 = vmatprep.subr.bf16.mxu0 %v3647_v0  ;;  %v563_v29 = vld [vmem:[%s5104_s0 + $0x170] sm:$0xff]  ;;  %v564_v31 = vld [vmem:[%s5104_s0 + $0x178] sm:$0xff]  ;;  %v598_v33 = vld [vmem:[%s5104_s0 + $0x288] sm:$0xff]  ;;  %v3657_v36 = vpack.c.bf16 %v532_v28, %v531_v27 }
 0x10a   : > { %3680 = vmatprep.subr.bf16.mxu1 %v3679_v4  ;;  %v629_v34 = vld [vmem:[%s5104_s0 + $0x380] sm:$0xff]  ;;  %v630_v35 = vld [vmem:[%s5104_s0 + $0x388] sm:$0xff]  ;;  %v3689_v37 = vpack.c.bf16 %v564_v31, %v563_v29  ;;  %v3691_v38 = vpack.c.bf16 %v598_v33, %v597_v32  ;;  %v599_v44 = vld [vmem:[%s5104_s0 + $0x290] sm:$0xff] }
 0x10b   : > { %v581_v39 = vld [vmem:[%s5104_s0 + $0x200] sm:$0xff]  ;;  %v582_v40 = vld [vmem:[%s5104_s0 + $0x208] sm:$0xff]  ;;  %v3723_v42 = vpack.c.bf16 %v630_v35, %v629_v34  ;;  %v600_v45 = vld [vmem:[%s5104_s0 + $0x298] sm:$0xff] }
 0x10c   : > { %3650 = vmatpush3.bf16.msra.mxu0 %v3649_v10  ;;  %v613_v41 = vld [vmem:[%s5104_s0 + $0x300] sm:$0xff]  ;;  %v614_v43 = vld [vmem:[%s5104_s0 + $0x308] sm:$0xff]  ;;  %v631_v46 = vld [vmem:[%s5104_s0 + $0x390] sm:$0xff]  ;;  %v3693_v50 = vpack.c.bf16 %v582_v40, %v581_v39  ;;  %v3695_v52 = vpack.c.bf16 %v600_v45, %v599_v44 }
 0x10d   : > { %3682 = vmatpush3.bf16.msra.mxu1 %v3681_v13  ;;  %3652 = vmatprep.subr.bf16.mxu0 %v3651_v14  ;;  %v632_v47 = vld [vmem:[%s5104_s0 + $0x398] sm:$0xff]  ;;  %v485_v48 = vld [vmem:[#allocation2] sm:$0xff]  ;;  %v3725_v51 = vpack.c.bf16 %v614_v43, %v613_v41  ;;  %v583_v53 = vld [vmem:[%s5104_s0 + $0x210] sm:$0xff] }
 0x10e   : > { %3684 = vmatprep.subr.bf16.mxu1 %v3683_v18  ;;  %v487_v49 = vld [vmem:[#allocation2 + $0x10] sm:$0xff]  ;;  %v615_v55 = vld [vmem:[%s5104_s0 + $0x310] sm:$0xff]  ;;  %v3727_v56 = vpack.c.bf16 %v632_v47, %v631_v46  ;;  %v601_v58 = vld [vmem:[%s5104_s0 + $0x2a0] sm:$0xff] }
 0x10f   : > { %v584_v54 = vld [vmem:[%s5104_s0 + $0x218] sm:$0xff]  ;;  %v602_v59 = vld [vmem:[%s5104_s0 + $0x2a8] sm:$0xff]  ;;  %v633_v60 = vld [vmem:[%s5104_s0 + $0x3a0] sm:$0xff] }
 0x110   : > { %3654 = vmatpush3.bf16.msra.mxu0 %v3653_v24  ;;  %v616_v57 = vld [vmem:[%s5104_s0 + $0x318] sm:$0xff]  ;;  %v634_v61 = vld [vmem:[%s5104_s0 + $0x3a8] sm:$0xff]  ;;  %v3697_v62 = vpack.c.bf16 %v584_v54, %v583_v53  ;;  %v3699_v0 = vpack.c.bf16 %v602_v59, %v601_v58  ;;  %v585_v1 = vld [vmem:[%s5104_s0 + $0x220] sm:$0xff] }
 0x111   : > { %3686 = vmatpush3.bf16.msra.mxu1 %v3685_v25  ;;  %3656 = vmatprep.subr.bf16.mxu0 %v3655_v26  ;;  %v3729_v63 = vpack.c.bf16 %v616_v57, %v615_v55  ;;  %v586_v2 = vld [vmem:[%s5104_s0 + $0x228] sm:$0xff]  ;;  %v617_v3 = vld [vmem:[%s5104_s0 + $0x320] sm:$0xff]  ;;  %v3731_v4 = vpack.c.bf16 %v634_v61, %v633_v60  ;;  %v603_v6 = vld [vmem:[%s5104_s0 + $0x2b0] sm:$0xff] }
 0x112   : > { %3688 = vmatprep.subr.bf16.mxu1 %v3687_v30  ;;  %v618_v5 = vld [vmem:[%s5104_s0 + $0x328] sm:$0xff]  ;;  %v604_v7 = vld [vmem:[%s5104_s0 + $0x2b8] sm:$0xff]  ;;  %v635_v8 = vld [vmem:[%s5104_s0 + $0x3b0] sm:$0xff]  ;;  %v3701_v10 = vpack.c.bf16 %v586_v2, %v585_v1 }
 0x113   : > { %v636_v9 = vld [vmem:[%s5104_s0 + $0x3b8] sm:$0xff]  ;;  %v3733_v11 = vpack.c.bf16 %v618_v5, %v617_v3  ;;  %v3703_v12 = vpack.c.bf16 %v604_v7, %v603_v6  ;;  %v587_v13 = vld [vmem:[%s5104_s0 + $0x230] sm:$0xff]  ;;  %v605_v18 = vld [vmem:[%s5104_s0 + $0x2c0] sm:$0xff] }
 0x114   : > { %3658 = vmatpush3.bf16.msra.mxu0 %v3657_v36  ;;  %v588_v14 = vld [vmem:[%s5104_s0 + $0x238] sm:$0xff]  ;;  %v619_v15 = vld [vmem:[%s5104_s0 + $0x330] sm:$0xff]  ;;  %v3735_v16 = vpack.c.bf16 %v636_v9, %v635_v8  ;;  %v606_v19 = vld [vmem:[%s5104_s0 + $0x2c8] sm:$0xff] }
 0x115   : > { %3690 = vmatpush3.bf16.msra.mxu1 %v3689_v37  ;;  %3692 = vmatprep.subr.bf16.mxu0 %v3691_v38  ;;  %v620_v17 = vld [vmem:[%s5104_s0 + $0x338] sm:$0xff]  ;;  %v637_v20 = vld [vmem:[%s5104_s0 + $0x3c0] sm:$0xff]  ;;  %v638_v21 = vld [vmem:[%s5104_s0 + $0x3c8] sm:$0xff]  ;;  %v3705_v22 = vpack.c.bf16 %v588_v14, %v587_v13  ;;  %v3707_v26 = vpack.c.bf16 %v606_v19, %v605_v18 }
 0x116   : > { %3724 = vmatprep.subr.bf16.mxu1 %v3723_v42  ;;  %v490_v23 = vld [vmem:[#allocation2 + $0x28] sm:$0xff]  ;;  %v492_v24 = vld [vmem:[#allocation2 + $0x38] sm:$0xff]  ;;  %v3737_v25 = vpack.c.bf16 %v620_v17, %v619_v15  ;;  %v590_v28 = vld [vmem:[%s5104_s0 + $0x248] sm:$0xff]  ;;  %v3739_v30 = vpack.c.bf16 %v638_v21, %v637_v20 }
 0x117   : > { %1094 = vmatmul.mubr.f32.vlgmr.msra.gmra.mrb[0].mxu0 %v485_v48  ;;  %v589_v27 = vld [vmem:[%s5104_s0 + $0x240] sm:$0xff]  ;;  %v622_v31 = vld [vmem:[%s5104_s0 + $0x348] sm:$0xff]  ;;  %v607_v32 = vld [vmem:[%s5104_s0 + $0x2d0] sm:$0xff] }
 0x118   : > { %1164 = vmatmul.mubr.f32.vlgmr.msra.gmra.mrb[0].mxu1 %v487_v49  ;;  %3694 = vmatpush3.bf16.msra.mxu0 %v3693_v50  ;;  %v621_v29 = vld [vmem:[%s5104_s0 + $0x340] sm:$0xff]  ;;  %v608_v33 = vld [vmem:[%s5104_s0 + $0x2d8] sm:$0xff]  ;;  %v639_v34 = vld [vmem:[%s5104_s0 + $0x3d0] sm:$0xff]  ;;  %v3709_v36 = vpack.c.bf16 %v590_v28, %v589_v27 }
 0x119   : > { %3726 = vmatpush3.bf16.msra.mxu1 %v3725_v51  ;;  %3696 = vmatprep.subr.bf16.mxu0 %v3695_v52  ;;  %v640_v35 = vld [vmem:[%s5104_s0 + $0x3d8] sm:$0xff]  ;;  %v3741_v37 = vpack.c.bf16 %v622_v31, %v621_v29  ;;  %v3711_v38 = vpack.c.bf16 %v608_v33, %v607_v32  ;;  %v591_v39 = vld [vmem:[%s5104_s0 + $0x250] sm:$0xff]  ;;  %v609_v44 = vld [vmem:[%s5104_s0 + $0x2e0] sm:$0xff] }
 0x11a   : > { %3728 = vmatprep.subr.bf16.mxu1 %v3727_v56  ;;  %1233 = vmatprep.mubr.f32.mxu0 %v490_v23  ;;  %v592_v40 = vld [vmem:[%s5104_s0 + $0x258] sm:$0xff]  ;;  %v623_v41 = vld [vmem:[%s5104_s0 + $0x350] sm:$0xff]  ;;  %v3743_v42 = vpack.c.bf16 %v640_v35, %v639_v34  ;;  %v610_v45 = vld [vmem:[%s5104_s0 + $0x2e8] sm:$0xff] }
 0x11b   : > { %1303 = vmatprep.mubr.f32.mxu1 %v492_v24  ;;  %v624_v43 = vld [vmem:[%s5104_s0 + $0x358] sm:$0xff]  ;;  %v641_v46 = vld [vmem:[%s5104_s0 + $0x3e0] sm:$0xff]  ;;  %v642_v47 = vld [vmem:[%s5104_s0 + $0x3e8] sm:$0xff]  ;;  %v3713_v48 = vpack.c.bf16 %v592_v40, %v591_v39  ;;  %v3715_v50 = vpack.c.bf16 %v610_v45, %v609_v44 }
 0x11c   : > { %3698 = vmatpush3.bf16.msra.mxu0 %v3697_v62  ;;  %v3745_v49 = vpack.c.bf16 %v624_v43, %v623_v41  ;;  %v593_v51 = vld [vmem:[%s5104_s0 + $0x260] sm:$0xff]  ;;  %v594_v52 = vld [vmem:[%s5104_s0 + $0x268] sm:$0xff]  ;;  %v3747_v54 = vpack.c.bf16 %v642_v47, %v641_v46  ;;  %v611_v56 = vld [vmem:[%s5104_s0 + $0x2f0] sm:$0xff] }
 0x11d   : > { %3730 = vmatpush3.bf16.msra.mxu1 %v3729_v63  ;;  %3700 = vmatprep.subr.bf16.mxu0 %v3699_v0  ;;  %v625_v53 = vld [vmem:[%s5104_s0 + $0x360] sm:$0xff]  ;;  %v626_v55 = vld [vmem:[%s5104_s0 + $0x368] sm:$0xff]  ;;  %v612_v57 = vld [vmem:[%s5104_s0 + $0x2f8] sm:$0xff]  ;;  %v3717_v60 = vpack.c.bf16 %v594_v52, %v593_v51 }
 0x11e   : > { %3732 = vmatprep.subr.bf16.mxu1 %v3731_v4  ;;  %v643_v58 = vld [vmem:[%s5104_s0 + $0x3f0] sm:$0xff]  ;;  %v644_v59 = vld [vmem:[%s5104_s0 + $0x3f8] sm:$0xff]  ;;  %v3749_v61 = vpack.c.bf16 %v626_v55, %v625_v53  ;;  %v3719_v62 = vpack.c.bf16 %v612_v57, %v611_v56  ;;  %v661_v4 = vld [vmem:[%s5104_s0 + $0x480] sm:$0xff] }
 0x11f   : > { %v595_v63 = vld [vmem:[%s5104_s0 + $0x270] sm:$0xff]  ;;  %v596_v0 = vld [vmem:[%s5104_s0 + $0x278] sm:$0xff]  ;;  %v3751_v2 = vpack.c.bf16 %v644_v59, %v643_v58  ;;  %v662_v5 = vld [vmem:[%s5104_s0 + $0x488] sm:$0xff] }
 0x120   : > { %3702 = vmatpush3.bf16.msra.mxu0 %v3701_v10  ;;  %v627_v1 = vld [vmem:[%s5104_s0 + $0x370] sm:$0xff]  ;;  %v628_v3 = vld [vmem:[%s5104_s0 + $0x378] sm:$0xff]  ;;  %v693_v6 = vld [vmem:[%s5104_s0 + $0x580] sm:$0xff]  ;;  %v3721_v8 = vpack.c.bf16 %v596_v0, %v595_v63  ;;  %v3755_v10 = vpack.c.bf16 %v662_v5, %v661_v4 }
 0x121   : > { %3734 = vmatpush3.bf16.msra.mxu1 %v3733_v11  ;;  %3704 = vmatprep.subr.bf16.mxu0 %v3703_v12  ;;  %v694_v7 = vld [vmem:[%s5104_s0 + $0x588] sm:$0xff]  ;;  %v3753_v9 = vpack.c.bf16 %v628_v3, %v627_v1  ;;  %v645_v11 = vld [vmem:[%s5104_s0 + $0x400] sm:$0xff]  ;;  %v664_v17 = vld [vmem:[%s5104_s0 + $0x498] sm:$0xff] }
 0x122   : > { %3736 = vmatprep.subr.bf16.mxu1 %v3735_v16  ;;  %v646_v12 = vld [vmem:[%s5104_s0 + $0x408] sm:$0xff]  ;;  %v677_v13 = vld [vmem:[%s5104_s0 + $0x500] sm:$0xff]  ;;  %v3787_v14 = vpack.c.bf16 %v694_v7, %v693_v6  ;;  %v663_v16 = vld [vmem:[%s5104_s0 + $0x490] sm:$0xff] }
 0x123   : > { %v678_v15 = vld [vmem:[%s5104_s0 + $0x508] sm:$0xff]  ;;  %v695_v18 = vld [vmem:[%s5104_s0 + $0x590] sm:$0xff]  ;;  %v696_v19 = vld [vmem:[%s5104_s0 + $0x598] sm:$0xff]  ;;  %v3759_v24 = vpack.c.bf16 %v664_v17, %v663_v16 }
 0x124   : > { %3706 = vmatpush3.bf16.msra.mxu0 %v3705_v22  ;;  %v489_v20 = vld [vmem:[#allocation2 + $0x20] sm:$0xff]  ;;  %v491_v21 = vld [vmem:[#allocation2 + $0x30] sm:$0xff]  ;;  %v3757_v22 = vpack.c.bf16 %v646_v12, %v645_v11  ;;  %v3789_v23 = vpack.c.bf16 %v678_v15, %v677_v13  ;;  %v679_v27 = vld [vmem:[%s5104_s0 + $0x510] sm:$0xff]  ;;  %v3791_v28 = vpack.c.bf16 %v696_v19, %v695_v18 }
 0x125   : > { %3738 = vmatpush3.bf16.msra.mxu1 %v3737_v25  ;;  %3708 = vmatprep.subr.bf16.mxu0 %v3707_v26  ;;  %v647_v25 = vld [vmem:[%s5104_s0 + $0x410] sm:$0xff]  ;;  %v648_v26 = vld [vmem:[%s5104_s0 + $0x418] sm:$0xff]  ;;  %v666_v31 = vld [vmem:[%s5104_s0 + $0x4a8] sm:$0xff] }
 0x126   : > { %3740 = vmatprep.subr.bf16.mxu1 %v3739_v30  ;;  %v680_v29 = vld [vmem:[%s5104_s0 + $0x518] sm:$0xff]  ;;  %v665_v30 = vld [vmem:[%s5104_s0 + $0x4a0] sm:$0xff]  ;;  %v698_v33 = vld [vmem:[%s5104_s0 + $0x5a8] sm:$0xff]  ;;  %v3761_v35 = vpack.c.bf16 %v648_v26, %v647_v25 }
 0x127   : > { %v697_v32 = vld [vmem:[%s5104_s0 + $0x5a0] sm:$0xff]  ;;  %v494_v34 = vld [vmem:[#allocation2 + $0x48] sm:$0xff]  ;;  %v650_v40 = vld [vmem:[%s5104_s0 + $0x428] sm:$0xff] }
 0x128   : > { %3710 = vmatpush3.bf16.msra.mxu0 %v3709_v36  ;;  %v496_v36 = vld [vmem:[#allocation2 + $0x58] sm:$0xff]  ;;  %v682_v43 = vld [vmem:[%s5104_s0 + $0x528] sm:$0xff]  ;;  %v667_v44 = vld [vmem:[%s5104_s0 + $0x4b0] sm:$0xff] }
 0x129   : > { %3742 = vmatpush3.bf16.msra.mxu1 %v3741_v37  ;;  %3712 = vmatprep.subr.bf16.mxu0 %v3711_v38  ;;  %v3793_v37 = vpack.c.bf16 %v680_v29, %v679_v27  ;;  %v3763_v38 = vpack.c.bf16 %v666_v31, %v665_v30  ;;  %v649_v39 = vld [vmem:[%s5104_s0 + $0x420] sm:$0xff]  ;;  %v668_v45 = vld [vmem:[%s5104_s0 + $0x4b8] sm:$0xff]  ;;  %v699_v46 = vld [vmem:[%s5104_s0 + $0x5b0] sm:$0xff] }
 0x12a   : > { %3744 = vmatprep.subr.bf16.mxu1 %v3743_v42  ;;  %v681_v41 = vld [vmem:[%s5104_s0 + $0x520] sm:$0xff]  ;;  %v3795_v42 = vpack.c.bf16 %v698_v33, %v697_v32  ;;  %v700_v47 = vld [vmem:[%s5104_s0 + $0x5b8] sm:$0xff]  ;;  %v651_v51 = vld [vmem:[%s5104_s0 + $0x430] sm:$0xff] }
 0x12b   : > { %v652_v52 = vld [vmem:[%s5104_s0 + $0x438] sm:$0xff]  ;;  %v683_v53 = vld [vmem:[%s5104_s0 + $0x530] sm:$0xff]  ;;  %v669_v56 = vld [vmem:[%s5104_s0 + $0x4c0] sm:$0xff] }
 0x12c   : > { %3714 = vmatpush3.bf16.msra.mxu0 %v3713_v48  ;;  %v3765_v48 = vpack.c.bf16 %v650_v40, %v649_v39  ;;  %v684_v55 = vld [vmem:[%s5104_s0 + $0x538] sm:$0xff]  ;;  %v670_v57 = vld [vmem:[%s5104_s0 + $0x4c8] sm:$0xff]  ;;  %v701_v58 = vld [vmem:[%s5104_s0 + $0x5c0] sm:$0xff] }
 0x12d   : > { %3746 = vmatpush3.bf16.msra.mxu1 %v3745_v49  ;;  %3716 = vmatprep.subr.bf16.mxu0 %v3715_v50  ;;  %v3797_v49 = vpack.c.bf16 %v682_v43, %v681_v41  ;;  %v3767_v50 = vpack.c.bf16 %v668_v45, %v667_v44  ;;  %v702_v59 = vld [vmem:[%s5104_s0 + $0x5c8] sm:$0xff]  ;;  %v653_v63 = vld [vmem:[%s5104_s0 + $0x440] sm:$0xff]  ;;  %v671_v4 = vld [vmem:[%s5104_s0 + $0x4d0] sm:$0xff] }
 0x12e   : > { %3748 = vmatprep.subr.bf16.mxu1 %v3747_v54  ;;  %v3799_v54 = vpack.c.bf16 %v700_v47, %v699_v46  ;;  %v654_v0 = vld [vmem:[%s5104_s0 + $0x448] sm:$0xff]  ;;  %v685_v1 = vld [vmem:[%s5104_s0 + $0x540] sm:$0xff]  ;;  %v672_v5 = vld [vmem:[%s5104_s0 + $0x4d8] sm:$0xff] }
 0x12f   : > { %v686_v3 = vld [vmem:[%s5104_s0 + $0x548] sm:$0xff]  ;;  %v703_v6 = vld [vmem:[%s5104_s0 + $0x5d0] sm:$0xff]  ;;  %v704_v7 = vld [vmem:[%s5104_s0 + $0x5d8] sm:$0xff] }
 0x130   : > { %3718 = vmatpush3.bf16.msra.mxu0 %v3717_v60  ;;  %v3769_v60 = vpack.c.bf16 %v652_v52, %v651_v51  ;;  %v655_v11 = vld [vmem:[%s5104_s0 + $0x450] sm:$0xff]  ;;  %v656_v12 = vld [vmem:[%s5104_s0 + $0x458] sm:$0xff]  ;;  %v673_v16 = vld [vmem:[%s5104_s0 + $0x4e0] sm:$0xff] }
 0x131   : > { %3750 = vmatpush3.bf16.msra.mxu1 %v3749_v61  ;;  %3720 = vmatprep.subr.bf16.mxu0 %v3719_v62  ;;  %v3801_v61 = vpack.c.bf16 %v684_v55, %v683_v53  ;;  %v3771_v62 = vpack.c.bf16 %v670_v57, %v669_v56  ;;  %v687_v13 = vld [vmem:[%s5104_s0 + $0x550] sm:$0xff]  ;;  %v688_v15 = vld [vmem:[%s5104_s0 + $0x558] sm:$0xff]  ;;  %v674_v17 = vld [vmem:[%s5104_s0 + $0x4e8] sm:$0xff] }
 0x132   : > { %3752 = vmatprep.subr.bf16.mxu1 %v3751_v2  ;;  %v3803_v2 = vpack.c.bf16 %v702_v59, %v701_v58  ;;  %v705_v18 = vld [vmem:[%s5104_s0 + $0x5e0] sm:$0xff]  ;;  %v706_v19 = vld [vmem:[%s5104_s0 + $0x5e8] sm:$0xff]  ;;  %v676_v29 = vld [vmem:[%s5104_s0 + $0x4f8] sm:$0xff] }
 0x133   : > { %v689_v25 = vld [vmem:[%s5104_s0 + $0x560] sm:$0xff]  ;;  %v3811_v26 = vpack.c.bf16 %v706_v19, %v705_v18  ;;  %v690_v27 = vld [vmem:[%s5104_s0 + $0x568] sm:$0xff]  ;;  %v707_v30 = vld [vmem:[%s5104_s0 + $0x5f0] sm:$0xff] }
 0x134   : > { %3722 = vmatpush3.bf16.msra.mxu0 %v3721_v8  ;;  %v3773_v8 = vpack.c.bf16 %v654_v0, %v653_v63  ;;  %v708_v31 = vld [vmem:[%s5104_s0 + $0x5f8] sm:$0xff]  ;;  %v3813_v33 = vpack.c.bf16 %v690_v27, %v689_v25  ;;  %v725_v40 = vld [vmem:[%s5104_s0 + $0x680] sm:$0xff]  ;;  %v726_v41 = vld [vmem:[%s5104_s0 + $0x688] sm:$0xff] }
 0x135   : > { %3754 = vmatpush3.bf16.msra.mxu1 %v3753_v9  ;;  %3756 = vmatprep.subr.bf16.mxu0 %v3755_v10  ;;  %v3805_v9 = vpack.c.bf16 %v686_v3, %v685_v1  ;;  %v3775_v10 = vpack.c.bf16 %v672_v5, %v671_v4  ;;  %v692_v39 = vld [vmem:[%s5104_s0 + $0x578] sm:$0xff]  ;;  %v758_v43 = vld [vmem:[%s5104_s0 + $0x788] sm:$0xff]  ;;  %v3819_v46 = vpack.c.bf16 %v726_v41, %v725_v40  ;;  %v709_v47 = vld [vmem:[%s5104_s0 + $0x600] sm:$0xff] }
 0x136   : > { %3788 = vmatprep.subr.bf16.mxu1 %v3787_v14  ;;  %v3807_v14 = vpack.c.bf16 %v704_v7, %v703_v6  ;;  %v742_v51 = vld [vmem:[%s5104_s0 + $0x708] sm:$0xff]  ;;  %v727_v52 = vld [vmem:[%s5104_s0 + $0x690] sm:$0xff]  ;;  %v728_v53 = vld [vmem:[%s5104_s0 + $0x698] sm:$0xff] }
 0x137   : > { %1234 = vmatmul.mubr.f32.vlgmr.msra.gmra.mrb[2].mxu0 %v489_v20  ;;  %v3777_v20 = vpack.c.bf16 %v656_v12, %v655_v11  ;;  %v760_v55 = vld [vmem:[%s5104_s0 + $0x798] sm:$0xff]  ;;  %v493_v56 = vld [vmem:[#allocation2 + $0x40] sm:$0xff]  ;;  %v743_v63 = vld [vmem:[%s5104_s0 + $0x710] sm:$0xff] }
 0x138   : > { %1304 = vmatmul.mubr.f32.vlgmr.msra.gmra.mrb[2].mxu1 %v491_v21  ;;  %3758 = vmatpush3.bf16.msra.mxu0 %v3757_v22  ;;  %v3809_v21 = vpack.c.bf16 %v688_v15, %v687_v13  ;;  %v3779_v22 = vpack.c.bf16 %v674_v17, %v673_v16  ;;  %v495_v57 = vld [vmem:[#allocation2 + $0x50] sm:$0xff]  ;;  %v730_v3 = vld [vmem:[%s5104_s0 + $0x6a8] sm:$0xff]  ;;  %v761_v4 = vld [vmem:[%s5104_s0 + $0x7a0] sm:$0xff] }
 0x139   : > { %3790 = vmatpush3.bf16.msra.mxu1 %v3789_v23  ;;  %3760 = vmatprep.subr.bf16.mxu0 %v3759_v24  ;;  %v657_v23 = vld [vmem:[%s5104_s0 + $0x460] sm:$0xff]  ;;  %v658_v24 = vld [vmem:[%s5104_s0 + $0x468] sm:$0xff]  ;;  %v744_v1 = vld [vmem:[%s5104_s0 + $0x718] sm:$0xff] }
 0x13a   : > { %3792 = vmatprep.subr.bf16.mxu1 %v3791_v28  ;;  %1373 = vmatprep.mubr.f32.mxu0 %v494_v34  ;;  %v675_v28 = vld [vmem:[%s5104_s0 + $0x4f0] sm:$0xff]  ;;  %v3781_v32 = vpack.c.bf16 %v658_v24, %v657_v23  ;;  %v762_v5 = vld [vmem:[%s5104_s0 + $0x7a8] sm:$0xff]  ;;  %v713_v11 = vld [vmem:[%s5104_s0 + $0x620] sm:$0xff] }
 0x13b   : > { %1443 = vmatprep.mubr.f32.mxu1 %v496_v36  ;;  %v3783_v34 = vpack.c.bf16 %v676_v29, %v675_v28  ;;  %v660_v36 = vld [vmem:[%s5104_s0 + $0x478] sm:$0xff]  ;;  %v498_v6 = vld [vmem:[#allocation2 + $0x68] sm:$0xff]  ;;  %v714_v12 = vld [vmem:[%s5104_s0 + $0x628] sm:$0xff] }
 0x13c   : > { %3762 = vmatpush3.bf16.msra.mxu0 %v3761_v35  ;;  %v659_v35 = vld [vmem:[%s5104_s0 + $0x470] sm:$0xff]  ;;  %v745_v13 = vld [vmem:[%s5104_s0 + $0x720] sm:$0xff]  ;;  %v746_v15 = vld [vmem:[%s5104_s0 + $0x728] sm:$0xff] }
 0x13d   : > { %3794 = vmatpush3.bf16.msra.mxu1 %v3793_v37  ;;  %3764 = vmatprep.subr.bf16.mxu0 %v3763_v38  ;;  %v691_v37 = vld [vmem:[%s5104_s0 + $0x570] sm:$0xff]  ;;  %v3815_v38 = vpack.c.bf16 %v708_v31, %v707_v30  ;;  %v3785_v44 = vpack.c.bf16 %v660_v36, %v659_v35  ;;  %v732_v17 = vld [vmem:[%s5104_s0 + $0x6b8] sm:$0xff]  ;;  %v733_v28 = vld [vmem:[%s5104_s0 + $0x6c0] sm:$0xff] }
 0x13e   : > { %3796 = vmatprep.subr.bf16.mxu1 %v3795_v42  ;;  %v757_v42 = vld [vmem:[%s5104_s0 + $0x780] sm:$0xff]  ;;  %v3817_v45 = vpack.c.bf16 %v692_v39, %v691_v37  ;;  %v731_v16 = vld [vmem:[%s5104_s0 + $0x6b0] sm:$0xff]  ;;  %v764_v19 = vld [vmem:[%s5104_s0 + $0x7b8] sm:$0xff] }
 0x13f   : > { %v763_v18 = vld [vmem:[%s5104_s0 + $0x7b0] sm:$0xff]  ;;  %v716_v24 = vld [vmem:[%s5104_s0 + $0x638] sm:$0xff]  ;;  %v734_v29 = vld [vmem:[%s5104_s0 + $0x6c8] sm:$0xff] }
 0x140   : > { %3766 = vmatpush3.bf16.msra.mxu0 %v3765_v48  ;;  %v710_v48 = vld [vmem:[%s5104_s0 + $0x608] sm:$0xff]  ;;  %v715_v23 = vld [vmem:[%s5104_s0 + $0x630] sm:$0xff]  ;;  %v748_v27 = vld [vmem:[%s5104_s0 + $0x738] sm:$0xff] }
 0x141   : > { %3798 = vmatpush3.bf16.msra.mxu1 %v3797_v49  ;;  %3768 = vmatprep.subr.bf16.mxu0 %v3767_v50  ;;  %v741_v49 = vld [vmem:[%s5104_s0 + $0x700] sm:$0xff]  ;;  %v3851_v50 = vpack.c.bf16 %v758_v43, %v757_v42  ;;  %v3821_v58 = vpack.c.bf16 %v710_v48, %v709_v47  ;;  %v747_v25 = vld [vmem:[%s5104_s0 + $0x730] sm:$0xff]  ;;  %v766_v31 = vld [vmem:[%s5104_s0 + $0x7c8] sm:$0xff] }
 0x142   : > { %3800 = vmatprep.subr.bf16.mxu1 %v3799_v54  ;;  %v759_v54 = vld [vmem:[%s5104_s0 + $0x790] sm:$0xff]  ;;  %v3853_v59 = vpack.c.bf16 %v742_v51, %v741_v49  ;;  %v765_v30 = vld [vmem:[%s5104_s0 + $0x7c0] sm:$0xff]  ;;  %v718_v36 = vld [vmem:[%s5104_s0 + $0x648] sm:$0xff] }
 0x143   : > { %v3855_v0 = vpack.c.bf16 %v760_v55, %v759_v54  ;;  %v717_v35 = vld [vmem:[%s5104_s0 + $0x640] sm:$0xff]  ;;  %v750_v39 = vld [vmem:[%s5104_s0 + $0x748] sm:$0xff]  ;;  %v735_v40 = vld [vmem:[%s5104_s0 + $0x6d0] sm:$0xff] }
 0x144   : > { %3770 = vmatpush3.bf16.msra.mxu0 %v3769_v60  ;;  %v3823_v60 = vpack.c.bf16 %v728_v53, %v727_v52  ;;  %v749_v37 = vld [vmem:[%s5104_s0 + $0x740] sm:$0xff]  ;;  %v736_v41 = vld [vmem:[%s5104_s0 + $0x6d8] sm:$0xff]  ;;  %v767_v42 = vld [vmem:[%s5104_s0 + $0x7d0] sm:$0xff] }
 0x145   : > { %3802 = vmatpush3.bf16.msra.mxu1 %v3801_v61  ;;  %3772 = vmatprep.subr.bf16.mxu0 %v3771_v62  ;;  %v711_v61 = vld [vmem:[%s5104_s0 + $0x610] sm:$0xff]  ;;  %v712_v62 = vld [vmem:[%s5104_s0 + $0x618] sm:$0xff]  ;;  %v737_v52 = vld [vmem:[%s5104_s0 + $0x6e0] sm:$0xff] }
 0x146   : > { %3804 = vmatprep.subr.bf16.mxu1 %v3803_v2  ;;  %v729_v2 = vld [vmem:[%s5104_s0 + $0x6a0] sm:$0xff]  ;;  %v3825_v7 = vpack.c.bf16 %v712_v62, %v711_v61  ;;  %v768_v43 = vld [vmem:[%s5104_s0 + $0x7d8] sm:$0xff]  ;;  %v719_v47 = vld [vmem:[%s5104_s0 + $0x650] sm:$0xff] }
 0x147   : > { %v720_v48 = vld [vmem:[%s5104_s0 + $0x658] sm:$0xff]  ;;  %v751_v49 = vld [vmem:[%s5104_s0 + $0x750] sm:$0xff]  ;;  %v738_v53 = vld [vmem:[%s5104_s0 + $0x6e8] sm:$0xff] }
 0x148   : > { %3774 = vmatpush3.bf16.msra.mxu0 %v3773_v8  ;;  %v500_v8 = vld [vmem:[#allocation2 + $0x78] sm:$0xff]  ;;  %v752_v51 = vld [vmem:[%s5104_s0 + $0x758] sm:$0xff]  ;;  %v770_v55 = vld [vmem:[%s5104_s0 + $0x7e8] sm:$0xff] }
 0x149   : > { %3806 = vmatpush3.bf16.msra.mxu1 %v3805_v9  ;;  %3776 = vmatprep.subr.bf16.mxu0 %v3775_v10  ;;  %v3857_v9 = vpack.c.bf16 %v744_v1, %v743_v63  ;;  %v3827_v10 = vpack.c.bf16 %v730_v3, %v729_v2  ;;  %v769_v54 = vld [vmem:[%s5104_s0 + $0x7e0] sm:$0xff]  ;;  %v754_v63 = vld [vmem:[%s5104_s0 + $0x768] sm:$0xff]  ;;  %v740_v1 = vld [vmem:[%s5104_s0 + $0x6f8] sm:$0xff] }
 0x14a   : > { %3808 = vmatprep.subr.bf16.mxu1 %v3807_v14  ;;  %v3859_v14 = vpack.c.bf16 %v762_v5, %v761_v4  ;;  %v753_v61 = vld [vmem:[%s5104_s0 + $0x760] sm:$0xff]  ;;  %v3875_v62 = vpack.c.bf16 %v770_v55, %v769_v54  ;;  %v771_v2 = vld [vmem:[%s5104_s0 + $0x7f0] sm:$0xff]  ;;  %v772_v3 = vld [vmem:[%s5104_s0 + $0x7f8] sm:$0xff] }
 0x14b   : > { %v3877_v5 = vpack.c.bf16 %v754_v63, %v753_v61  ;;  %v827_v54 = vld [vmem:[%s5104_s0 + $0x9b0] sm:$0xff]  ;;  %v828_v55 = vld [vmem:[%s5104_s0 + $0x9b8] sm:$0xff] }
 0x14c   : > { %3778 = vmatpush3.bf16.msra.mxu0 %v3777_v20  ;;  %v3829_v20 = vpack.c.bf16 %v714_v12, %v713_v11  ;;  %v756_v11 = vld [vmem:[%s5104_s0 + $0x778] sm:$0xff]  ;;  %v789_v12 = vld [vmem:[%s5104_s0 + $0x880] sm:$0xff]  ;;  %v811_v61 = vld [vmem:[%s5104_s0 + $0x930] sm:$0xff] }
 0x14d   : > { %3810 = vmatpush3.bf16.msra.mxu1 %v3809_v21  ;;  %3780 = vmatprep.subr.bf16.mxu0 %v3779_v22  ;;  %v3861_v21 = vpack.c.bf16 %v746_v15, %v745_v13  ;;  %v3831_v22 = vpack.c.bf16 %v732_v17, %v731_v16  ;;  %v790_v13 = vld [vmem:[%s5104_s0 + $0x888] sm:$0xff]  ;;  %v812_v63 = vld [vmem:[%s5104_s0 + $0x938] sm:$0xff] }
 0x14e   : > { %3812 = vmatprep.subr.bf16.mxu1 %v3811_v26  ;;  %v3863_v26 = vpack.c.bf16 %v764_v19, %v763_v18  ;;  %v822_v15 = vld [vmem:[%s5104_s0 + $0x988] sm:$0xff]  ;;  %v3883_v18 = vpack.c.bf16 %v790_v13, %v789_v12  ;;  %v773_v19 = vld [vmem:[%s5104_s0 + $0x800] sm:$0xff]  ;;  %v799_v12 = vld [vmem:[%s5104_s0 + $0x8d0] sm:$0xff] }
 0x14f   : > { %v800_v13 = vld [vmem:[%s5104_s0 + $0x8d8] sm:$0xff] }
 0x150   : > { %3782 = vmatpush3.bf16.msra.mxu0 %v3781_v32  ;;  %v3833_v32 = vpack.c.bf16 %v716_v24, %v715_v23  ;;  %v806_v23 = vld [vmem:[%s5104_s0 + $0x908] sm:$0xff]  ;;  %v791_v24 = vld [vmem:[%s5104_s0 + $0x890] sm:$0xff] }
 0x151   : > { %3814 = vmatpush3.bf16.msra.mxu1 %v3813_v33  ;;  %3784 = vmatprep.subr.bf16.mxu0 %v3783_v34  ;;  %v3865_v33 = vpack.c.bf16 %v748_v27, %v747_v25  ;;  %v3835_v34 = vpack.c.bf16 %v734_v29, %v733_v28  ;;  %v792_v25 = vld [vmem:[%s5104_s0 + $0x898] sm:$0xff]  ;;  %v497_v28 = vld [vmem:[#allocation2 + $0x60] sm:$0xff] }
 0x152   : > { %3816 = vmatprep.subr.bf16.mxu1 %v3815_v38  ;;  %v3867_v38 = vpack.c.bf16 %v766_v31, %v765_v30  ;;  %v824_v27 = vld [vmem:[%s5104_s0 + $0x998] sm:$0xff] }
 0x153   : > { %v499_v29 = vld [vmem:[#allocation2 + $0x70] sm:$0xff] }
 0x154   : > { %3786 = vmatpush3.bf16.msra.mxu0 %v3785_v44  ;;  %v3837_v44 = vpack.c.bf16 %v718_v36, %v717_v35  ;;  %v807_v35 = vld [vmem:[%s5104_s0 + $0x910] sm:$0xff] }
 0x155   : > { %3818 = vmatpush3.bf16.msra.mxu1 %v3817_v45  ;;  %3820 = vmatprep.subr.bf16.mxu0 %v3819_v46  ;;  %v3869_v45 = vpack.c.bf16 %v750_v39, %v749_v37  ;;  %v3839_v46 = vpack.c.bf16 %v736_v41, %v735_v40  ;;  %v808_v37 = vld [vmem:[%s5104_s0 + $0x918] sm:$0xff]  ;;  %v794_v39 = vld [vmem:[%s5104_s0 + $0x8a8] sm:$0xff]  ;;  %v825_v40 = vld [vmem:[%s5104_s0 + $0x9a0] sm:$0xff] }
 0x156   : > { %3852 = vmatprep.subr.bf16.mxu1 %v3851_v50  ;;  %v3871_v50 = vpack.c.bf16 %v768_v43, %v767_v42  ;;  %v826_v41 = vld [vmem:[%s5104_s0 + $0x9a8] sm:$0xff]  ;;  %v502_v42 = vld [vmem:[#allocation2 + $0x88] sm:$0xff] }
 0x157   : > { %1374 = vmatmul.mubr.f32.vlgmr.msra.gmra.mrb[4].mxu0 %v493_v56  ;;  %v3841_v56 = vpack.c.bf16 %v720_v48, %v719_v47  ;;  %v777_v47 = vld [vmem:[%s5104_s0 + $0x820] sm:$0xff]  ;;  %v778_v48 = vld [vmem:[%s5104_s0 + $0x828] sm:$0xff] }
 0x158   : > { %1444 = vmatmul.mubr.f32.vlgmr.msra.gmra.mrb[4].mxu1 %v495_v57  ;;  %3822 = vmatpush3.bf16.msra.mxu0 %v3821_v58  ;;  %v3873_v57 = vpack.c.bf16 %v752_v51, %v751_v49  ;;  %v3843_v58 = vpack.c.bf16 %v738_v53, %v737_v52  ;;  %v809_v49 = vld [vmem:[%s5104_s0 + $0x920] sm:$0xff]  ;;  %v810_v51 = vld [vmem:[%s5104_s0 + $0x928] sm:$0xff]  ;;  %v795_v52 = vld [vmem:[%s5104_s0 + $0x8b0] sm:$0xff] }
 0x159   : > { %3854 = vmatpush3.bf16.msra.mxu1 %v3853_v59  ;;  %3824 = vmatprep.subr.bf16.mxu0 %v3823_v60  ;;  %v721_v59 = vld [vmem:[%s5104_s0 + $0x660] sm:$0xff]  ;;  %v722_v60 = vld [vmem:[%s5104_s0 + $0x668] sm:$0xff]  ;;  %v796_v53 = vld [vmem:[%s5104_s0 + $0x8b8] sm:$0xff] }
 0x15a   : > { %3856 = vmatprep.subr.bf16.mxu1 %v3855_v0  ;;  %1513 = vmatprep.mubr.f32.mxu0 %v498_v6  ;;  %v739_v0 = vld [vmem:[%s5104_s0 + $0x6f0] sm:$0xff]  ;;  %v3845_v4 = vpack.c.bf16 %v722_v60, %v721_v59  ;;  %v780_v60 = vld [vmem:[%s5104_s0 + $0x838] sm:$0xff] }
 0x15b   : > { %1583 = vmatprep.mubr.f32.mxu1 %v500_v8  ;;  %v3847_v6 = vpack.c.bf16 %v740_v1, %v739_v0  ;;  %v724_v8 = vld [vmem:[%s5104_s0 + $0x678] sm:$0xff]  ;;  %v779_v59 = vld [vmem:[%s5104_s0 + $0x830] sm:$0xff]  ;;  %v797_v0 = vld [vmem:[%s5104_s0 + $0x8c0] sm:$0xff] }
 0x15c   : > { %3826 = vmatpush3.bf16.msra.mxu0 %v3825_v7  ;;  %v723_v7 = vld [vmem:[%s5104_s0 + $0x670] sm:$0xff]  ;;  %v798_v1 = vld [vmem:[%s5104_s0 + $0x8c8] sm:$0xff] }
 0x15d   : > { %3858 = vmatpush3.bf16.msra.mxu1 %v3857_v9  ;;  %3828 = vmatprep.subr.bf16.mxu0 %v3827_v10  ;;  %v755_v9 = vld [vmem:[%s5104_s0 + $0x770] sm:$0xff]  ;;  %v3879_v10 = vpack.c.bf16 %v772_v3, %v771_v2  ;;  %v3849_v16 = vpack.c.bf16 %v724_v8, %v723_v7  ;;  %v829_v2 = vld [vmem:[%s5104_s0 + $0x9c0] sm:$0xff]  ;;  %v830_v3 = vld [vmem:[%s5104_s0 + $0x9c8] sm:$0xff] }
 0x15e   : > { %3860 = vmatprep.subr.bf16.mxu1 %v3859_v14  ;;  %v821_v14 = vld [vmem:[%s5104_s0 + $0x980] sm:$0xff]  ;;  %v3881_v17 = vpack.c.bf16 %v756_v11, %v755_v9  ;;  %v782_v8 = vld [vmem:[%s5104_s0 + $0x848] sm:$0xff] }
 0x15f   : > { %v781_v7 = vld [vmem:[%s5104_s0 + $0x840] sm:$0xff]  ;;  %v814_v11 = vld [vmem:[%s5104_s0 + $0x948] sm:$0xff] }
 0x160   : > { %3830 = vmatpush3.bf16.msra.mxu0 %v3829_v20  ;;  %v774_v20 = vld [vmem:[%s5104_s0 + $0x808] sm:$0xff]  ;;  %v813_v9 = vld [vmem:[%s5104_s0 + $0x940] sm:$0xff] }
 0x161   : > { %3862 = vmatpush3.bf16.msra.mxu1 %v3861_v21  ;;  %3832 = vmatprep.subr.bf16.mxu0 %v3831_v22  ;;  %v805_v21 = vld [vmem:[%s5104_s0 + $0x900] sm:$0xff]  ;;  %v3915_v22 = vpack.c.bf16 %v822_v15, %v821_v14  ;;  %v3885_v30 = vpack.c.bf16 %v774_v20, %v773_v19  ;;  %v831_v14 = vld [vmem:[%s5104_s0 + $0x9d0] sm:$0xff]  ;;  %v832_v15 = vld [vmem:[%s5104_s0 + $0x9d8] sm:$0xff] }
 0x162   : > { %3864 = vmatprep.subr.bf16.mxu1 %v3863_v26  ;;  %v823_v26 = vld [vmem:[%s5104_s0 + $0x990] sm:$0xff]  ;;  %v3917_v31 = vpack.c.bf16 %v806_v23, %v805_v21  ;;  %v784_v20 = vld [vmem:[%s5104_s0 + $0x858] sm:$0xff] }
 0x163   : > { %v3919_v36 = vpack.c.bf16 %v824_v27, %v823_v26  ;;  %v783_v19 = vld [vmem:[%s5104_s0 + $0x850] sm:$0xff]  ;;  %v816_v23 = vld [vmem:[%s5104_s0 + $0x958] sm:$0xff]  ;;  %v833_v26 = vld [vmem:[%s5104_s0 + $0x9e0] sm:$0xff] }
 0x164   : > { %3834 = vmatpush3.bf16.msra.mxu0 %v3833_v32  ;;  %v3887_v32 = vpack.c.bf16 %v792_v25, %v791_v24  ;;  %v815_v21 = vld [vmem:[%s5104_s0 + $0x950] sm:$0xff]  ;;  %v801_v24 = vld [vmem:[%s5104_s0 + $0x8e0] sm:$0xff]  ;;  %v802_v25 = vld [vmem:[%s5104_s0 + $0x8e8] sm:$0xff] }
 0x165   : > { %3866 = vmatpush3.bf16.msra.mxu1 %v3865_v33  ;;  %3836 = vmatprep.subr.bf16.mxu0 %v3835_v34  ;;  %v775_v33 = vld [vmem:[%s5104_s0 + $0x810] sm:$0xff]  ;;  %v776_v34 = vld [vmem:[%s5104_s0 + $0x818] sm:$0xff]  ;;  %v834_v27 = vld [vmem:[%s5104_s0 + $0x9e8] sm:$0xff] }
 0x166   : > { %3868 = vmatprep.subr.bf16.mxu1 %v3867_v38  ;;  %v793_v38 = vld [vmem:[%s5104_s0 + $0x8a0] sm:$0xff]  ;;  %v3889_v43 = vpack.c.bf16 %v776_v34, %v775_v33  ;;  %v3939_v34 = vpack.c.bf16 %v834_v27, %v833_v26  ;;  %v891_v26 = vld [vmem:[%s5104_s0 + $0xbb0] sm:$0xff]  ;;  %v892_v27 = vld [vmem:[%s5104_s0 + $0xbb8] sm:$0xff] }
 0x167   : > { %v817_v33 = vld [vmem:[%s5104_s0 + $0x960] sm:$0xff] }
 0x168   : > { %3838 = vmatpush3.bf16.msra.mxu0 %v3837_v44  ;;  %v504_v44 = vld [vmem:[#allocation2 + $0x98] sm:$0xff] }
 0x169   : > { %3870 = vmatpush3.bf16.msra.mxu1 %v3869_v45  ;;  %3840 = vmatprep.subr.bf16.mxu0 %v3839_v46  ;;  %v3921_v45 = vpack.c.bf16 %v808_v37, %v807_v35  ;;  %v3891_v46 = vpack.c.bf16 %v794_v39, %v793_v38  ;;  %v818_v35 = vld [vmem:[%s5104_s0 + $0x968] sm:$0xff]  ;;  %v804_v37 = vld [vmem:[%s5104_s0 + $0x8f8] sm:$0xff]  ;;  %v835_v38 = vld [vmem:[%s5104_s0 + $0x9f0] sm:$0xff] }
 0x16a   : > { %3872 = vmatprep.subr.bf16.mxu1 %v3871_v50  ;;  %v3923_v50 = vpack.c.bf16 %v826_v41, %v825_v40  ;;  %v836_v39 = vld [vmem:[%s5104_s0 + $0x9f8] sm:$0xff]  ;;  %v3941_v41 = vpack.c.bf16 %v818_v35, %v817_v33  ;;  %v875_v33 = vld [vmem:[%s5104_s0 + $0xb30] sm:$0xff] }
 0x16b   : > { %v876_v35 = vld [vmem:[%s5104_s0 + $0xb38] sm:$0xff] }
 0x16c   : > { %3842 = vmatpush3.bf16.msra.mxu0 %v3841_v56  ;;  %v3893_v56 = vpack.c.bf16 %v778_v48, %v777_v47  ;;  %v820_v47 = vld [vmem:[%s5104_s0 + $0x978] sm:$0xff]  ;;  %v853_v48 = vld [vmem:[%s5104_s0 + $0xa80] sm:$0xff] }
 0x16d   : > { %3874 = vmatpush3.bf16.msra.mxu1 %v3873_v57  ;;  %3844 = vmatprep.subr.bf16.mxu0 %v3843_v58  ;;  %v3925_v57 = vpack.c.bf16 %v810_v51, %v809_v49  ;;  %v3895_v58 = vpack.c.bf16 %v796_v53, %v795_v52  ;;  %v854_v49 = vld [vmem:[%s5104_s0 + $0xa88] sm:$0xff] }
 0x16e   : > { %3876 = vmatprep.subr.bf16.mxu1 %v3875_v62  ;;  %v3927_v62 = vpack.c.bf16 %v828_v55, %v827_v54  ;;  %v886_v51 = vld [vmem:[%s5104_s0 + $0xb88] sm:$0xff]  ;;  %v3947_v54 = vpack.c.bf16 %v854_v49, %v853_v48  ;;  %v837_v55 = vld [vmem:[%s5104_s0 + $0xa00] sm:$0xff]  ;;  %v863_v48 = vld [vmem:[%s5104_s0 + $0xad0] sm:$0xff] }
 0x16f   : > { %v864_v49 = vld [vmem:[%s5104_s0 + $0xad8] sm:$0xff] }
 0x170   : > { %3846 = vmatpush3.bf16.msra.mxu0 %v3845_v4  ;;  %v3897_v4 = vpack.c.bf16 %v780_v60, %v779_v59  ;;  %v870_v59 = vld [vmem:[%s5104_s0 + $0xb08] sm:$0xff]  ;;  %v855_v60 = vld [vmem:[%s5104_s0 + $0xa90] sm:$0xff] }
 0x171   : > { %3878 = vmatpush3.bf16.msra.mxu1 %v3877_v5  ;;  %3848 = vmatprep.subr.bf16.mxu0 %v3847_v6  ;;  %v3929_v5 = vpack.c.bf16 %v812_v63, %v811_v61  ;;  %v3899_v6 = vpack.c.bf16 %v798_v1, %v797_v0  ;;  %v856_v61 = vld [vmem:[%s5104_s0 + $0xa98] sm:$0xff]  ;;  %v501_v0 = vld [vmem:[#allocation2 + $0x80] sm:$0xff] }
 0x172   : > { %3880 = vmatprep.subr.bf16.mxu1 %v3879_v10  ;;  %v3931_v10 = vpack.c.bf16 %v830_v3, %v829_v2  ;;  %v888_v63 = vld [vmem:[%s5104_s0 + $0xb98] sm:$0xff] }
 0x173   : > { %v503_v1 = vld [vmem:[#allocation2 + $0x90] sm:$0xff] }
 0x174   : > { %3850 = vmatpush3.bf16.msra.mxu0 %v3849_v16  ;;  %v3901_v16 = vpack.c.bf16 %v782_v8, %v781_v7  ;;  %v871_v7 = vld [vmem:[%s5104_s0 + $0xb10] sm:$0xff] }
 0x175   : > { %3882 = vmatpush3.bf16.msra.mxu1 %v3881_v17  ;;  %3884 = vmatprep.subr.bf16.mxu0 %v3883_v18  ;;  %v3933_v17 = vpack.c.bf16 %v814_v11, %v813_v9  ;;  %v3903_v18 = vpack.c.bf16 %v800_v13, %v799_v12  ;;  %v872_v9 = vld [vmem:[%s5104_s0 + $0xb18] sm:$0xff]  ;;  %v858_v11 = vld [vmem:[%s5104_s0 + $0xaa8] sm:$0xff]  ;;  %v889_v12 = vld [vmem:[%s5104_s0 + $0xba0] sm:$0xff] }
 0x176   : > { %3916 = vmatprep.subr.bf16.mxu1 %v3915_v22  ;;  %v3935_v22 = vpack.c.bf16 %v832_v15, %v831_v14  ;;  %v890_v13 = vld [vmem:[%s5104_s0 + $0xba8] sm:$0xff]  ;;  %v506_v14 = vld [vmem:[#allocation2 + $0xa8] sm:$0xff] }
 0x177   : > { %1514 = vmatmul.mubr.f32.vlgmr.msra.gmra.mrb[6].mxu0 %v497_v28  ;;  %v3905_v28 = vpack.c.bf16 %v784_v20, %v783_v19  ;;  %v841_v19 = vld [vmem:[%s5104_s0 + $0xa20] sm:$0xff]  ;;  %v842_v20 = vld [vmem:[%s5104_s0 + $0xa28] sm:$0xff] }
 0x178   : > { %1584 = vmatmul.mubr.f32.vlgmr.msra.gmra.mrb[6].mxu1 %v499_v29  ;;  %3886 = vmatpush3.bf16.msra.mxu0 %v3885_v30  ;;  %v3937_v29 = vpack.c.bf16 %v816_v23, %v815_v21  ;;  %v3907_v30 = vpack.c.bf16 %v802_v25, %v801_v24  ;;  %v873_v21 = vld [vmem:[%s5104_s0 + $0xb20] sm:$0xff]  ;;  %v874_v23 = vld [vmem:[%s5104_s0 + $0xb28] sm:$0xff]  ;;  %v859_v24 = vld [vmem:[%s5104_s0 + $0xab0] sm:$0xff] }
 0x179   : > { %3918 = vmatpush3.bf16.msra.mxu1 %v3917_v31  ;;  %3888 = vmatprep.subr.bf16.mxu0 %v3887_v32  ;;  %v785_v31 = vld [vmem:[%s5104_s0 + $0x860] sm:$0xff]  ;;  %v786_v32 = vld [vmem:[%s5104_s0 + $0x868] sm:$0xff]  ;;  %v860_v25 = vld [vmem:[%s5104_s0 + $0xab8] sm:$0xff] }
 0x17a   : > { %3920 = vmatprep.subr.bf16.mxu1 %v3919_v36  ;;  %1653 = vmatprep.mubr.f32.mxu0 %v502_v42  ;;  %v803_v36 = vld [vmem:[%s5104_s0 + $0x8f0] sm:$0xff]  ;;  %v3909_v40 = vpack.c.bf16 %v786_v32, %v785_v31  ;;  %v844_v32 = vld [vmem:[%s5104_s0 + $0xa38] sm:$0xff] }
 0x17b   : > { %1723 = vmatprep.mubr.f32.mxu1 %v504_v44  ;;  %v3911_v42 = vpack.c.bf16 %v804_v37, %v803_v36  ;;  %v788_v44 = vld [vmem:[%s5104_s0 + $0x878] sm:$0xff]  ;;  %v843_v31 = vld [vmem:[%s5104_s0 + $0xa30] sm:$0xff]  ;;  %v861_v36 = vld [vmem:[%s5104_s0 + $0xac0] sm:$0xff] }
 0x17c   : > { %3890 = vmatpush3.bf16.msra.mxu0 %v3889_v43  ;;  %v787_v43 = vld [vmem:[%s5104_s0 + $0x870] sm:$0xff]  ;;  %v862_v37 = vld [vmem:[%s5104_s0 + $0xac8] sm:$0xff] }
 0x17d   : > { %3922 = vmatpush3.bf16.msra.mxu1 %v3921_v45  ;;  %3892 = vmatprep.subr.bf16.mxu0 %v3891_v46  ;;  %v819_v45 = vld [vmem:[%s5104_s0 + $0x970] sm:$0xff]  ;;  %v3943_v46 = vpack.c.bf16 %v836_v39, %v835_v38  ;;  %v3913_v52 = vpack.c.bf16 %v788_v44, %v787_v43  ;;  %v893_v38 = vld [vmem:[%s5104_s0 + $0xbc0] sm:$0xff]  ;;  %v894_v39 = vld [vmem:[%s5104_s0 + $0xbc8] sm:$0xff] }
 0x17e   : > { %3924 = vmatprep.subr.bf16.mxu1 %v3923_v50  ;;  %v885_v50 = vld [vmem:[%s5104_s0 + $0xb80] sm:$0xff]  ;;  %v3945_v53 = vpack.c.bf16 %v820_v47, %v819_v45  ;;  %v846_v44 = vld [vmem:[%s5104_s0 + $0xa48] sm:$0xff] }
 0x17f   : > { %v845_v43 = vld [vmem:[%s5104_s0 + $0xa40] sm:$0xff]  ;;  %v878_v47 = vld [vmem:[%s5104_s0 + $0xb48] sm:$0xff] }
 0x180   : > { %3894 = vmatpush3.bf16.msra.mxu0 %v3893_v56  ;;  %v838_v56 = vld [vmem:[%s5104_s0 + $0xa08] sm:$0xff]  ;;  %v877_v45 = vld [vmem:[%s5104_s0 + $0xb40] sm:$0xff] }
 0x181   : > { %3926 = vmatpush3.bf16.msra.mxu1 %v3925_v57  ;;  %3896 = vmatprep.subr.bf16.mxu0 %v3895_v58  ;;  %v869_v57 = vld [vmem:[%s5104_s0 + $0xb00] sm:$0xff]  ;;  %v3979_v58 = vpack.c.bf16 %v886_v51, %v885_v50  ;;  %v3949_v2 = vpack.c.bf16 %v838_v56, %v837_v55  ;;  %v895_v50 = vld [vmem:[%s5104_s0 + $0xbd0] sm:$0xff]  ;;  %v896_v51 = vld [vmem:[%s5104_s0 + $0xbd8] sm:$0xff] }
 0x182   : > { %3928 = vmatprep.subr.bf16.mxu1 %v3927_v62  ;;  %v887_v62 = vld [vmem:[%s5104_s0 + $0xb90] sm:$0xff]  ;;  %v3981_v3 = vpack.c.bf16 %v870_v59, %v869_v57  ;;  %v848_v56 = vld [vmem:[%s5104_s0 + $0xa58] sm:$0xff] }
 0x183   : > { %v3983_v8 = vpack.c.bf16 %v888_v63, %v887_v62  ;;  %v847_v55 = vld [vmem:[%s5104_s0 + $0xa50] sm:$0xff]  ;;  %v880_v59 = vld [vmem:[%s5104_s0 + $0xb58] sm:$0xff]  ;;  %v897_v62 = vld [vmem:[%s5104_s0 + $0xbe0] sm:$0xff] }
 0x184   : > { %3898 = vmatpush3.bf16.msra.mxu0 %v3897_v4  ;;  %v3951_v4 = vpack.c.bf16 %v856_v61, %v855_v60  ;;  %v879_v57 = vld [vmem:[%s5104_s0 + $0xb50] sm:$0xff]  ;;  %v865_v60 = vld [vmem:[%s5104_s0 + $0xae0] sm:$0xff]  ;;  %v866_v61 = vld [vmem:[%s5104_s0 + $0xae8] sm:$0xff] }
 0x185   : > { %3930 = vmatpush3.bf16.msra.mxu1 %v3929_v5  ;;  %3900 = vmatprep.subr.bf16.mxu0 %v3899_v6  ;;  %v839_v5 = vld [vmem:[%s5104_s0 + $0xa10] sm:$0xff]  ;;  %v840_v6 = vld [vmem:[%s5104_s0 + $0xa18] sm:$0xff]  ;;  %v898_v63 = vld [vmem:[%s5104_s0 + $0xbe8] sm:$0xff] }
 0x186   : > { %3932 = vmatprep.subr.bf16.mxu1 %v3931_v10  ;;  %v857_v10 = vld [vmem:[%s5104_s0 + $0xaa0] sm:$0xff]  ;;  %v3953_v15 = vpack.c.bf16 %v840_v6, %v839_v5  ;;  %v4003_v6 = vpack.c.bf16 %v898_v63, %v897_v62  ;;  %v955_v62 = vld [vmem:[%s5104_s0 + $0xdb0] sm:$0xff]  ;;  %v956_v63 = vld [vmem:[%s5104_s0 + $0xdb8] sm:$0xff] }
 0x187   : > { %v881_v5 = vld [vmem:[%s5104_s0 + $0xb60] sm:$0xff] }
 0x188   : > { %3902 = vmatpush3.bf16.msra.mxu0 %v3901_v16  ;;  %v508_v16 = vld [vmem:[#allocation2 + $0xb8] sm:$0xff] }
 0x189   : > { %3934 = vmatpush3.bf16.msra.mxu1 %v3933_v17  ;;  %3904 = vmatprep.subr.bf16.mxu0 %v3903_v18  ;;  %v3985_v17 = vpack.c.bf16 %v872_v9, %v871_v7  ;;  %v3955_v18 = vpack.c.bf16 %v858_v11, %v857_v10  ;;  %v882_v7 = vld [vmem:[%s5104_s0 + $0xb68] sm:$0xff]  ;;  %v868_v9 = vld [vmem:[%s5104_s0 + $0xaf8] sm:$0xff]  ;;  %v899_v10 = vld [vmem:[%s5104_s0 + $0xbf0] sm:$0xff] }
 0x18a   : > { %3936 = vmatprep.subr.bf16.mxu1 %v3935_v22  ;;  %v3987_v22 = vpack.c.bf16 %v890_v13, %v889_v12  ;;  %v900_v11 = vld [vmem:[%s5104_s0 + $0xbf8] sm:$0xff]  ;;  %v4005_v13 = vpack.c.bf16 %v882_v7, %v881_v5  ;;  %v939_v5 = vld [vmem:[%s5104_s0 + $0xd30] sm:$0xff] }
 0x18b   : > { %v940_v7 = vld [vmem:[%s5104_s0 + $0xd38] sm:$0xff] }
 0x18c   : > { %3906 = vmatpush3.bf16.msra.mxu0 %v3905_v28  ;;  %v3957_v28 = vpack.c.bf16 %v842_v20, %v841_v19  ;;  %v884_v19 = vld [vmem:[%s5104_s0 + $0xb78] sm:$0xff]  ;;  %v917_v20 = vld [vmem:[%s5104_s0 + $0xc80] sm:$0xff] }
 0x18d   : > { %3938 = vmatpush3.bf16.msra.mxu1 %v3937_v29  ;;  %3908 = vmatprep.subr.bf16.mxu0 %v3907_v30  ;;  %v3989_v29 = vpack.c.bf16 %v874_v23, %v873_v21  ;;  %v3959_v30 = vpack.c.bf16 %v860_v25, %v859_v24  ;;  %v918_v21 = vld [vmem:[%s5104_s0 + $0xc88] sm:$0xff] }
 0x18e   : > { %3940 = vmatprep.subr.bf16.mxu1 %v3939_v34  ;;  %v3991_v34 = vpack.c.bf16 %v892_v27, %v891_v26  ;;  %v950_v23 = vld [vmem:[%s5104_s0 + $0xd88] sm:$0xff]  ;;  %v4011_v26 = vpack.c.bf16 %v918_v21, %v917_v20  ;;  %v901_v27 = vld [vmem:[%s5104_s0 + $0xc00] sm:$0xff]  ;;  %v927_v20 = vld [vmem:[%s5104_s0 + $0xcd0] sm:$0xff] }
 0x18f   : > { %v928_v21 = vld [vmem:[%s5104_s0 + $0xcd8] sm:$0xff] }
 0x190   : > { %3910 = vmatpush3.bf16.msra.mxu0 %v3909_v40  ;;  %v3961_v40 = vpack.c.bf16 %v844_v32, %v843_v31  ;;  %v934_v31 = vld [vmem:[%s5104_s0 + $0xd08] sm:$0xff]  ;;  %v919_v32 = vld [vmem:[%s5104_s0 + $0xc90] sm:$0xff] }
 0x191   : > { %3942 = vmatpush3.bf16.msra.mxu1 %v3941_v41  ;;  %3912 = vmatprep.subr.bf16.mxu0 %v3911_v42  ;;  %v3993_v41 = vpack.c.bf16 %v876_v35, %v875_v33  ;;  %v3963_v42 = vpack.c.bf16 %v862_v37, %v861_v36  ;;  %v920_v33 = vld [vmem:[%s5104_s0 + $0xc98] sm:$0xff]  ;;  %v505_v36 = vld [vmem:[#allocation2 + $0xa0] sm:$0xff] }
 0x192   : > { %3944 = vmatprep.subr.bf16.mxu1 %v3943_v46  ;;  %v3995_v46 = vpack.c.bf16 %v894_v39, %v893_v38  ;;  %v952_v35 = vld [vmem:[%s5104_s0 + $0xd98] sm:$0xff] }
 0x193   : > { %v507_v37 = vld [vmem:[#allocation2 + $0xb0] sm:$0xff] }
 0x194   : > { %3914 = vmatpush3.bf16.msra.mxu0 %v3913_v52  ;;  %v3965_v52 = vpack.c.bf16 %v846_v44, %v845_v43  ;;  %v935_v43 = vld [vmem:[%s5104_s0 + $0xd10] sm:$0xff] }
 0x195   : > { %3946 = vmatpush3.bf16.msra.mxu1 %v3945_v53  ;;  %3948 = vmatprep.subr.bf16.mxu0 %v3947_v54  ;;  %v3997_v53 = vpack.c.bf16 %v878_v47, %v877_v45  ;;  %v3967_v54 = vpack.c.bf16 %v864_v49, %v863_v48  ;;  %v936_v45 = vld [vmem:[%s5104_s0 + $0xd18] sm:$0xff]  ;;  %v922_v47 = vld [vmem:[%s5104_s0 + $0xca8] sm:$0xff]  ;;  %v953_v48 = vld [vmem:[%s5104_s0 + $0xda0] sm:$0xff] }
 0x196   : > { %3980 = vmatprep.subr.bf16.mxu1 %v3979_v58  ;;  %v3999_v58 = vpack.c.bf16 %v896_v51, %v895_v50  ;;  %v954_v49 = vld [vmem:[%s5104_s0 + $0xda8] sm:$0xff]  ;;  %v510_v50 = vld [vmem:[#allocation2 + $0xc8] sm:$0xff] }
 0x197   : > { %1654 = vmatmul.mubr.f32.vlgmr.msra.gmra.mrb[8].mxu0 %v501_v0  ;;  %v3969_v0 = vpack.c.bf16 %v848_v56, %v847_v55  ;;  %v905_v55 = vld [vmem:[%s5104_s0 + $0xc20] sm:$0xff]  ;;  %v906_v56 = vld [vmem:[%s5104_s0 + $0xc28] sm:$0xff] }
 0x198   : > { %1724 = vmatmul.mubr.f32.vlgmr.msra.gmra.mrb[8].mxu1 %v503_v1  ;;  %3950 = vmatpush3.bf16.msra.mxu0 %v3949_v2  ;;  %v4001_v1 = vpack.c.bf16 %v880_v59, %v879_v57  ;;  %v3971_v2 = vpack.c.bf16 %v866_v61, %v865_v60  ;;  %v937_v57 = vld [vmem:[%s5104_s0 + $0xd20] sm:$0xff]  ;;  %v938_v59 = vld [vmem:[%s5104_s0 + $0xd28] sm:$0xff]  ;;  %v923_v60 = vld [vmem:[%s5104_s0 + $0xcb0] sm:$0xff] }
 0x199   : > { %3982 = vmatpush3.bf16.msra.mxu1 %v3981_v3  ;;  %3952 = vmatprep.subr.bf16.mxu0 %v3951_v4  ;;  %v849_v3 = vld [vmem:[%s5104_s0 + $0xa60] sm:$0xff]  ;;  %v850_v4 = vld [vmem:[%s5104_s0 + $0xa68] sm:$0xff]  ;;  %v924_v61 = vld [vmem:[%s5104_s0 + $0xcb8] sm:$0xff] }
 0x19a   : > { %3984 = vmatprep.subr.bf16.mxu1 %v3983_v8  ;;  %1793 = vmatprep.mubr.f32.mxu0 %v506_v14  ;;  %v867_v8 = vld [vmem:[%s5104_s0 + $0xaf0] sm:$0xff]  ;;  %v3973_v12 = vpack.c.bf16 %v850_v4, %v849_v3  ;;  %v908_v4 = vld [vmem:[%s5104_s0 + $0xc38] sm:$0xff] }
 0x19b   : > { %1863 = vmatprep.mubr.f32.mxu1 %v508_v16  ;;  %v3975_v14 = vpack.c.bf16 %v868_v9, %v867_v8  ;;  %v852_v16 = vld [vmem:[%s5104_s0 + $0xa78] sm:$0xff]  ;;  %v907_v3 = vld [vmem:[%s5104_s0 + $0xc30] sm:$0xff]  ;;  %v925_v8 = vld [vmem:[%s5104_s0 + $0xcc0] sm:$0xff] }
 0x19c   : > { %3954 = vmatpush3.bf16.msra.mxu0 %v3953_v15  ;;  %v851_v15 = vld [vmem:[%s5104_s0 + $0xa70] sm:$0xff]  ;;  %v926_v9 = vld [vmem:[%s5104_s0 + $0xcc8] sm:$0xff] }
 0x19d   : > { %3986 = vmatpush3.bf16.msra.mxu1 %v3985_v17  ;;  %3956 = vmatprep.subr.bf16.mxu0 %v3955_v18  ;;  %v883_v17 = vld [vmem:[%s5104_s0 + $0xb70] sm:$0xff]  ;;  %v4007_v18 = vpack.c.bf16 %v900_v11, %v899_v10  ;;  %v3977_v24 = vpack.c.bf16 %v852_v16, %v851_v15  ;;  %v957_v10 = vld [vmem:[%s5104_s0 + $0xdc0] sm:$0xff]  ;;  %v958_v11 = vld [vmem:[%s5104_s0 + $0xdc8] sm:$0xff] }
 0x19e   : > { %3988 = vmatprep.subr.bf16.mxu1 %v3987_v22  ;;  %v949_v22 = vld [vmem:[%s5104_s0 + $0xd80] sm:$0xff]  ;;  %v4009_v25 = vpack.c.bf16 %v884_v19, %v883_v17  ;;  %v910_v16 = vld [vmem:[%s5104_s0 + $0xc48] sm:$0xff] }
 0x19f   : > { %v909_v15 = vld [vmem:[%s5104_s0 + $0xc40] sm:$0xff]  ;;  %v942_v19 = vld [vmem:[%s5104_s0 + $0xd48] sm:$0xff] }
 0x1a0   : > { %3958 = vmatpush3.bf16.msra.mxu0 %v3957_v28  ;;  %v902_v28 = vld [vmem:[%s5104_s0 + $0xc08] sm:$0xff]  ;;  %v941_v17 = vld [vmem:[%s5104_s0 + $0xd40] sm:$0xff] }
 0x1a1   : > { %3990 = vmatpush3.bf16.msra.mxu1 %v3989_v29  ;;  %3960 = vmatprep.subr.bf16.mxu0 %v3959_v30  ;;  %v933_v29 = vld [vmem:[%s5104_s0 + $0xd00] sm:$0xff]  ;;  %v4043_v30 = vpack.c.bf16 %v950_v23, %v949_v22  ;;  %v4013_v38 = vpack.c.bf16 %v902_v28, %v901_v27  ;;  %v959_v22 = vld [vmem:[%s5104_s0 + $0xdd0] sm:$0xff]  ;;  %v960_v23 = vld [vmem:[%s5104_s0 + $0xdd8] sm:$0xff] }
 0x1a2   : > { %3992 = vmatprep.subr.bf16.mxu1 %v3991_v34  ;;  %v951_v34 = vld [vmem:[%s5104_s0 + $0xd90] sm:$0xff]  ;;  %v4045_v39 = vpack.c.bf16 %v934_v31, %v933_v29  ;;  %v912_v28 = vld [vmem:[%s5104_s0 + $0xc58] sm:$0xff] }
 0x1a3   : > { %v4047_v44 = vpack.c.bf16 %v952_v35, %v951_v34  ;;  %v911_v27 = vld [vmem:[%s5104_s0 + $0xc50] sm:$0xff]  ;;  %v944_v31 = vld [vmem:[%s5104_s0 + $0xd58] sm:$0xff]  ;;  %v961_v34 = vld [vmem:[%s5104_s0 + $0xde0] sm:$0xff] }
 0x1a4   : > { %3962 = vmatpush3.bf16.msra.mxu0 %v3961_v40  ;;  %v4015_v40 = vpack.c.bf16 %v920_v33, %v919_v32  ;;  %v943_v29 = vld [vmem:[%s5104_s0 + $0xd50] sm:$0xff]  ;;  %v929_v32 = vld [vmem:[%s5104_s0 + $0xce0] sm:$0xff]  ;;  %v930_v33 = vld [vmem:[%s5104_s0 + $0xce8] sm:$0xff] }
 0x1a5   : > { %3994 = vmatpush3.bf16.msra.mxu1 %v3993_v41  ;;  %3964 = vmatprep.subr.bf16.mxu0 %v3963_v42  ;;  %v903_v41 = vld [vmem:[%s5104_s0 + $0xc10] sm:$0xff]  ;;  %v904_v42 = vld [vmem:[%s5104_s0 + $0xc18] sm:$0xff]  ;;  %v962_v35 = vld [vmem:[%s5104_s0 + $0xde8] sm:$0xff] }
 0x1a6   : > { %3996 = vmatprep.subr.bf16.mxu1 %v3995_v46  ;;  %v921_v46 = vld [vmem:[%s5104_s0 + $0xca0] sm:$0xff]  ;;  %v4017_v51 = vpack.c.bf16 %v904_v42, %v903_v41  ;;  %v4067_v42 = vpack.c.bf16 %v962_v35, %v961_v34  ;;  %v1019_v34 = vld [vmem:[%s5104_s0 + $0xfb0] sm:$0xff]  ;;  %v1020_v35 = vld [vmem:[%s5104_s0 + $0xfb8] sm:$0xff] }
 0x1a7   : > { %v945_v41 = vld [vmem:[%s5104_s0 + $0xd60] sm:$0xff] }
 0x1a8   : > { %3966 = vmatpush3.bf16.msra.mxu0 %v3965_v52  ;;  %v512_v52 = vld [vmem:[#allocation2 + $0xd8] sm:$0xff] }
 0x1a9   : > { %3998 = vmatpush3.bf16.msra.mxu1 %v3997_v53  ;;  %3968 = vmatprep.subr.bf16.mxu0 %v3967_v54  ;;  %v4049_v53 = vpack.c.bf16 %v936_v45, %v935_v43  ;;  %v4019_v54 = vpack.c.bf16 %v922_v47, %v921_v46  ;;  %v946_v43 = vld [vmem:[%s5104_s0 + $0xd68] sm:$0xff]  ;;  %v932_v45 = vld [vmem:[%s5104_s0 + $0xcf8] sm:$0xff]  ;;  %v963_v46 = vld [vmem:[%s5104_s0 + $0xdf0] sm:$0xff] }
 0x1aa   : > { %4000 = vmatprep.subr.bf16.mxu1 %v3999_v58  ;;  %v4051_v58 = vpack.c.bf16 %v954_v49, %v953_v48  ;;  %v964_v47 = vld [vmem:[%s5104_s0 + $0xdf8] sm:$0xff]  ;;  %v4069_v49 = vpack.c.bf16 %v946_v43, %v945_v41  ;;  %v1003_v41 = vld [vmem:[%s5104_s0 + $0xf30] sm:$0xff] }
 0x1ab   : > { %v1004_v43 = vld [vmem:[%s5104_s0 + $0xf38] sm:$0xff] }
 0x1ac   : > { %3970 = vmatpush3.bf16.msra.mxu0 %v3969_v0  ;;  %v4021_v0 = vpack.c.bf16 %v906_v56, %v905_v55  ;;  %v948_v55 = vld [vmem:[%s5104_s0 + $0xd78] sm:$0xff]  ;;  %v981_v56 = vld [vmem:[%s5104_s0 + $0xe80] sm:$0xff] }
 0x1ad   : > { %4002 = vmatpush3.bf16.msra.mxu1 %v4001_v1  ;;  %3972 = vmatprep.subr.bf16.mxu0 %v3971_v2  ;;  %v4053_v1 = vpack.c.bf16 %v938_v59, %v937_v57  ;;  %v4023_v2 = vpack.c.bf16 %v924_v61, %v923_v60  ;;  %v982_v57 = vld [vmem:[%s5104_s0 + $0xe88] sm:$0xff] }
 0x1ae   : > { %4004 = vmatprep.subr.bf16.mxu1 %v4003_v6  ;;  %v4055_v6 = vpack.c.bf16 %v956_v63, %v955_v62  ;;  %v1014_v59 = vld [vmem:[%s5104_s0 + $0xf88] sm:$0xff]  ;;  %v4075_v62 = vpack.c.bf16 %v982_v57, %v981_v56  ;;  %v965_v63 = vld [vmem:[%s5104_s0 + $0xe00] sm:$0xff]  ;;  %v991_v56 = vld [vmem:[%s5104_s0 + $0xed0] sm:$0xff] }
 0x1af   : > { %v992_v57 = vld [vmem:[%s5104_s0 + $0xed8] sm:$0xff] }
 0x1b0   : > { %3974 = vmatpush3.bf16.msra.mxu0 %v3973_v12  ;;  %v4025_v12 = vpack.c.bf16 %v908_v4, %v907_v3  ;;  %v998_v3 = vld [vmem:[%s5104_s0 + $0xf08] sm:$0xff]  ;;  %v983_v4 = vld [vmem:[%s5104_s0 + $0xe90] sm:$0xff] }
 0x1b1   : > { %4006 = vmatpush3.bf16.msra.mxu1 %v4005_v13  ;;  %3976 = vmatprep.subr.bf16.mxu0 %v3975_v14  ;;  %v4057_v13 = vpack.c.bf16 %v940_v7, %v939_v5  ;;  %v4027_v14 = vpack.c.bf16 %v926_v9, %v925_v8  ;;  %v984_v5 = vld [vmem:[%s5104_s0 + $0xe98] sm:$0xff]  ;;  %v509_v8 = vld [vmem:[#allocation2 + $0xc0] sm:$0xff] }
 0x1b2   : > { %4008 = vmatprep.subr.bf16.mxu1 %v4007_v18  ;;  %v4059_v18 = vpack.c.bf16 %v958_v11, %v957_v10  ;;  %v1016_v7 = vld [vmem:[%s5104_s0 + $0xf98] sm:$0xff] }
 0x1b3   : > { %v511_v9 = vld [vmem:[#allocation2 + $0xd0] sm:$0xff] }
 0x1b4   : > { %3978 = vmatpush3.bf16.msra.mxu0 %v3977_v24  ;;  %v4029_v24 = vpack.c.bf16 %v910_v16, %v909_v15  ;;  %v999_v15 = vld [vmem:[%s5104_s0 + $0xf10] sm:$0xff] }
 0x1b5   : > { %4010 = vmatpush3.bf16.msra.mxu1 %v4009_v25  ;;  %4012 = vmatprep.subr.bf16.mxu0 %v4011_v26  ;;  %v4061_v25 = vpack.c.bf16 %v942_v19, %v941_v17  ;;  %v4031_v26 = vpack.c.bf16 %v928_v21, %v927_v20  ;;  %v1000_v17 = vld [vmem:[%s5104_s0 + $0xf18] sm:$0xff]  ;;  %v986_v19 = vld [vmem:[%s5104_s0 + $0xea8] sm:$0xff]  ;;  %v1017_v20 = vld [vmem:[%s5104_s0 + $0xfa0] sm:$0xff] }
 0x1b6   : > { %4044 = vmatprep.subr.bf16.mxu1 %v4043_v30  ;;  %v4063_v30 = vpack.c.bf16 %v960_v23, %v959_v22  ;;  %v1018_v21 = vld [vmem:[%s5104_s0 + $0xfa8] sm:$0xff]  ;;  %v514_v22 = vld [vmem:[#allocation2 + $0xe8] sm:$0xff] }
 0x1b7   : > { %1794 = vmatmul.mubr.f32.vlgmr.msra.gmra.mrb[10].mxu0 %v505_v36  ;;  %v4033_v36 = vpack.c.bf16 %v912_v28, %v911_v27  ;;  %v969_v27 = vld [vmem:[%s5104_s0 + $0xe20] sm:$0xff]  ;;  %v970_v28 = vld [vmem:[%s5104_s0 + $0xe28] sm:$0xff] }
 0x1b8   : > { %1864 = vmatmul.mubr.f32.vlgmr.msra.gmra.mrb[10].mxu1 %v507_v37  ;;  %4014 = vmatpush3.bf16.msra.mxu0 %v4013_v38  ;;  %v4065_v37 = vpack.c.bf16 %v944_v31, %v943_v29  ;;  %v4035_v38 = vpack.c.bf16 %v930_v33, %v929_v32  ;;  %v1001_v29 = vld [vmem:[%s5104_s0 + $0xf20] sm:$0xff]  ;;  %v1002_v31 = vld [vmem:[%s5104_s0 + $0xf28] sm:$0xff]  ;;  %v987_v32 = vld [vmem:[%s5104_s0 + $0xeb0] sm:$0xff] }
 0x1b9   : > { %4046 = vmatpush3.bf16.msra.mxu1 %v4045_v39  ;;  %4016 = vmatprep.subr.bf16.mxu0 %v4015_v40  ;;  %v913_v39 = vld [vmem:[%s5104_s0 + $0xc60] sm:$0xff]  ;;  %v914_v40 = vld [vmem:[%s5104_s0 + $0xc68] sm:$0xff]  ;;  %v988_v33 = vld [vmem:[%s5104_s0 + $0xeb8] sm:$0xff] }
 0x1ba   : > { %4048 = vmatprep.subr.bf16.mxu1 %v4047_v44  ;;  %1933 = vmatprep.mubr.f32.mxu0 %v510_v50  ;;  %v931_v44 = vld [vmem:[%s5104_s0 + $0xcf0] sm:$0xff]  ;;  %v4037_v48 = vpack.c.bf16 %v914_v40, %v913_v39  ;;  %v972_v40 = vld [vmem:[%s5104_s0 + $0xe38] sm:$0xff] }
 0x1bb   : > { %2003 = vmatprep.mubr.f32.mxu1 %v512_v52  ;;  %v4039_v50 = vpack.c.bf16 %v932_v45, %v931_v44  ;;  %v916_v52 = vld [vmem:[%s5104_s0 + $0xc78] sm:$0xff]  ;;  %v971_v39 = vld [vmem:[%s5104_s0 + $0xe30] sm:$0xff]  ;;  %v989_v44 = vld [vmem:[%s5104_s0 + $0xec0] sm:$0xff] }
 0x1bc   : > { %4018 = vmatpush3.bf16.msra.mxu0 %v4017_v51  ;;  %v915_v51 = vld [vmem:[%s5104_s0 + $0xc70] sm:$0xff]  ;;  %v990_v45 = vld [vmem:[%s5104_s0 + $0xec8] sm:$0xff] }
 0x1bd   : > { %4050 = vmatpush3.bf16.msra.mxu1 %v4049_v53  ;;  %4020 = vmatprep.subr.bf16.mxu0 %v4019_v54  ;;  %v947_v53 = vld [vmem:[%s5104_s0 + $0xd70] sm:$0xff]  ;;  %v4071_v54 = vpack.c.bf16 %v964_v47, %v963_v46  ;;  %v4041_v60 = vpack.c.bf16 %v916_v52, %v915_v51  ;;  %v1021_v46 = vld [vmem:[%s5104_s0 + $0xfc0] sm:$0xff]  ;;  %v1022_v47 = vld [vmem:[%s5104_s0 + $0xfc8] sm:$0xff] }
 0x1be   : > { %4052 = vmatprep.subr.bf16.mxu1 %v4051_v58  ;;  %v1013_v58 = vld [vmem:[%s5104_s0 + $0xf80] sm:$0xff]  ;;  %v4073_v61 = vpack.c.bf16 %v948_v55, %v947_v53  ;;  %v974_v52 = vld [vmem:[%s5104_s0 + $0xe48] sm:$0xff] }
 0x1bf   : > { %v973_v51 = vld [vmem:[%s5104_s0 + $0xe40] sm:$0xff]  ;;  %v1006_v55 = vld [vmem:[%s5104_s0 + $0xf48] sm:$0xff] }
 0x1c0   : > { %4022 = vmatpush3.bf16.msra.mxu0 %v4021_v0  ;;  %v966_v0 = vld [vmem:[%s5104_s0 + $0xe08] sm:$0xff]  ;;  %v1005_v53 = vld [vmem:[%s5104_s0 + $0xf40] sm:$0xff] }
 0x1c1   : > { %4054 = vmatpush3.bf16.msra.mxu1 %v4053_v1  ;;  %4024 = vmatprep.subr.bf16.mxu0 %v4023_v2  ;;  %v997_v1 = vld [vmem:[%s5104_s0 + $0xf00] sm:$0xff]  ;;  %v4107_v2 = vpack.c.bf16 %v1014_v59, %v1013_v58  ;;  %v4077_v10 = vpack.c.bf16 %v966_v0, %v965_v63  ;;  %v1023_v58 = vld [vmem:[%s5104_s0 + $0xfd0] sm:$0xff]  ;;  %v1024_v59 = vld [vmem:[%s5104_s0 + $0xfd8] sm:$0xff] }
 0x1c2   : > { %4056 = vmatprep.subr.bf16.mxu1 %v4055_v6  ;;  %v1015_v6 = vld [vmem:[%s5104_s0 + $0xf90] sm:$0xff]  ;;  %v4109_v11 = vpack.c.bf16 %v998_v3, %v997_v1  ;;  %v976_v0 = vld [vmem:[%s5104_s0 + $0xe58] sm:$0xff] }
 0x1c3   : > { %v4111_v16 = vpack.c.bf16 %v1016_v7, %v1015_v6  ;;  %v975_v63 = vld [vmem:[%s5104_s0 + $0xe50] sm:$0xff]  ;;  %v1008_v3 = vld [vmem:[%s5104_s0 + $0xf58] sm:$0xff]  ;;  %v1025_v6 = vld [vmem:[%s5104_s0 + $0xfe0] sm:$0xff] }
 0x1c4   : > { %4026 = vmatpush3.bf16.msra.mxu0 %v4025_v12  ;;  %v4079_v12 = vpack.c.bf16 %v984_v5, %v983_v4  ;;  %v1007_v1 = vld [vmem:[%s5104_s0 + $0xf50] sm:$0xff]  ;;  %v993_v4 = vld [vmem:[%s5104_s0 + $0xee0] sm:$0xff]  ;;  %v994_v5 = vld [vmem:[%s5104_s0 + $0xee8] sm:$0xff] }
 0x1c5   : > { %4058 = vmatpush3.bf16.msra.mxu1 %v4057_v13  ;;  %4028 = vmatprep.subr.bf16.mxu0 %v4027_v14  ;;  %v967_v13 = vld [vmem:[%s5104_s0 + $0xe10] sm:$0xff]  ;;  %v968_v14 = vld [vmem:[%s5104_s0 + $0xe18] sm:$0xff]  ;;  %v1026_v7 = vld [vmem:[%s5104_s0 + $0xfe8] sm:$0xff] }
 0x1c6   : > { %4060 = vmatprep.subr.bf16.mxu1 %v4059_v18  ;;  %v985_v18 = vld [vmem:[%s5104_s0 + $0xea0] sm:$0xff]  ;;  %v4081_v23 = vpack.c.bf16 %v968_v14, %v967_v13 }
 0x1c7   : > { %v1009_v13 = vld [vmem:[%s5104_s0 + $0xf60] sm:$0xff] }
 0x1c8   : > { %4030 = vmatpush3.bf16.msra.mxu0 %v4029_v24  ;;  %v516_v24 = vld [vmem:[#allocation2 + $0xf8] sm:$0xff] }
 0x1c9   : > { %4062 = vmatpush3.bf16.msra.mxu1 %v4061_v25  ;;  %4032 = vmatprep.subr.bf16.mxu0 %v4031_v26  ;;  %v4113_v25 = vpack.c.bf16 %v1000_v17, %v999_v15  ;;  %v4083_v26 = vpack.c.bf16 %v986_v19, %v985_v18  ;;  %v4131_v15 = vpack.c.bf16 %v1026_v7, %v1025_v6  ;;  %v995_v17 = vld [vmem:[%s5104_s0 + $0xef0] sm:$0xff]  ;;  %v996_v18 = vld [vmem:[%s5104_s0 + $0xef8] sm:$0xff]  ;;  %v2166_v6 = vld [vmem:[%s5112_s22 + $0x20] sm:$0xff] }
 0x1ca   : > { %4064 = vmatprep.subr.bf16.mxu1 %v4063_v30  ;;  %v4115_v30 = vpack.c.bf16 %v1018_v21, %v1017_v20  ;;  %v1027_v21 = vld [vmem:[%s5104_s0 + $0xff0] sm:$0xff]  ;;  %v2167_v7 = vld [vmem:[%s5112_s22 + $0x28] sm:$0xff] }
 0x1cc   : > { %4034 = vmatpush3.bf16.msra.mxu0 %v4033_v36  ;;  %v4085_v36 = vpack.c.bf16 %v970_v28, %v969_v27  ;;  %v4103_v28 = vpack.c.bf16 %v996_v18, %v995_v17  ;;  %v2168_v18 = vld [vmem:[%s5112_s22 + $0x30] sm:$0xff] }
 0x1cd   : > { %4066 = vmatpush3.bf16.msra.mxu1 %v4065_v37  ;;  %4036 = vmatprep.subr.bf16.mxu0 %v4035_v38  ;;  %v4117_v37 = vpack.c.bf16 %v1002_v31, %v1001_v29  ;;  %v4087_v38 = vpack.c.bf16 %v988_v33, %v987_v32  ;;  %v979_v29 = vld [vmem:[%s5104_s0 + $0xe70] sm:$0xff]  ;;  %v1012_v33 = vld [vmem:[%s5104_s0 + $0xf78] sm:$0xff] }
 0x1ce   : > { %4068 = vmatprep.subr.bf16.mxu1 %v4067_v42  ;;  %v4119_v42 = vpack.c.bf16 %v1020_v35, %v1019_v34  ;;  %v1011_v31 = vld [vmem:[%s5104_s0 + $0xf70] sm:$0xff]  ;;  %v2178_v34 = vld [vmem:[%s5112_s22 + $0x80] sm:$0xff]  ;;  %v2179_v35 = vld [vmem:[%s5112_s22 + $0x88] sm:$0xff] }
 0x1d0   : > { %4038 = vmatpush3.bf16.msra.mxu0 %v4037_v48  ;;  %v4089_v48 = vpack.c.bf16 %v972_v40, %v971_v39  ;;  %v4137_v40 = vpack.c.bf16 %v1012_v33, %v1011_v31  ;;  %v2171_v31 = vld [vmem:[%s5112_s22 + $0x48] sm:$0xff] }
 0x1d1   : > { %4070 = vmatpush3.bf16.msra.mxu1 %v4069_v49  ;;  %4040 = vmatprep.subr.bf16.mxu0 %v4039_v50  ;;  %v4121_v49 = vpack.c.bf16 %v1004_v43, %v1003_v41  ;;  %v4091_v50 = vpack.c.bf16 %v990_v45, %v989_v44  ;;  %v4139_v41 = vpack.c.bf16 %v2179_v35, %v2178_v34  ;;  %v2163_v43 = vld [vmem:[%s5112_s22 + $0x8] sm:$0xff]  ;;  %v2194_v44 = vld [vmem:[%s5112_s22 + $0x100] sm:$0xff]  ;;  %v2188_v35 = vld [vmem:[%s5112_s22 + $0xd0] sm:$0xff] }
 0x1d2   : > { %4072 = vmatprep.subr.bf16.mxu1 %v4071_v54  ;;  %v4123_v54 = vpack.c.bf16 %v1022_v47, %v1021_v46  ;;  %v2195_v46 = vld [vmem:[%s5112_s22 + $0x108] sm:$0xff]  ;;  %v2180_v47 = vld [vmem:[%s5112_s22 + $0x90] sm:$0xff] }
 0x1d3   : > { %v2203_v34 = vld [vmem:[%s5112_s22 + $0x148] sm:$0xff] }
 0x1d4   : > { %4042 = vmatpush3.bf16.msra.mxu0 %v4041_v60  ;;  %v4093_v60 = vpack.c.bf16 %v974_v52, %v973_v51  ;;  %v513_v51 = vld [vmem:[#allocation2 + $0xe0] sm:$0xff]  ;;  %v515_v52 = vld [vmem:[#allocation2 + $0xf0] sm:$0xff] }
 0x1d5   : > { %4074 = vmatpush3.bf16.msra.mxu1 %v4073_v61  ;;  %4076 = vmatprep.subr.bf16.mxu0 %v4075_v62  ;;  %v4125_v61 = vpack.c.bf16 %v1006_v55, %v1005_v53  ;;  %v4095_v62 = vpack.c.bf16 %v992_v57, %v991_v56  ;;  %v2164_v56 = vld [vmem:[%s5112_s22 + $0x10] sm:$0xff]  ;;  %v2165_v57 = vld [vmem:[%s5112_s22 + $0x18] sm:$0xff] }
 0x1d6   : > { %4108 = vmatprep.subr.bf16.mxu1 %v4107_v2  ;;  %v4127_v2 = vpack.c.bf16 %v1024_v59, %v1023_v58  ;;  %v2196_v58 = vld [vmem:[%s5112_s22 + $0x110] sm:$0xff] }
 0x1d7   : > { %1934 = vmatmul.mubr.f32.vlgmr.msra.gmra.mrb[12].mxu0 %v509_v8  ;;  %v4097_v8 = vpack.c.bf16 %v976_v0, %v975_v63  ;;  %v2214_v63 = vld [vmem:[%s5112_s22 + $0x1a0] sm:$0xff]  ;;  %v2215_v0 = vld [vmem:[%s5112_s22 + $0x1a8] sm:$0xff] }
 0x1d8   : > { %2004 = vmatmul.mubr.f32.vlgmr.msra.gmra.mrb[12].mxu1 %v511_v9  ;;  %4078 = vmatpush3.bf16.msra.mxu0 %v4077_v10  ;;  %v4129_v9 = vpack.c.bf16 %v1008_v3, %v1007_v1  ;;  %v4099_v10 = vpack.c.bf16 %v994_v5, %v993_v4  ;;  %v2155_v1 = vld [vmem:[#allocation5 + $0x8] sm:$0xff]  ;;  %v2157_v3 = vld [vmem:[#allocation5 + $0x18] sm:$0xff] }
 0x1d9   : > { %4110 = vmatpush3.bf16.msra.mxu1 %v4109_v11  ;;  %4080 = vmatprep.subr.bf16.mxu0 %v4079_v12  ;;  %v977_v11 = vld [vmem:[%s5104_s0 + $0xe60] sm:$0xff]  ;;  %v978_v12 = vld [vmem:[%s5104_s0 + $0xe68] sm:$0xff] }
 0x1da   : > { %4112 = vmatprep.subr.bf16.mxu1 %v4111_v16  ;;  %2073 = vmatprep.mubr.f32.mxu0 %v514_v22  ;;  %v1010_v16 = vld [vmem:[%s5104_s0 + $0xf68] sm:$0xff]  ;;  %v1028_v22 = vld [vmem:[%s5104_s0 + $0xff8] sm:$0xff] }
 0x1db   : > { %2143 = vmatprep.mubr.f32.mxu1 %v516_v24  ;;  %v4133_v27 = vpack.c.bf16 %v1010_v16, %v1009_v13  ;;  %v4135_v32 = vpack.c.bf16 %v1028_v22, %v1027_v21  ;;  %v2216_v13 = vld [vmem:[%s5112_s22 + $0x1b0] sm:$0xff]  ;;  %v2201_v22 = vld [vmem:[%s5112_s22 + $0x138] sm:$0xff] }
 0x1dc   : > { %4082 = vmatpush3.bf16.msra.mxu0 %v4081_v23 }
 0x1dd   : > { %4114 = vmatpush3.bf16.msra.mxu1 %v4113_v25  ;;  %4084 = vmatprep.subr.bf16.mxu0 %v4083_v26  ;;  %v4101_v25 = vpack.c.bf16 %v978_v12, %v977_v11  ;;  %v2184_v11 = vld [vmem:[%s5112_s22 + $0xb0] sm:$0xff]  ;;  %v2185_v12 = vld [vmem:[%s5112_s22 + $0xb8] sm:$0xff] }
 0x1de   : > { %4116 = vmatprep.subr.bf16.mxu1 %v4115_v30  ;;  %v980_v30 = vld [vmem:[%s5104_s0 + $0xe78] sm:$0xff]  ;;  %v4151_v17 = vpack.c.bf16 %v2185_v12, %v2184_v11  ;;  %v2208_v11 = vld [vmem:[%s5112_s22 + $0x170] sm:$0xff] }
 0x1df   : > { %v4105_v39 = vpack.c.bf16 %v980_v30, %v979_v29  ;;  %v2170_v30 = vld [vmem:[%s5112_s22 + $0x40] sm:$0xff] }
 0x1e0   : > { %4086 = vmatpush3.bf16.msra.mxu0 %v4085_v36 }
 0x1e1   : > { %4118 = vmatpush3.bf16.msra.mxu1 %v4117_v37  ;;  %4088 = vmatprep.subr.bf16.mxu0 %v4087_v38  ;;  %v2210_v37 = vld [vmem:[%s5112_s22 + $0x180] sm:$0xff]  ;;  %v2211_v38 = vld [vmem:[%s5112_s22 + $0x188] sm:$0xff] }
 0x1e2   : > { %4120 = vmatprep.subr.bf16.mxu1 %v4119_v42  ;;  %v2162_v42 = vld [vmem:[%s5112_s22] sm:$0xff]  ;;  %v4171_v45 = vpack.c.bf16 %v2211_v38, %v2210_v37  ;;  %v2189_v37 = vld [vmem:[%s5112_s22 + $0xd8] sm:$0xff]  ;;  %v2220_v38 = vld [vmem:[%s5112_s22 + $0x1d0] sm:$0xff] }
 0x1e3   : > { %v4141_v53 = vpack.c.bf16 %v2163_v43, %v2162_v42  ;;  %v4159_v42 = vpack.c.bf16 %v2189_v37, %v2188_v35  ;;  %v2172_v43 = vld [vmem:[%s5112_s22 + $0x50] sm:$0xff] }
 0x1e4   : > { %4090 = vmatpush3.bf16.msra.mxu0 %v4089_v48  ;;  %v2181_v48 = vld [vmem:[%s5112_s22 + $0x98] sm:$0xff]  ;;  %v2228_v37 = vld [vmem:[%s5112_s22 + $0x210] sm:$0xff] }
 0x1e5   : > { %4122 = vmatpush3.bf16.msra.mxu1 %v4121_v49  ;;  %4092 = vmatprep.subr.bf16.mxu0 %v4091_v50  ;;  %v2212_v49 = vld [vmem:[%s5112_s22 + $0x190] sm:$0xff]  ;;  %v2213_v50 = vld [vmem:[%s5112_s22 + $0x198] sm:$0xff]  ;;  %v4143_v55 = vpack.c.bf16 %v2181_v48, %v2180_v47  ;;  %v2190_v48 = vld [vmem:[%s5112_s22 + $0xe0] sm:$0xff] }
 0x1e6   : > { %4124 = vmatprep.subr.bf16.mxu1 %v4123_v54  ;;  %v4173_v54 = vpack.c.bf16 %v2195_v46, %v2194_v44  ;;  %v4175_v59 = vpack.c.bf16 %v2213_v50, %v2212_v49  ;;  %v2173_v44 = vld [vmem:[%s5112_s22 + $0x58] sm:$0xff]  ;;  %v2191_v49 = vld [vmem:[%s5112_s22 + $0xe8] sm:$0xff]  ;;  %v2222_v50 = vld [vmem:[%s5112_s22 + $0x1e0] sm:$0xff] }
 0x1e7   : > { %v2205_v47 = vld [vmem:[%s5112_s22 + $0x158] sm:$0xff] }
 0x1e8   : > { %4094 = vmatpush3.bf16.msra.mxu0 %v4093_v60  ;;  %v2197_v60 = vld [vmem:[%s5112_s22 + $0x118] sm:$0xff] }
 0x1e9   : > { %4126 = vmatpush3.bf16.msra.mxu1 %v4125_v61  ;;  %4096 = vmatprep.subr.bf16.mxu0 %v4095_v62  ;;  %v2182_v61 = vld [vmem:[%s5112_s22 + $0xa0] sm:$0xff]  ;;  %v2183_v62 = vld [vmem:[%s5112_s22 + $0xa8] sm:$0xff]  ;;  %v4177_v4 = vpack.c.bf16 %v2197_v60, %v2196_v58 }
 0x1ea   : > { %v2931_v14 = vpop.f32.mrb[0].mxu0  ;;  %4128 = vmatprep.subr.bf16.mxu1 %v4127_v2  ;;  %v4145_v2 = vpack.c.bf16 %v2165_v57, %v2164_v56  ;;  %v4147_v5 = vpack.c.bf16 %v2183_v62, %v2182_v61  ;;  %v2175_v56 = vld [vmem:[%s5112_s22 + $0x68] sm:$0xff]  ;;  %v2206_v57 = vld [vmem:[%s5112_s22 + $0x160] sm:$0xff]  ;;  %v2192_v61 = vld [vmem:[%s5112_s22 + $0xf0] sm:$0xff] }
 0x1eb   : > { %v2966_v19 = vpop.f32.mrb[0].mxu1  ;;  %v2932_v20 = vpop.f32.mrb[1].mxu0  ;;  %v2207_v60 = vld [vmem:[%s5112_s22 + $0x168] sm:$0xff]  ;;  %v2193_v62 = vld [vmem:[%s5112_s22 + $0xf8] sm:$0xff] }
 0x1ec   : > { %v2933_v23 = vadd.f32 %v2932_v20, %v2931_v14  ;;  %v2967_v24 = vpop.f32.mrb[1].mxu1  ;;  %4098 = vmatpush3.bf16.msra.mxu0 %v4097_v8  ;;  %v2198_v8 = vld [vmem:[%s5112_s22 + $0x120] sm:$0xff]  ;;  %v2217_v14 = vld [vmem:[%s5112_s22 + $0x1b8] sm:$0xff]  ;;  %v2200_v20 = vld [vmem:[%s5112_s22 + $0x130] sm:$0xff] }
 0x1ed   : > { %v2968_v26 = vadd.f32 %v2967_v24, %v2966_v19  ;;  %4130 = vmatpush3.bf16.msra.mxu1 %v4129_v9  ;;  %4100 = vmatprep.subr.bf16.mxu0 %v4099_v10  ;;  %v4179_v9 = vpack.c.bf16 %v2215_v0, %v2214_v63  ;;  %v2199_v10 = vld [vmem:[%s5112_s22 + $0x128] sm:$0xff]  ;;  %v2169_v19 = vld [vmem:[%s5112_s22 + $0x38] sm:$0xff]  ;;  %v4183_v21 = vpack.c.bf16 %v2217_v14, %v2216_v13 }
 0x1ee   : > { %4132 = vmatprep.subr.bf16.mxu1 %v4131_v15  ;;  %v4149_v15 = vpack.c.bf16 %v2167_v7, %v2166_v6  ;;  %v4181_v16 = vpack.c.bf16 %v2199_v10, %v2198_v8  ;;  %v2187_v24 = vld [vmem:[%s5112_s22 + $0xc8] sm:$0xff]  ;;  %v4197_v7 = vpack.c.bf16 %v2207_v60, %v2206_v57  ;;  %v4167_v8 = vpack.c.bf16 %v2193_v62, %v2192_v61  ;;  %v2177_v10 = vld [vmem:[%s5112_s22 + $0x78] sm:$0xff] }
 0x1ef   : > { %v5635_v36 = vadd.f32 %v2968_v26, %v2933_v23  ;;  %v2186_v23 = vld [vmem:[%s5112_s22 + $0xc0] sm:$0xff]  ;;  %v2219_v26 = vld [vmem:[%s5112_s22 + $0x1c8] sm:$0xff]  ;;  %v2209_v14 = vld [vmem:[%s5112_s22 + $0x178] sm:$0xff] }
 0x1f0   : > { %4102 = vmatpush3.bf16.msra.mxu0 %v4101_v25  ;;  %v2218_v25 = vld [vmem:[%s5112_s22 + $0x1c0] sm:$0xff]  ;;  %v4155_v29 = vpack.c.bf16 %v2187_v24, %v2186_v23  ;;  %v2227_v23 = vld [vmem:[%s5112_s22 + $0x208] sm:$0xff]  ;;  %v2249_v57 = vld [vmem:[%s5112_s22 + $0x2b8] sm:$0xff] }
 0x1f1   : > { %4134 = vmatpush3.bf16.msra.mxu1 %v4133_v27  ;;  %4104 = vmatprep.subr.bf16.mxu0 %v4103_v28  ;;  %v4153_v27 = vpack.c.bf16 %v2169_v19, %v2168_v18  ;;  %v4185_v28 = vpack.c.bf16 %v2201_v22, %v2200_v20  ;;  %v4187_v33 = vpack.c.bf16 %v2219_v26, %v2218_v25  ;;  %v2275_v18 = vld [vmem:[%s5112_s22 + $0x388] sm:$0xff]  ;;  %v2226_v22 = vld [vmem:[%s5112_s22 + $0x200] sm:$0xff] }
 0x1f2   : > { %4136 = vmatprep.subr.bf16.mxu1 %v4135_v32  ;;  %v2202_v32 = vld [vmem:[%s5112_s22 + $0x140] sm:$0xff]  ;;  %v2259_v26 = vld [vmem:[%s5112_s22 + $0x308] sm:$0xff] }
 0x1f3   : > { %v2258_v24 = vld [vmem:[%s5112_s22 + $0x300] sm:$0xff] }
 0x1f4   : > { %4106 = vmatpush3.bf16.msra.mxu0 %v4105_v39  ;;  %v2221_v39 = vld [vmem:[%s5112_s22 + $0x1d8] sm:$0xff] }
 0x1f5   : > { %4138 = vmatpush3.bf16.msra.mxu1 %v4137_v40  ;;  %4140 = vmatprep.subr.bf16.mxu0 %v4139_v41  ;;  %v4157_v40 = vpack.c.bf16 %v2171_v31, %v2170_v30  ;;  %v4189_v41 = vpack.c.bf16 %v2203_v34, %v2202_v32  ;;  %v4191_v46 = vpack.c.bf16 %v2221_v39, %v2220_v38  ;;  %v2277_v30 = vld [vmem:[%s5112_s22 + $0x398] sm:$0xff]  ;;  %v2154_v31 = vld [vmem:[#allocation5] sm:$0xff]  ;;  %v2260_v39 = vld [vmem:[%s5112_s22 + $0x310] sm:$0xff] }
 0x1f6   : > { %4172 = vmatprep.subr.bf16.mxu1 %v4171_v45  ;;  %v2204_v45 = vld [vmem:[%s5112_s22 + $0x150] sm:$0xff]  ;;  %v2156_v32 = vld [vmem:[#allocation5 + $0x10] sm:$0xff]  ;;  %v4237_v34 = vpack.c.bf16 %v2259_v26, %v2258_v24 }
 0x1f7   : > { %2074 = vmatmul.mubr.f32.vlgmr.msra.gmra.mrb[14].mxu0 %v513_v51  ;;  %v2223_v51 = vld [vmem:[%s5112_s22 + $0x1e8] sm:$0xff]  ;;  %v2229_v38 = vld [vmem:[%s5112_s22 + $0x218] sm:$0xff] }
 0x1f8   : > { %2144 = vmatmul.mubr.f32.vlgmr.msra.gmra.mrb[14].mxu1 %v515_v52  ;;  %4142 = vmatpush3.bf16.msra.mxu0 %v4141_v53  ;;  %v4161_v52 = vpack.c.bf16 %v2173_v44, %v2172_v43  ;;  %v4193_v53 = vpack.c.bf16 %v2205_v47, %v2204_v45  ;;  %v2247_v43 = vld [vmem:[%s5112_s22 + $0x2a8] sm:$0xff]  ;;  %v2278_v44 = vld [vmem:[%s5112_s22 + $0x3a0] sm:$0xff]  ;;  %v4209_v47 = vpack.c.bf16 %v2229_v38, %v2228_v37  ;;  %v2237_v24 = vld [vmem:[%s5112_s22 + $0x258] sm:$0xff] }
 0x1f9   : > { %4174 = vmatpush3.bf16.msra.mxu1 %v4173_v54  ;;  %4144 = vmatprep.subr.bf16.mxu0 %v4143_v55  ;;  %v4163_v54 = vpack.c.bf16 %v2191_v49, %v2190_v48  ;;  %v2174_v55 = vld [vmem:[%s5112_s22 + $0x60] sm:$0xff]  ;;  %v2279_v45 = vld [vmem:[%s5112_s22 + $0x3a8] sm:$0xff] }
 0x1fa   : > { %4176 = vmatprep.subr.bf16.mxu1 %v4175_v59  ;;  %2354 = vmatprep.mubr.f32.mxu0 %v2155_v1  ;;  %v4195_v59 = vpack.c.bf16 %v2223_v51, %v2222_v50  ;;  %v2224_v1 = vld [vmem:[%s5112_s22 + $0x1f0] sm:$0xff]  ;;  %v2161_v48 = vld [vmem:[#allocation5 + $0x38] sm:$0xff]  ;;  %v2239_v37 = vld [vmem:[%s5112_s22 + $0x268] sm:$0xff] }
 0x1fb   : > { %2424 = vmatprep.mubr.f32.mxu1 %v2157_v3  ;;  %v2230_v51 = vld [vmem:[%s5112_s22 + $0x220] sm:$0xff] }
 0x1fc   : > { %4146 = vmatpush3.bf16.msra.mxu0 %v4145_v2  ;;  %v2225_v2 = vld [vmem:[%s5112_s22 + $0x1f8] sm:$0xff]  ;;  %v2270_v38 = vld [vmem:[%s5112_s22 + $0x360] sm:$0xff] }
 0x1fd   : > { %4178 = vmatpush3.bf16.msra.mxu1 %v4177_v4  ;;  %4148 = vmatprep.subr.bf16.mxu0 %v4147_v5  ;;  %v4165_v5 = vpack.c.bf16 %v2175_v56, %v2174_v55  ;;  %v4199_v13 = vpack.c.bf16 %v2225_v2, %v2224_v1  ;;  %v2263_v55 = vld [vmem:[%s5112_s22 + $0x328] sm:$0xff]  ;;  %v2248_v56 = vld [vmem:[%s5112_s22 + $0x2b0] sm:$0xff] }
 0x1fe   : > { %4180 = vmatprep.subr.bf16.mxu1 %v4179_v9  ;;  %v2176_v9 = vld [vmem:[%s5112_s22 + $0x70] sm:$0xff]  ;;  %v4215_v62 = vpack.c.bf16 %v2249_v57, %v2248_v56 }
 0x1ff   : > { %v4169_v20 = vpack.c.bf16 %v2177_v10, %v2176_v9  ;;  %v2264_v1 = vld [vmem:[%s5112_s22 + $0x330] sm:$0xff] }
 0x200   : > { %4150 = vmatpush3.bf16.msra.mxu0 %v4149_v15  ;;  %v2242_v15 = vld [vmem:[%s5112_s22 + $0x280] sm:$0xff] }
 0x201   : > { %4182 = vmatpush3.bf16.msra.mxu1 %v4181_v16  ;;  %4152 = vmatprep.subr.bf16.mxu0 %v4151_v17  ;;  %v2243_v16 = vld [vmem:[%s5112_s22 + $0x288] sm:$0xff]  ;;  %v2274_v17 = vld [vmem:[%s5112_s22 + $0x380] sm:$0xff] }
 0x202   : > { %4184 = vmatprep.subr.bf16.mxu1 %v4183_v21  ;;  %v4203_v21 = vpack.c.bf16 %v2243_v16, %v2242_v15  ;;  %v4235_v25 = vpack.c.bf16 %v2275_v18, %v2274_v17  ;;  %v2267_v15 = vld [vmem:[%s5112_s22 + $0x348] sm:$0xff]  ;;  %v2252_v16 = vld [vmem:[%s5112_s22 + $0x2d0] sm:$0xff]  ;;  %v2253_v17 = vld [vmem:[%s5112_s22 + $0x2d8] sm:$0xff] }
 0x203   : > { %v2284_v18 = vld [vmem:[%s5112_s22 + $0x3d0] sm:$0xff] }
 0x204   : > { %4154 = vmatpush3.bf16.msra.mxu0 %v4153_v27  ;;  %v2244_v27 = vld [vmem:[%s5112_s22 + $0x290] sm:$0xff] }
 0x205   : > { %4186 = vmatpush3.bf16.msra.mxu1 %v4185_v28  ;;  %4156 = vmatprep.subr.bf16.mxu0 %v4155_v29  ;;  %v2245_v28 = vld [vmem:[%s5112_s22 + $0x298] sm:$0xff]  ;;  %v2276_v29 = vld [vmem:[%s5112_s22 + $0x390] sm:$0xff] }
 0x206   : > { %4188 = vmatprep.subr.bf16.mxu1 %v4187_v33  ;;  %v4205_v33 = vpack.c.bf16 %v2227_v23, %v2226_v22  ;;  %v4207_v35 = vpack.c.bf16 %v2245_v28, %v2244_v27  ;;  %v4223_v22 = vpack.c.bf16 %v2253_v17, %v2252_v16  ;;  %v2236_v23 = vld [vmem:[%s5112_s22 + $0x250] sm:$0xff]  ;;  %v2269_v27 = vld [vmem:[%s5112_s22 + $0x358] sm:$0xff]  ;;  %v2254_v28 = vld [vmem:[%s5112_s22 + $0x2e0] sm:$0xff] }
 0x208   : > { %4158 = vmatpush3.bf16.msra.mxu0 %v4157_v40  ;;  %v4239_v40 = vpack.c.bf16 %v2277_v30, %v2276_v29  ;;  %v2255_v29 = vld [vmem:[%s5112_s22 + $0x2e8] sm:$0xff]  ;;  %v2286_v30 = vld [vmem:[%s5112_s22 + $0x3e0] sm:$0xff] }
 0x209   : > { %4190 = vmatpush3.bf16.msra.mxu1 %v4189_v41  ;;  %4160 = vmatprep.subr.bf16.mxu0 %v4159_v42  ;;  %v2261_v41 = vld [vmem:[%s5112_s22 + $0x318] sm:$0xff]  ;;  %v2246_v42 = vld [vmem:[%s5112_s22 + $0x2a0] sm:$0xff] }
 0x20a   : > { %v3001_v58 = vpop.f32.mrb[2].mxu0  ;;  %4192 = vmatprep.subr.bf16.mxu1 %v4191_v46  ;;  %v2159_v46 = vld [vmem:[#allocation5 + $0x28] sm:$0xff]  ;;  %v4241_v49 = vpack.c.bf16 %v2261_v41, %v2260_v39  ;;  %v4211_v50 = vpack.c.bf16 %v2247_v43, %v2246_v42  ;;  %v2271_v41 = vld [vmem:[%s5112_s22 + $0x368] sm:$0xff]  ;;  %v2257_v43 = vld [vmem:[%s5112_s22 + $0x2f8] sm:$0xff] }
 0x20b   : > { %v3002_v63 = vpop.f32.mrb[3].mxu0  ;;  %v3036_v0 = vpop.f32.mrb[2].mxu1  ;;  %v2256_v42 = vld [vmem:[%s5112_s22 + $0x2f0] sm:$0xff] }
 0x20c   : > { %v3003_v3 = vadd.f32 %v3002_v63, %v3001_v58  ;;  %4162 = vmatpush3.bf16.msra.mxu0 %v4161_v52  ;;  %v3037_v4 = vpop.f32.mrb[3].mxu1  ;;  %v2231_v52 = vld [vmem:[%s5112_s22 + $0x228] sm:$0xff]  ;;  %v2280_v58 = vld [vmem:[%s5112_s22 + $0x3b0] sm:$0xff] }
 0x20d   : > { %4194 = vmatpush3.bf16.msra.mxu1 %v4193_v53  ;;  %v3038_v6 = vadd.f32 %v3037_v4, %v3036_v0  ;;  %4164 = vmatprep.subr.bf16.mxu0 %v4163_v54  ;;  %v2262_v53 = vld [vmem:[%s5112_s22 + $0x320] sm:$0xff]  ;;  %v4243_v54 = vpack.c.bf16 %v2279_v45, %v2278_v44  ;;  %v4213_v60 = vpack.c.bf16 %v2231_v52, %v2230_v51  ;;  %v2232_v63 = vld [vmem:[%s5112_s22 + $0x230] sm:$0xff]  ;;  %v2233_v0 = vld [vmem:[%s5112_s22 + $0x238] sm:$0xff] }
 0x20e   : > { %v1236_v12 = vadd.f32 %v3003_v3, %v5635_v36  ;;  %4196 = vmatprep.subr.bf16.mxu1 %v4195_v59  ;;  %v4201_v36 = vpack.c.bf16 %v2209_v14, %v2208_v11  ;;  %v2281_v59 = vld [vmem:[%s5112_s22 + $0x3b8] sm:$0xff]  ;;  %v4245_v61 = vpack.c.bf16 %v2263_v55, %v2262_v53  ;;  %v2250_v4 = vld [vmem:[%s5112_s22 + $0x2c0] sm:$0xff]  ;;  %v4261_v52 = vpack.c.bf16 %v2271_v41, %v2270_v38 }
 0x20f   : > { %v4247_v2 = vpack.c.bf16 %v2281_v59, %v2280_v58  ;;  %v2265_v3 = vld [vmem:[%s5112_s22 + $0x338] sm:$0xff]  ;;  %v2234_v11 = vld [vmem:[%s5112_s22 + $0x240] sm:$0xff]  ;;  %v4231_v53 = vpack.c.bf16 %v2257_v43, %v2256_v42  ;;  %v2272_v58 = vld [vmem:[%s5112_s22 + $0x370] sm:$0xff] }
 0x210   : > { %v5704_v19 = vadd.f32 %v3038_v6, %v1236_v12  ;;  %4166 = vmatpush3.bf16.msra.mxu0 %v4165_v5  ;;  %v2251_v5 = vld [vmem:[%s5112_s22 + $0x2c8] sm:$0xff]  ;;  %v2282_v6 = vld [vmem:[%s5112_s22 + $0x3c0] sm:$0xff]  ;;  %v4249_v9 = vpack.c.bf16 %v2265_v3, %v2264_v1  ;;  %v2241_v55 = vld [vmem:[%s5112_s22 + $0x278] sm:$0xff] }
 0x211   : > { %4198 = vmatpush3.bf16.msra.mxu1 %v4197_v7  ;;  %4168 = vmatprep.subr.bf16.mxu0 %v4167_v8  ;;  %v2283_v7 = vld [vmem:[%s5112_s22 + $0x3c8] sm:$0xff]  ;;  %v4217_v8 = vpack.c.bf16 %v2233_v0, %v2232_v63  ;;  %v4219_v10 = vpack.c.bf16 %v2251_v5, %v2250_v4  ;;  %v2273_v59 = vld [vmem:[%s5112_s22 + $0x378] sm:$0xff]  ;;  %v2582_v63 = vld [vmem:[%s5115_s10] sm:$0xff] }
 0x212   : > { %4200 = vmatprep.subr.bf16.mxu1 %v4199_v13  ;;  %v2235_v12 = vld [vmem:[%s5112_s22 + $0x248] sm:$0xff]  ;;  %v2266_v13 = vld [vmem:[%s5112_s22 + $0x340] sm:$0xff]  ;;  %v4251_v14 = vpack.c.bf16 %v2283_v7, %v2282_v6  ;;  %v2160_v3 = vld [vmem:[#allocation5 + $0x30] sm:$0xff] }
 0x213   : > { %v2583_v0 = vld [vmem:[%s5115_s10 + $0x8] sm:$0xff]  ;;  %v2584_v4 = vld [vmem:[%s5115_s10 + $0x10] sm:$0xff]  ;;  %v2585_v5 = vld [vmem:[%s5115_s10 + $0x18] sm:$0xff] }
 0x214   : > { %4170 = vmatpush3.bf16.msra.mxu0 %v4169_v20  ;;  %v2285_v20 = vld [vmem:[%s5112_s22 + $0x3d8] sm:$0xff]  ;;  %v2158_v1 = vld [vmem:[#allocation5 + $0x20] sm:$0xff]  ;;  %v4271_v6 = vpack.c.bf16 %v2585_v5, %v2584_v4  ;;  %v2586_v7 = vld [vmem:[%s5115_s10 + $0x20] sm:$0xff] }
 0x215   : > { %4202 = vmatpush3.bf16.msra.mxu1 %v4201_v36  ;;  %4204 = vmatprep.subr.bf16.mxu0 %v4203_v21  ;;  %v4221_v36 = vpack.c.bf16 %v2235_v12, %v2234_v11  ;;  %v4253_v21 = vpack.c.bf16 %v2267_v15, %v2266_v13  ;;  %v4255_v26 = vpack.c.bf16 %v2285_v20, %v2284_v18  ;;  %v2588_v11 = vld [vmem:[%s5115_s10 + $0x30] sm:$0xff]  ;;  %v2589_v12 = vld [vmem:[%s5115_s10 + $0x38] sm:$0xff] }
 0x216   : > { %4236 = vmatprep.subr.bf16.mxu1 %v4235_v25  ;;  %v2268_v25 = vld [vmem:[%s5112_s22 + $0x350] sm:$0xff]  ;;  %v4277_v13 = vpack.c.bf16 %v2589_v12, %v2588_v11 }
 0x217   : > { %2355 = vmatmul.mubr.f32.vlgmr.msra.gmra.mrb[16].mxu0 %v2154_v31  ;;  %v2287_v31 = vld [vmem:[%s5112_s22 + $0x3e8] sm:$0xff] }
 0x218   : > { %2425 = vmatmul.mubr.f32.vlgmr.msra.gmra.mrb[16].mxu1 %v2156_v32  ;;  %4206 = vmatpush3.bf16.msra.mxu0 %v4205_v33  ;;  %v4225_v32 = vpack.c.bf16 %v2237_v24, %v2236_v23  ;;  %v4257_v33 = vpack.c.bf16 %v2269_v27, %v2268_v25  ;;  %v2575_v23 = vld [vmem:[%s5093_s12] sm:$0xff]  ;;  %s4607_s12 = scalar_lea.vmem %s4606_s18, 1024 }
 0x219   : > { %4238 = vmatpush3.bf16.msra.mxu1 %v4237_v34  ;;  %4208 = vmatprep.subr.bf16.mxu0 %v4207_v35  ;;  %v4227_v34 = vpack.c.bf16 %v2255_v29, %v2254_v28  ;;  %v2238_v35 = vld [vmem:[%s5112_s22 + $0x260] sm:$0xff]  ;;  %v2577_v24 = vcombine.high %v2575_v23, %v2575_v23  ;;  %2579 = vst [vmem:[%s5777_s27 + $0x8] sm:$0xf] %v2575_v23  ;;  %p4609_p2 = scmp.lt.s32.totalorder %s4607_s12, %s4601_s17 }
 0x21a   : > { %4240 = vmatprep.subr.bf16.mxu1 %v4239_v40  ;;  %2494 = vmatprep.mubr.f32.mxu0 %v2159_v46  ;;  %v4259_v40 = vpack.c.bf16 %v2287_v31, %v2286_v30  ;;  %v2288_v46 = vld [vmem:[%s5112_s22 + $0x3f0] sm:$0xff] }
 0x21b   : > { %2564 = vmatprep.mubr.f32.mxu1 %v2161_v48  ;;  %2580 = vst [vmem:[%s5777_s27 + $0x18] sm:$0xf] %v2577_v24  ;;  %p4610_p9 = por %p4609_p2, %p4608_p10 }
 0x21c   : > { %4210 = vmatpush3.bf16.msra.mxu0 %v4209_v47  ;;  %v2289_v47 = vld [vmem:[%s5112_s22 + $0x3f8] sm:$0xff] }
 0x21d   : > { %4242 = vmatpush3.bf16.msra.mxu1 %v4241_v49  ;;  %4212 = vmatprep.subr.bf16.mxu0 %v4211_v50  ;;  %v4229_v50 = vpack.c.bf16 %v2239_v37, %v2238_v35  ;;  %v4263_v57 = vpack.c.bf16 %v2289_v47, %v2288_v46  ;;  %p4611_p5 = pnand %p4610_p9, %p4604_p13 }
 0x21e   : > { %4244 = vmatprep.subr.bf16.mxu1 %v4243_v54  ;;  %v2240_v54 = vld [vmem:[%s5112_s22 + $0x270] sm:$0xff] }
 0x220   : > { %4214 = vmatpush3.bf16.msra.mxu0 %v4213_v60 }
 0x221   : > { %4246 = vmatpush3.bf16.msra.mxu1 %v4245_v61  ;;  %4216 = vmatprep.subr.bf16.mxu0 %v4215_v62  ;;  %v4233_v61 = vpack.c.bf16 %v2241_v55, %v2240_v54  ;;  %v4265_v62 = vpack.c.bf16 %v2273_v59, %v2272_v58 }
 0x222   : > { %4248 = vmatprep.subr.bf16.mxu1 %v4247_v2  ;;  %v4715_v2 = vmov 0.0|0.0  }
 0x224   : > { %4218 = vmatpush3.bf16.msra.mxu0 %v4217_v8  ;;  %v2587_v8 = vld [vmem:[%s5115_s10 + $0x28] sm:$0xff] }
 0x225   : > { %4250 = vmatpush3.bf16.msra.mxu1 %v4249_v9  ;;  %4220 = vmatprep.subr.bf16.mxu0 %v4219_v10  ;;  %v4717_v9 = vmov 0.0   ;;  %v4274_v10 = vpack.c.bf16 %v2587_v8, %v2586_v7 }
 0x226   : > { %4252 = vmatprep.subr.bf16.mxu1 %v4251_v14  ;;  %v2581_v14 = vld [vmem:[#allocation8] sm:$0xff] }
 0x228   : > { %4222 = vmatpush3.bf16.msra.mxu0 %v4221_v36 }
 0x229   : > { %4254 = vmatpush3.bf16.msra.mxu1 %v4253_v21  ;;  %4224 = vmatprep.subr.bf16.mxu0 %v4223_v22 }
 0x22a   : > { %v3071_v39 = vpop.f32.mrb[4].mxu0  ;;  %4256 = vmatprep.subr.bf16.mxu1 %v4255_v26 }
 0x22b   : > { %v3072_v44 = vpop.f32.mrb[5].mxu0  ;;  %v3106_v45 = vpop.f32.mrb[4].mxu1 }
 0x22c   : > { %v3073_v48 = vadd.f32 %v3072_v44, %v3071_v39  ;;  %4226 = vmatpush3.bf16.msra.mxu0 %v4225_v32  ;;  %v3107_v49 = vpop.f32.mrb[5].mxu1 }
 0x22d   : > { %v3108_v51 = vadd.f32 %v3107_v49, %v3106_v45  ;;  %4258 = vmatpush3.bf16.msra.mxu1 %v4257_v33  ;;  %4228 = vmatprep.subr.bf16.mxu0 %v4227_v34 }
 0x22e   : > { %v1376_v56 = vadd.f32 %v3073_v48, %v5704_v19  ;;  %4260 = vmatprep.subr.bf16.mxu1 %v4259_v40  ;;  %v4268_v19 = vpack.c.bf16 %v2583_v0, %v2582_v63 }
 0x230   : > { %v1446_v60 = vadd.f32 %v3108_v51, %v1376_v56  ;;  %4230 = vmatpush3.bf16.msra.mxu0 %v4229_v50 }
 0x231   : > { %4262 = vmatpush3.bf16.msra.mxu1 %v4261_v52  ;;  %4232 = vmatprep.subr.bf16.mxu0 %v4231_v53 }
 0x232   : > { %4264 = vmatprep.subr.bf16.mxu1 %v4263_v57 }
 0x234   : > { %4234 = vmatpush3.bf16.msra.mxu0 %v4233_v61 }
 0x235   : > { %4266 = vmatpush3.bf16.msra.mxu1 %v4265_v62  ;;  %4267 = vmatprep.subr.bf16.mxu0 %v4715_v2 }
 0x237   : > { %2495 = vmatmul.mubr.f32.vlgmr.msra.gmra.mrb[18].mxu0 %v2158_v1 }
 0x238   : > { %4269 = vmatpush3.bf16.msra.mxu0 %v4268_v19  ;;  %2565 = vmatmul.mubr.f32.vlgmr.msra.gmra.mrb[18].mxu1 %v2160_v3 }
 0x239   : > { %4270 = vmatprep.subr.bf16.mxu0 %v4715_v2  ;;  %3624 = vmatprep.mubr.msk.f32.mxu0 %vm4716_vm0, %v4717_v9 }
 0x23c   : > { %4272 = vmatpush3.bf16.msra.mxu0 %v4271_v6 }
 0x23d   : > { %4273 = vmatprep.subr.bf16.mxu0 %v4715_v2 }
 0x240   : > { %4275 = vmatpush3.bf16.msra.mxu0 %v4274_v10 }
 0x241   : > { %4276 = vmatprep.subr.bf16.mxu0 %v4715_v2 }
 0x244   : > { %4278 = vmatpush3.bf16.msra.mxu0 %v4277_v13 }
 0x247   : > { %3625 = vmatmul.mubr.msk.f32.vlgmr.msra.gmra.mrb[20].mxu0 %vm2590_vm1, %v2581_v14 }
 0x24a   : > { %v3141_v15 = vpop.f32.mrb[6].mxu0 }
 0x24b   : > { %v3142_v16 = vpop.f32.mrb[7].mxu0  ;;  %v3176_v17 = vpop.f32.mrb[6].mxu1 }
 0x24c   : > { %v3143_v18 = vadd.f32 %v3142_v16, %v3141_v15  ;;  %v3177_v20 = vpop.f32.mrb[7].mxu1 }
 0x24d   : > { %v3178_v36 = vadd.f32 %v3177_v20, %v3176_v17 }
 0x24e   : > { %v1516_v21 = vadd.f32 %v3143_v18, %v1446_v60 }
 0x250   : > { %v1586_v22 = vadd.f32 %v3178_v36, %v1516_v21 }
 0x26a   : > { %v3211_v25 = vpop.f32.mrb[8].mxu0 }
 0x26b   : > { %v3212_v26 = vpop.f32.mrb[9].mxu0  ;;  %v3246_v27 = vpop.f32.mrb[8].mxu1 }
 0x26c   : > { %v3213_v28 = vadd.f32 %v3212_v26, %v3211_v25  ;;  %v3247_v29 = vpop.f32.mrb[9].mxu1 }
 0x26d   : > { %v3248_v30 = vadd.f32 %v3247_v29, %v3246_v27 }
 0x26e   : > { %v1656_v31 = vadd.f32 %v3213_v28, %v1586_v22 }
 0x270   : > { %v1726_v32 = vadd.f32 %v3248_v30, %v1656_v31 }
 0x28a   : > { %v3281_v33 = vpop.f32.mrb[10].mxu0 }
 0x28b   : > { %v3282_v34 = vpop.f32.mrb[11].mxu0  ;;  %v3316_v35 = vpop.f32.mrb[10].mxu1 }
 0x28c   : > { %v3283_v37 = vadd.f32 %v3282_v34, %v3281_v33  ;;  %v3317_v38 = vpop.f32.mrb[11].mxu1 }
 0x28d   : > { %v3318_v39 = vadd.f32 %v3317_v38, %v3316_v35 }
 0x28e   : > { %v1796_v40 = vadd.f32 %v3283_v37, %v1726_v32 }
 0x290   : > { %v1866_v41 = vadd.f32 %v3318_v39, %v1796_v40 }
 0x2aa   : > { %v3351_v42 = vpop.f32.mrb[12].mxu0 }
 0x2ab   : > { %v3352_v43 = vpop.f32.mrb[13].mxu0  ;;  %v3386_v44 = vpop.f32.mrb[12].mxu1 }
 0x2ac   : > { %v3353_v45 = vadd.f32 %v3352_v43, %v3351_v42  ;;  %v3387_v46 = vpop.f32.mrb[13].mxu1 }
 0x2ad   : > { %v3388_v47 = vadd.f32 %v3387_v46, %v3386_v44 }
 0x2ae   : > { %v1936_v48 = vadd.f32 %v3353_v45, %v1866_v41 }
 0x2b0   : > { %v2006_v49 = vadd.f32 %v3388_v47, %v1936_v48 }
 0x2ca   : > { %v3421_v50 = vpop.f32.mrb[14].mxu0 }
 0x2cb   : > { %v3422_v51 = vpop.f32.mrb[15].mxu0  ;;  %v3456_v52 = vpop.f32.mrb[14].mxu1 }
 0x2cc   : > { %v3423_v53 = vadd.f32 %v3422_v51, %v3421_v50  ;;  %v3457_v54 = vpop.f32.mrb[15].mxu1 }
 0x2cd   : > { %v3458_v55 = vadd.f32 %v3457_v54, %v3456_v52 }
 0x2ce   : > { %v2076_v56 = vadd.f32 %v3423_v53, %v2006_v49 }
 0x2d0   : > { %v2146_v57 = vadd.f32 %v3458_v55, %v2076_v56 }
 0x2d2   : > { %v2150_v58 = vcombine.high %v2146_v57, %v2146_v57  ;;  %2152 = vst [vmem:[%s5777_s27] sm:$0xf] %v2146_v57 }
 0x2d4   : > { %2153 = vst [vmem:[%s5777_s27 + $0x10] sm:$0xf] %v2150_v58 }
 0x2ea   : > { %v3491_v59 = vpop.f32.mrb[16].mxu0 }
 0x2eb   : > { %v3526_v60 = vpop.f32.mrb[16].mxu1  ;;  %v3492_v61 = vpop.f32.mrb[17].mxu0 }
 0x2ec   : > { %v3493_v62 = vadd.f32 %v3492_v61, %v3491_v59  ;;  %v3527_v63 = vpop.f32.mrb[17].mxu1 }
 0x2ed   : > { %v3528_v0 = vadd.f32 %v3527_v63, %v3526_v60 }
 0x2ef   : > { %v2427_v1 = vadd.f32 %v3528_v0, %v3493_v62 }
 0x30a   : > { %v3561_v19 = vpop.f32.mrb[18].mxu0 }
 0x30b   : > { %v3562_v2 = vpop.f32.mrb[19].mxu0  ;;  %v3596_v3 = vpop.f32.mrb[18].mxu1 }
 0x30c   : > { %v3563_v4 = vadd.f32 %v3562_v2, %v3561_v19  ;;  %v3597_v5 = vpop.f32.mrb[19].mxu1 }
 0x30d   : > { %v3598_v6 = vadd.f32 %v3597_v5, %v3596_v3 }
 0x30e   : > { %v2497_v7 = vadd.f32 %v3563_v4, %v2427_v1 }
 0x310   : > { %v2567_v8 = vadd.f32 %v3598_v6, %v2497_v7 }
 0x312   : > { %v2571_v9 = vcombine.high %v2567_v8, %v2567_v8  ;;  %2573 = vst [vmem:[%s5777_s27 + $0x4] sm:$0xf] %v2567_v8 }
 0x314   : > { %2574 = vst [vmem:[%s5777_s27 + $0x14] sm:$0xf] %v2571_v9 }
 0x31a   : > { %v2660_v10 = vpop.f32.mrb[20].mxu0 }
 0x31b   : > { %v2665_v11 = vcombine.high %v2660_v10, %v2660_v10  ;;  %2667 = vst [vmem:[%s5777_s27 + $0xc] sm:$0xf] %v2660_v10  ;;  %v3626_v12 = vpop.f32.mrb[21].mxu0 }
 0x31d   : > { %2668 = vst [vmem:[%s5777_s27 + $0x1c] sm:$0xf] %v2665_v11 }
 0x31e   : > { %4614 = shalt.err (!%p4611_p5)
}
 0x31f   : > { %s4615_s19 = scalar_lea.hbm %s5792_s8, 512  ;;  %s4619_s1 = scalar_lea.hbm %s5910_s13, 1024 }
 0x320   : > { %p4616_p8 = scmp.ne.s32.totalorder %s5792_s8, %s4615_s19  ;;  %p4620_p4 = scmp.lt.u32.totalorder %s5792_s8, %s5910_s13 }
 0x321   : > { %p4621_p1 = scmp.lt.u32.totalorder %s4619_s1, %s4615_s19  ;;  %p4623_p12 = scmp.lt.u32.totalorder %s4615_s19, %s5792_s8 }
 0x322   : > { %p4617_p6 = pnand %p4616_p8, %p5911_p7 }
 0x323   : > { %p4622_p0 = por %p4621_p1, %p4620_p4 }
 0x324   : > { %p4618_p11 = pneg %p4617_p6 }
 0x325   : > { %p4624_p3 = por %p4623_p12, %p4622_p0 }
 0x327   : > { %p4625_p13 = pnand %p4624_p3, %p4618_p11 }
 0x329   : > { %4628 = shalt.err (!%p4625_p13)
}
 0x32a   : > { %s4719_s30 = smov 128   ;;  %s4720_s10 = smov 256  }
 0x32b   : > { %s4721_s11 = smov 8  }
 0x32c   : > { %4299 = dma.vmem_to_hbm [thread:$0]  (%p5911_p7), %s5787_s16, 512, %s5792_s8, %s2670_s21, %s4719_s30, %s4720_s10, %s4721_s11  }
 0x32d PF: > { %s5912_s27 = sld [smem:[#allocation22_spill]]  ;;  %s5913_s15 = sld [smem:[#allocation27_spill]] }
 0x32e   : > { %p5915_p2 = scmp.ge.s32.totalorder %s4703_s29, 2 }
 0x333   : > { %s2700_s23 = sand.u32 1, %s5912_s27   ;;  %p5914_p10 = scmp.ne.s32.totalorder %s5913_s15, 0 }
 0x334   : > { %s2701_s4 = scalar_lea.sflag [#allocation4], %s2700_s23 }
 0x335   : > { %p4325_p9 = pnand %p5915_p2, %p5914_p10 }
 0x337   : > { %4678 = dma.done.wait (!%p4325_p9), %s2701_s4, 512  }
 0x338   : > { %4680 = vsyncadd (!%p4325_p9), %s2701_s4, 4294966784  ;;  %s28_s29 = sadd.s32 1, %s4703_s29   ;;  %s5916_s20 = sld [smem:[#allocation23_spill]] }
 0x339   : > { %p25_p5 = scmp.ge.s32.totalorder %s28_s29, 4   ;;  %s5917_s26 = sld [smem:[#allocation29_spill]] }
 0x33a   : > { %s5918_s27 = sld [smem:[#allocation25_spill]]  ;;  %s5919_s28 = sld [smem:[#allocation28_spill]] }
 0x33b   : > { %s5920_s24 = smov %s4687_s25  ;;  %27 = sbr.rel (!%p25_p5) target bundleno = 15 (0xf), region = 144 }
 0x33e   : > { %s5921_s25 = smov %s5916_s20 }
 0x342   :  { %2706 = vsyncpa [#allocation3], 1 }
 0x343   :  { %2708 = vsyncpa [#allocation3 + $0x1], 1 }
 0x344   :  { %2709 = vsyncpa [#allocation6], 1 }
 0x345   :  { %2710 = vsyncpa [#allocation10], 1 }
 0x346   :  { %2712 = vsyncpa [#allocation10 + $0x1], 1 }
 0x347   :  { %2713 = vsyncpa [#allocation13], 1 }
 0x348   :  { %2715 = vsyncpa [#allocation13 + $0x1], 1 }
 0x349   :  { %2716 = vsyncpa [#allocation4], 1 }
 0x34a   :  { %2718 = vsyncpa [#allocation4 + $0x1], 1 }

</bundles_post_ra>
